<compile_context>
chip_gen: v5e
topology: v5e:2x2
jax: 0.10.0
libtpu: 0.0.40
codegen_flags: <defaults>
</compile_context>

<pallas_src>
import functools

import jax
import jax.numpy as jnp
from jax.experimental import pallas as pl
from jax.experimental.pallas import tpu as pltpu

_VMEM_LIMIT = 32 * 1024 * 1024  # portable across v5e / v6e / v7x


# ----------------------------------------------------------------------------
# Generic M-tiled GEMM (+bias, +optional ReLU)
# ----------------------------------------------------------------------------
def _matmul_bias_act_kernel(x_ref, w_ref, b_ref, o_ref, *, act):
    acc = jnp.dot(x_ref[...], w_ref[...], preferred_element_type=jnp.float32)
    acc = acc + b_ref[...]
    if act == "relu":
        acc = jnp.maximum(acc, 0.0)
    o_ref[...] = acc.astype(o_ref.dtype)


def pallas_matmul_bias(x, w, b, act="none", out_dtype=jnp.float32, tm=512):
    """x:[M,K] @ w:[K,N] + b:[1,N] -> [M,N]; bf16 MXU, f32 accumulation."""
    M, K = x.shape
    N = w.shape[1]
    tm = M if M <= tm else tm
    return pl.pallas_call(
        functools.partial(_matmul_bias_act_kernel, act=act),
        out_shape=jax.ShapeDtypeStruct((M, N), out_dtype),
        grid=(pl.cdiv(M, tm),),
        in_specs=[
            pl.BlockSpec((tm, K), lambda i: (i, 0)),
            pl.BlockSpec((K, N), lambda i: (0, 0)),   # weights stay resident
            pl.BlockSpec((1, N), lambda i: (0, 0)),
        ],
        out_specs=pl.BlockSpec((tm, N), lambda i: (i, 0)),
        compiler_params=pltpu.CompilerParams(
            dimension_semantics=("parallel",),
            vmem_limit_bytes=_VMEM_LIMIT),
    )(x.astype(jnp.bfloat16), w.astype(jnp.bfloat16), b.astype(jnp.float32))


# ----------------------------------------------------------------------------
# Direct 3x3 conv (padding=1) + bias + ReLU
# ----------------------------------------------------------------------------
def _conv3x3_kernel(x_ref, w_ref, b_ref, o_ref, *, H, Wp):
    """x_ref: (1, (H+2)*Wp + 2, Cin) f32 (padded image, rows flattened with the
       padded width Wp = W+2).  w_ref: (9, Cin, Cout) bf16.  b_ref: (1, Cout).
       Output: (1, H*Wp, Cout) f32; columns >= W of each row are junk and are
       cropped by the wrapper."""
    Mo = H * Wp
    Cout = o_ref.shape[2]
    acc = jnp.zeros((Mo, Cout), jnp.float32)
    for dh in range(3):
        for dw in range(3):
            off = dh * Wp + dw
            lhs = x_ref[0, pl.ds(off, Mo), :].astype(jnp.bfloat16)
            acc = acc + jnp.dot(lhs, w_ref[3 * dh + dw],
                                preferred_element_type=jnp.float32)
    o_ref[0] = jnp.maximum(acc + b_ref[...], 0.0).astype(o_ref.dtype)


def conv3x3_relu(x_nhwc, w9, bias):
    """x:[B,H,W,Cin] f32, w9:(9,Cin,Cout) bf16, bias:(1,Cout) f32 -> [B,H,W,Cout]."""
    B, H, W, Cin = x_nhwc.shape
    Cout = w9.shape[2]
    Wp = W + 2
    xp = jnp.pad(x_nhwc, ((0, 0), (1, 1), (1, 1), (0, 0)))
    x_flat = xp.reshape(B, (H + 2) * Wp, Cin)
    x_flat = jnp.pad(x_flat, ((0, 0), (0, 2), (0, 0)))  # slack rows for (2,2) tap
    Mp = (H + 2) * Wp + 2
    Mo = H * Wp
    y = pl.pallas_call(
        functools.partial(_conv3x3_kernel, H=H, Wp=Wp),
        out_shape=jax.ShapeDtypeStruct((B, Mo, Cout), jnp.float32),
        grid=(B,),
        in_specs=[
            pl.BlockSpec((1, Mp, Cin), lambda b: (b, 0, 0)),
            pl.BlockSpec((9, Cin, Cout), lambda b: (0, 0, 0)),
            pl.BlockSpec((1, Cout), lambda b: (0, 0)),
        ],
        out_specs=pl.BlockSpec((1, Mo, Cout), lambda b: (b, 0, 0)),
        compiler_params=pltpu.CompilerParams(
            dimension_semantics=("parallel",),
            vmem_limit_bytes=_VMEM_LIMIT),
    )(x_flat, w9, bias)
    # un-flatten rows, drop the 2 junk columns produced by the padded width
    return y.reshape(B, H, Wp, Cout)[:, :, :W, :]


def maxpool2x2(x_nhwc):
    B, H, W, C = x_nhwc.shape
    return jnp.max(x_nhwc.reshape(B, H // 2, 2, W // 2, 2, C), axis=(2, 4))


# ----------------------------------------------------------------------------
# Self-attention (per-batch, transpose-free layout) + residual
# ----------------------------------------------------------------------------
def _self_attn_kernel(q_ref, kt_ref, v_ref, x_ref, o_ref):
    q = q_ref[0]                                                   # (N, Cq) bf16
    kt = kt_ref[0]                                                 # (Cq, N) bf16
    energy = jnp.dot(q, kt, preferred_element_type=jnp.float32)    # (N, N) f32
    energy = energy - jnp.max(energy, axis=-1, keepdims=True)
    p = jnp.exp(energy)
    attn = p / jnp.sum(p, axis=-1, keepdims=True)                  # softmax dim=-1
    out = jnp.dot(attn.astype(jnp.bfloat16), v_ref[0],
                  preferred_element_type=jnp.float32)              # (N, C) f32
    o_ref[0] = (out + x_ref[0]).astype(o_ref.dtype)                # + residual


def pallas_self_attention(q, kt, v, x_nc):
    """q:[B,N,Cq] bf16, kt:[B,Cq,N] bf16, v:[B,N,C] bf16, x:[B,N,C] f32."""
    B, N, Cq = q.shape
    C = v.shape[2]
    return pl.pallas_call(
        _self_attn_kernel,
        out_shape=jax.ShapeDtypeStruct((B, N, C), jnp.float32),
        grid=(B,),
        in_specs=[
            pl.BlockSpec((1, N, Cq), lambda b: (b, 0, 0)),
            pl.BlockSpec((1, Cq, N), lambda b: (b, 0, 0)),
            pl.BlockSpec((1, N, C), lambda b: (b, 0, 0)),
            pl.BlockSpec((1, N, C), lambda b: (b, 0, 0)),
        ],
        out_specs=pl.BlockSpec((1, N, C), lambda b: (b, 0, 0)),
        compiler_params=pltpu.CompilerParams(
            dimension_semantics=("parallel",),
            vmem_limit_bytes=_VMEM_LIMIT),
    )(q, kt, v, x_nc)


def self_attention_block(x_nhwc, wqkv, bqkv):
    """SelfAttention.forward's `out + x`, returned in [B, N, C] layout."""
    B, H, W, C = x_nhwc.shape
    N = H * W
    Cq = (wqkv.shape[1] - C) // 2
    x_nc = x_nhwc.reshape(B, N, C)
    # fused Q/K/V projection: one GEMM over [B*N, C] -> [B*N, 2*Cq + C]
    qkv = pallas_matmul_bias(x_nc.reshape(B * N, C), wqkv, bqkv,
                             out_dtype=jnp.bfloat16)
    qkv = qkv.reshape(B, N, 2 * Cq + C)
    q = qkv[:, :, :Cq]                                             # [B, N, Cq]
    kt = jnp.transpose(qkv[:, :, Cq:2 * Cq], (0, 2, 1))            # [B, Cq, N] (tiny)
    v = qkv[:, :, 2 * Cq:]                                         # [B, N, C]
    return pallas_self_attention(q, kt, v, x_nc)                   # [B, N, C] f32


# ----------------------------------------------------------------------------
# Fused GAP + fc1 + fc2 + fc3 head
# ----------------------------------------------------------------------------
def _head_kernel(y_ref, w1_ref, b1_ref, w2_ref, b2_ref, w3_ref, b3_ref, o_ref):
    g = jnp.mean(y_ref[...], axis=1)                               # GAP -> (B, C) f32
    h = jnp.dot(g.astype(jnp.bfloat16), w1_ref[...],
                preferred_element_type=jnp.float32) + b1_ref[...]
    h = jnp.maximum(h, 0.0)
    h = jnp.dot(h.astype(jnp.bfloat16), w2_ref[...],
                preferred_element_type=jnp.float32) + b2_ref[...]
    h = jnp.maximum(h, 0.0)
    out = jnp.dot(h.astype(jnp.bfloat16), w3_ref[...],
                  preferred_element_type=jnp.float32) + b3_ref[...]
    o_ref[...] = out.astype(o_ref.dtype)


def pallas_gap_mlp_head(y, w1, b1, w2, b2, w3, b3):
    B, N, C = y.shape
    n1, n2, n3 = w1.shape[1], w2.shape[1], w3.shape[1]

    def full(shape):
        return pl.BlockSpec(shape, lambda i, _s=shape: tuple(0 for _ in _s))

    return pl.pallas_call(
        _head_kernel,
        out_shape=jax.ShapeDtypeStruct((B, n3), jnp.float32),
        grid=(1,),
        in_specs=[
            full((B, N, C)),
            full((C, n1)), full((1, n1)),
            full((n1, n2)), full((1, n2)),
            full((n2, n3)), full((1, n3)),
        ],
        out_specs=full((B, n3)),
        compiler_params=pltpu.CompilerParams(
            dimension_semantics=("arbitrary",),
            vmem_limit_bytes=_VMEM_LIMIT),
    )(y, w1, b1, w2, b2, w3, b3)


# ----------------------------------------------------------------------------
# Net.forward
# ----------------------------------------------------------------------------
def net_forward(x_nchw, p):
    x = jnp.transpose(x_nchw, (0, 2, 3, 1)).astype(jnp.float32)    # NCHW -> NHWC
    x = maxpool2x2(conv3x3_relu(x, p["w1"], p["b1"]))              # [B, H/2, W/2, 64]
    x = maxpool2x2(conv3x3_relu(x, p["w2"], p["b2"]))              # [B, H/4, W/4, 128]
    x = conv3x3_relu(x, p["w3"], p["b3"])                          # [B, H/4, W/4, 256]
    y = self_attention_block(x, p["wqkv"], p["bqkv"])              # [B, N, 256]
    return pallas_gap_mlp_head(y, p["fc1_w"], p["fc1_b"],
                               p["fc2_w"], p["fc2_b"],
                               p["fc3_w"], p["fc3_b"])             # [B, 10]


# ----------------------------------------------------------------------------
# Deterministic parameter init (xavier-normal weights, zero biases),
# pre-laid-out once for the kernels.
# ----------------------------------------------------------------------------
def _xavier_conv(key, o, i, kh, kw):
    std = (2.0 / (i * kh * kw + o * kh * kw)) ** 0.5
    return std * jax.random.normal(key, (o, i, kh, kw), jnp.float32)


def _xavier_lin(key, o, i):
    std = (2.0 / (i + o)) ** 0.5
    return std * jax.random.normal(key, (o, i), jnp.float32)


def _prep_conv3x3(w_oihw):
    """OIHW -> (9, Cin, Cout) bf16; tap index t = 3*kh + kw."""
    o, i, _, _ = w_oihw.shape
    return jnp.transpose(w_oihw, (2, 3, 1, 0)).reshape(9, i, o).astype(jnp.bfloat16)


def init_params(key):
    ks = jax.random.split(key, 9)
    w1 = _xavier_conv(ks[0], 64, 3, 3, 3)
    w2 = _xavier_conv(ks[1], 128, 64, 3, 3)
    w3 = _xavier_conv(ks[2], 256, 128, 3, 3)
    wq = _xavier_conv(ks[3], 32, 256, 1, 1)
    wk = _xavier_conv(ks[4], 32, 256, 1, 1)
    wv = _xavier_conv(ks[5], 256, 256, 1, 1)
    fc1 = _xavier_lin(ks[6], 128, 256)
    fc2 = _xavier_lin(ks[7], 64, 128)
    fc3 = _xavier_lin(ks[8], 10, 64)

    def zeros(n):
        return jnp.zeros((1, n), jnp.float32)

    # fused QKV weight: [C, Cq + Cq + C] = [256, 320], bf16
    wqkv = jnp.concatenate([wq[:, :, 0, 0], wk[:, :, 0, 0], wv[:, :, 0, 0]],
                           axis=0).T.astype(jnp.bfloat16)
    return {
        "w1": _prep_conv3x3(w1), "b1": zeros(64),
        "w2": _prep_conv3x3(w2), "b2": zeros(128),
        "w3": _prep_conv3x3(w3), "b3": zeros(256),
        "wqkv": wqkv, "bqkv": zeros(320),
        "fc1_w": fc1.T.astype(jnp.bfloat16), "fc1_b": zeros(128),
        "fc2_w": fc2.T.astype(jnp.bfloat16), "fc2_b": zeros(64),
        "fc3_w": fc3.T.astype(jnp.bfloat16), "fc3_b": zeros(10),
    }


if __name__ == "__main__":
    key = jax.random.PRNGKey(0)
    k_params, k_x = jax.random.split(key)
    params = init_params(k_params)
    x = jax.random.normal(k_x, (2, 3, 16, 16), jnp.float32)   # NCHW, like PyTorch

    logits = jax.jit(net_forward)(x, params)
    logits = jax.block_until_ready(logits)
    assert logits.shape == (2, 10) and logits.dtype == jnp.float32
    print("KERNEL_OK")
</pallas_src>

<mosaic_0001>
module attributes {stable_mosaic.version = 11 : i64} {
  func.func @_conv3x3_kernel(%arg0: i32, %arg1: memref<1x326x3xf32, #tpu.memory_space<vmem>>, %arg2: memref<9x3x64xbf16, #tpu.memory_space<vmem>>, %arg3: memref<1x64xf32, #tpu.memory_space<vmem>>, %arg4: memref<1x288x64xf32, #tpu.memory_space<vmem>>) attributes {dimension_semantics = [#tpu.dimension_semantics<parallel>], iteration_bounds = array<i64: 2>, scalar_prefetch = 0 : i64, scratch_operands = 0 : i64, tpu.core_type = #tpu.core_type<tc>, window_params = [{transform_indices = @transform_0, window_bounds = array<i64: 1, 326, 3>}, {pipeline_mode = #tpu.pipeline_mode<synchronous>, transform_indices = @transform_1, window_bounds = array<i64: 9, 3, 64>}, {pipeline_mode = #tpu.pipeline_mode<synchronous>, transform_indices = @transform_2, window_bounds = array<i64: 1, 64>}, {transform_indices = @transform_3, window_bounds = array<i64: 1, 288, 64>}]} {
    %cst = arith.constant 0.000000e+00 : f32
    %0 = vector.broadcast %cst : f32 to vector<288x64xf32>
    %c0 = arith.constant 0 : index
    %c0_0 = arith.constant 0 : index
    %c0_1 = arith.constant 0 : index
    %1 = vector.load %arg1[%c0, %c0_0, %c0_1] : memref<1x326x3xf32, #tpu.memory_space<vmem>>, vector<1x288x3xf32>
    %2 = vector.shape_cast %1 : vector<1x288x3xf32> to vector<288x3xf32>
    %3 = arith.truncf %2 : vector<288x3xf32> to vector<288x3xbf16>
    %c0_2 = arith.constant 0 : index
    %c0_3 = arith.constant 0 : index
    %c0_4 = arith.constant 0 : index
    %4 = vector.load %arg2[%c0_2, %c0_3, %c0_4] : memref<9x3x64xbf16, #tpu.memory_space<vmem>>, vector<1x3x64xbf16>
    %5 = vector.shape_cast %4 : vector<1x3x64xbf16> to vector<3x64xbf16>
    %cst_5 = arith.constant dense<0.000000e+00> : vector<288x64xf32>
    %6 = tpu.matmul %3, %5, %cst_5 {dimension_numbers = #tpu.dot_dimension_numbers<[1], [0], [0], [1], [0, 0, 1, 1], [], []>} : vector<288x3xbf16>, vector<3x64xbf16>, vector<288x64xf32> -> vector<288x64xf32>
    %7 = arith.addf %0, %6 : vector<288x64xf32>
    %c0_6 = arith.constant 0 : index
    %c1 = arith.constant 1 : index
    %c0_7 = arith.constant 0 : index
    %8 = vector.load %arg1[%c0_6, %c1, %c0_7] : memref<1x326x3xf32, #tpu.memory_space<vmem>>, vector<1x288x3xf32>
    %9 = vector.shape_cast %8 : vector<1x288x3xf32> to vector<288x3xf32>
    %10 = arith.truncf %9 : vector<288x3xf32> to vector<288x3xbf16>
    %c1_8 = arith.constant 1 : index
    %c0_9 = arith.constant 0 : index
    %c0_10 = arith.constant 0 : index
    %11 = vector.load %arg2[%c1_8, %c0_9, %c0_10] : memref<9x3x64xbf16, #tpu.memory_space<vmem>>, vector<1x3x64xbf16>
    %12 = vector.shape_cast %11 : vector<1x3x64xbf16> to vector<3x64xbf16>
    %cst_11 = arith.constant dense<0.000000e+00> : vector<288x64xf32>
    %13 = tpu.matmul %10, %12, %cst_11 {dimension_numbers = #tpu.dot_dimension_numbers<[1], [0], [0], [1], [0, 0, 1, 1], [], []>} : vector<288x3xbf16>, vector<3x64xbf16>, vector<288x64xf32> -> vector<288x64xf32>
    %14 = arith.addf %7, %13 : vector<288x64xf32>
    %c0_12 = arith.constant 0 : index
    %c2 = arith.constant 2 : index
    %c0_13 = arith.constant 0 : index
    %15 = vector.load %arg1[%c0_12, %c2, %c0_13] : memref<1x326x3xf32, #tpu.memory_space<vmem>>, vector<1x288x3xf32>
    %16 = vector.shape_cast %15 : vector<1x288x3xf32> to vector<288x3xf32>
    %17 = arith.truncf %16 : vector<288x3xf32> to vector<288x3xbf16>
    %c2_14 = arith.constant 2 : index
    %c0_15 = arith.constant 0 : index
    %c0_16 = arith.constant 0 : index
    %18 = vector.load %arg2[%c2_14, %c0_15, %c0_16] : memref<9x3x64xbf16, #tpu.memory_space<vmem>>, vector<1x3x64xbf16>
    %19 = vector.shape_cast %18 : vector<1x3x64xbf16> to vector<3x64xbf16>
    %cst_17 = arith.constant dense<0.000000e+00> : vector<288x64xf32>
    %20 = tpu.matmul %17, %19, %cst_17 {dimension_numbers = #tpu.dot_dimension_numbers<[1], [0], [0], [1], [0, 0, 1, 1], [], []>} : vector<288x3xbf16>, vector<3x64xbf16>, vector<288x64xf32> -> vector<288x64xf32>
    %21 = arith.addf %14, %20 : vector<288x64xf32>
    %c0_18 = arith.constant 0 : index
    %c18 = arith.constant 18 : index
    %c0_19 = arith.constant 0 : index
    %22 = vector.load %arg1[%c0_18, %c18, %c0_19] : memref<1x326x3xf32, #tpu.memory_space<vmem>>, vector<1x288x3xf32>
    %23 = vector.shape_cast %22 : vector<1x288x3xf32> to vector<288x3xf32>
    %24 = arith.truncf %23 : vector<288x3xf32> to vector<288x3xbf16>
    %c3 = arith.constant 3 : index
    %c0_20 = arith.constant 0 : index
    %c0_21 = arith.constant 0 : index
    %25 = vector.load %arg2[%c3, %c0_20, %c0_21] : memref<9x3x64xbf16, #tpu.memory_space<vmem>>, vector<1x3x64xbf16>
    %26 = vector.shape_cast %25 : vector<1x3x64xbf16> to vector<3x64xbf16>
    %cst_22 = arith.constant dense<0.000000e+00> : vector<288x64xf32>
    %27 = tpu.matmul %24, %26, %cst_22 {dimension_numbers = #tpu.dot_dimension_numbers<[1], [0], [0], [1], [0, 0, 1, 1], [], []>} : vector<288x3xbf16>, vector<3x64xbf16>, vector<288x64xf32> -> vector<288x64xf32>
    %28 = arith.addf %21, %27 : vector<288x64xf32>
    %c0_23 = arith.constant 0 : index
    %c19 = arith.constant 19 : index
    %c0_24 = arith.constant 0 : index
    %29 = vector.load %arg1[%c0_23, %c19, %c0_24] : memref<1x326x3xf32, #tpu.memory_space<vmem>>, vector<1x288x3xf32>
    %30 = vector.shape_cast %29 : vector<1x288x3xf32> to vector<288x3xf32>
    %31 = arith.truncf %30 : vector<288x3xf32> to vector<288x3xbf16>
    %c4 = arith.constant 4 : index
    %c0_25 = arith.constant 0 : index
    %c0_26 = arith.constant 0 : index
    %32 = vector.load %arg2[%c4, %c0_25, %c0_26] : memref<9x3x64xbf16, #tpu.memory_space<vmem>>, vector<1x3x64xbf16>
    %33 = vector.shape_cast %32 : vector<1x3x64xbf16> to vector<3x64xbf16>
    %cst_27 = arith.constant dense<0.000000e+00> : vector<288x64xf32>
    %34 = tpu.matmul %31, %33, %cst_27 {dimension_numbers = #tpu.dot_dimension_numbers<[1], [0], [0], [1], [0, 0, 1, 1], [], []>} : vector<288x3xbf16>, vector<3x64xbf16>, vector<288x64xf32> -> vector<288x64xf32>
    %35 = arith.addf %28, %34 : vector<288x64xf32>
    %c0_28 = arith.constant 0 : index
    %c20 = arith.constant 20 : index
    %c0_29 = arith.constant 0 : index
    %36 = vector.load %arg1[%c0_28, %c20, %c0_29] : memref<1x326x3xf32, #tpu.memory_space<vmem>>, vector<1x288x3xf32>
    %37 = vector.shape_cast %36 : vector<1x288x3xf32> to vector<288x3xf32>
    %38 = arith.truncf %37 : vector<288x3xf32> to vector<288x3xbf16>
    %c5 = arith.constant 5 : index
    %c0_30 = arith.constant 0 : index
    %c0_31 = arith.constant 0 : index
    %39 = vector.load %arg2[%c5, %c0_30, %c0_31] : memref<9x3x64xbf16, #tpu.memory_space<vmem>>, vector<1x3x64xbf16>
    %40 = vector.shape_cast %39 : vector<1x3x64xbf16> to vector<3x64xbf16>
    %cst_32 = arith.constant dense<0.000000e+00> : vector<288x64xf32>
    %41 = tpu.matmul %38, %40, %cst_32 {dimension_numbers = #tpu.dot_dimension_numbers<[1], [0], [0], [1], [0, 0, 1, 1], [], []>} : vector<288x3xbf16>, vector<3x64xbf16>, vector<288x64xf32> -> vector<288x64xf32>
    %42 = arith.addf %35, %41 : vector<288x64xf32>
    %c0_33 = arith.constant 0 : index
    %c36 = arith.constant 36 : index
    %c0_34 = arith.constant 0 : index
    %43 = vector.load %arg1[%c0_33, %c36, %c0_34] : memref<1x326x3xf32, #tpu.memory_space<vmem>>, vector<1x288x3xf32>
    %44 = vector.shape_cast %43 : vector<1x288x3xf32> to vector<288x3xf32>
    %45 = arith.truncf %44 : vector<288x3xf32> to vector<288x3xbf16>
    %c6 = arith.constant 6 : index
    %c0_35 = arith.constant 0 : index
    %c0_36 = arith.constant 0 : index
    %46 = vector.load %arg2[%c6, %c0_35, %c0_36] : memref<9x3x64xbf16, #tpu.memory_space<vmem>>, vector<1x3x64xbf16>
    %47 = vector.shape_cast %46 : vector<1x3x64xbf16> to vector<3x64xbf16>
    %cst_37 = arith.constant dense<0.000000e+00> : vector<288x64xf32>
    %48 = tpu.matmul %45, %47, %cst_37 {dimension_numbers = #tpu.dot_dimension_numbers<[1], [0], [0], [1], [0, 0, 1, 1], [], []>} : vector<288x3xbf16>, vector<3x64xbf16>, vector<288x64xf32> -> vector<288x64xf32>
    %49 = arith.addf %42, %48 : vector<288x64xf32>
    %c0_38 = arith.constant 0 : index
    %c37 = arith.constant 37 : index
    %c0_39 = arith.constant 0 : index
    %50 = vector.load %arg1[%c0_38, %c37, %c0_39] : memref<1x326x3xf32, #tpu.memory_space<vmem>>, vector<1x288x3xf32>
    %51 = vector.shape_cast %50 : vector<1x288x3xf32> to vector<288x3xf32>
    %52 = arith.truncf %51 : vector<288x3xf32> to vector<288x3xbf16>
    %c7 = arith.constant 7 : index
    %c0_40 = arith.constant 0 : index
    %c0_41 = arith.constant 0 : index
    %53 = vector.load %arg2[%c7, %c0_40, %c0_41] : memref<9x3x64xbf16, #tpu.memory_space<vmem>>, vector<1x3x64xbf16>
    %54 = vector.shape_cast %53 : vector<1x3x64xbf16> to vector<3x64xbf16>
    %cst_42 = arith.constant dense<0.000000e+00> : vector<288x64xf32>
    %55 = tpu.matmul %52, %54, %cst_42 {dimension_numbers = #tpu.dot_dimension_numbers<[1], [0], [0], [1], [0, 0, 1, 1], [], []>} : vector<288x3xbf16>, vector<3x64xbf16>, vector<288x64xf32> -> vector<288x64xf32>
    %56 = arith.addf %49, %55 : vector<288x64xf32>
    %c0_43 = arith.constant 0 : index
    %c38 = arith.constant 38 : index
    %c0_44 = arith.constant 0 : index
    %57 = vector.load %arg1[%c0_43, %c38, %c0_44] : memref<1x326x3xf32, #tpu.memory_space<vmem>>, vector<1x288x3xf32>
    %58 = vector.shape_cast %57 : vector<1x288x3xf32> to vector<288x3xf32>
    %59 = arith.truncf %58 : vector<288x3xf32> to vector<288x3xbf16>
    %c8 = arith.constant 8 : index
    %c0_45 = arith.constant 0 : index
    %c0_46 = arith.constant 0 : index
    %60 = vector.load %arg2[%c8, %c0_45, %c0_46] : memref<9x3x64xbf16, #tpu.memory_space<vmem>>, vector<1x3x64xbf16>
    %61 = vector.shape_cast %60 : vector<1x3x64xbf16> to vector<3x64xbf16>
    %cst_47 = arith.constant dense<0.000000e+00> : vector<288x64xf32>
    %62 = tpu.matmul %59, %61, %cst_47 {dimension_numbers = #tpu.dot_dimension_numbers<[1], [0], [0], [1], [0, 0, 1, 1], [], []>} : vector<288x3xbf16>, vector<3x64xbf16>, vector<288x64xf32> -> vector<288x64xf32>
    %63 = arith.addf %56, %62 : vector<288x64xf32>
    %c0_48 = arith.constant 0 : index
    %c0_49 = arith.constant 0 : index
    %64 = vector.load %arg3[%c0_48, %c0_49] : memref<1x64xf32, #tpu.memory_space<vmem>>, vector<1x64xf32>
    %65 = vector.broadcast %64 : vector<1x64xf32> to vector<288x64xf32>
    %66 = arith.addf %63, %65 : vector<288x64xf32>
    %cst_50 = arith.constant 0.000000e+00 : f32
    %67 = vector.broadcast %cst_50 : f32 to vector<288x64xf32>
    %68 = arith.maximumf %66, %67 : vector<288x64xf32>
    %c0_51 = arith.constant 0 : index
    %c0_52 = arith.constant 0 : index
    %c0_53 = arith.constant 0 : index
    %69 = vector.load %arg4[%c0_51, %c0_52, %c0_53] : memref<1x288x64xf32, #tpu.memory_space<vmem>>, vector<1x288x64xf32>
    %70 = vector.shape_cast %69 : vector<1x288x64xf32> to vector<288x64xf32>
    %71 = vector.shape_cast %68 : vector<288x64xf32> to vector<1x288x64xf32>
    tpu.vector_store %arg4[%c0_51, %c0_52, %c0_53], %71 {strides = array<i32>} : memref<1x288x64xf32, #tpu.memory_space<vmem>>, vector<1x288x64xf32>,
    return
  }
  func.func @transform_0(%arg0: i32) -> (i32, i32, i32) {
    %c0_i32 = arith.constant 0 : i32
    %c0_i32_0 = arith.constant 0 : i32
    %c0_i32_1 = arith.constant 0 : i32
    return %arg0, %c0_i32, %c0_i32_0 : i32, i32, i32
  }
  func.func @transform_1(%arg0: i32) -> (i32, i32, i32) {
    %c0_i32 = arith.constant 0 : i32
    %c0_i32_0 = arith.constant 0 : i32
    %c0_i32_1 = arith.constant 0 : i32
    %c0_i32_2 = arith.constant 0 : i32
    return %c0_i32, %c0_i32_0, %c0_i32_1 : i32, i32, i32
  }
  func.func @transform_2(%arg0: i32) -> (i32, i32) {
    %c0_i32 = arith.constant 0 : i32
    %c0_i32_0 = arith.constant 0 : i32
    %c0_i32_1 = arith.constant 0 : i32
    return %c0_i32, %c0_i32_0 : i32, i32
  }
  func.func @transform_3(%arg0: i32) -> (i32, i32, i32) {
    %c0_i32 = arith.constant 0 : i32
    %c0_i32_0 = arith.constant 0 : i32
    %c0_i32_1 = arith.constant 0 : i32
    return %arg0, %c0_i32, %c0_i32_0 : i32, i32, i32
  }
}

module attributes {stable_mosaic.version = 11 : i64} {
  func.func @_conv3x3_kernel(%arg0: i32, %arg1: memref<1x102x64xf32, #tpu.memory_space<vmem>>, %arg2: memref<9x64x128xbf16, #tpu.memory_space<vmem>>, %arg3: memref<1x128xf32, #tpu.memory_space<vmem>>, %arg4: memref<1x80x128xf32, #tpu.memory_space<vmem>>) attributes {dimension_semantics = [#tpu.dimension_semantics<parallel>], iteration_bounds = array<i64: 2>, scalar_prefetch = 0 : i64, scratch_operands = 0 : i64, tpu.core_type = #tpu.core_type<tc>, window_params = [{transform_indices = @transform_0, window_bounds = array<i64: 1, 102, 64>}, {pipeline_mode = #tpu.pipeline_mode<synchronous>, transform_indices = @transform_1, window_bounds = array<i64: 9, 64, 128>}, {pipeline_mode = #tpu.pipeline_mode<synchronous>, transform_indices = @transform_2, window_bounds = array<i64: 1, 128>}, {transform_indices = @transform_3, window_bounds = array<i64: 1, 80, 128>}]} {
    %cst = arith.constant 0.000000e+00 : f32
    %0 = vector.broadcast %cst : f32 to vector<80x128xf32>
    %c0 = arith.constant 0 : index
    %c0_0 = arith.constant 0 : index
    %c0_1 = arith.constant 0 : index
    %1 = vector.load %arg1[%c0, %c0_0, %c0_1] : memref<1x102x64xf32, #tpu.memory_space<vmem>>, vector<1x80x64xf32>
    %2 = vector.shape_cast %1 : vector<1x80x64xf32> to vector<80x64xf32>
    %3 = arith.truncf %2 : vector<80x64xf32> to vector<80x64xbf16>
    %c0_2 = arith.constant 0 : index
    %c0_3 = arith.constant 0 : index
    %c0_4 = arith.constant 0 : index
    %4 = vector.load %arg2[%c0_2, %c0_3, %c0_4] : memref<9x64x128xbf16, #tpu.memory_space<vmem>>, vector<1x64x128xbf16>
    %5 = vector.shape_cast %4 : vector<1x64x128xbf16> to vector<64x128xbf16>
    %cst_5 = arith.constant dense<0.000000e+00> : vector<80x128xf32>
    %6 = tpu.matmul %3, %5, %cst_5 {dimension_numbers = #tpu.dot_dimension_numbers<[1], [0], [0], [1], [0, 0, 1, 1], [], []>} : vector<80x64xbf16>, vector<64x128xbf16>, vector<80x128xf32> -> vector<80x128xf32>
    %7 = arith.addf %0, %6 : vector<80x128xf32>
    %c0_6 = arith.constant 0 : index
    %c1 = arith.constant 1 : index
    %c0_7 = arith.constant 0 : index
    %8 = vector.load %arg1[%c0_6, %c1, %c0_7] : memref<1x102x64xf32, #tpu.memory_space<vmem>>, vector<1x80x64xf32>
    %9 = vector.shape_cast %8 : vector<1x80x64xf32> to vector<80x64xf32>
    %10 = arith.truncf %9 : vector<80x64xf32> to vector<80x64xbf16>
    %c1_8 = arith.constant 1 : index
    %c0_9 = arith.constant 0 : index
    %c0_10 = arith.constant 0 : index
    %11 = vector.load %arg2[%c1_8, %c0_9, %c0_10] : memref<9x64x128xbf16, #tpu.memory_space<vmem>>, vector<1x64x128xbf16>
    %12 = vector.shape_cast %11 : vector<1x64x128xbf16> to vector<64x128xbf16>
    %cst_11 = arith.constant dense<0.000000e+00> : vector<80x128xf32>
    %13 = tpu.matmul %10, %12, %cst_11 {dimension_numbers = #tpu.dot_dimension_numbers<[1], [0], [0], [1], [0, 0, 1, 1], [], []>} : vector<80x64xbf16>, vector<64x128xbf16>, vector<80x128xf32> -> vector<80x128xf32>
    %14 = arith.addf %7, %13 : vector<80x128xf32>
    %c0_12 = arith.constant 0 : index
    %c2 = arith.constant 2 : index
    %c0_13 = arith.constant 0 : index
    %15 = vector.load %arg1[%c0_12, %c2, %c0_13] : memref<1x102x64xf32, #tpu.memory_space<vmem>>, vector<1x80x64xf32>
    %16 = vector.shape_cast %15 : vector<1x80x64xf32> to vector<80x64xf32>
    %17 = arith.truncf %16 : vector<80x64xf32> to vector<80x64xbf16>
    %c2_14 = arith.constant 2 : index
    %c0_15 = arith.constant 0 : index
    %c0_16 = arith.constant 0 : index
    %18 = vector.load %arg2[%c2_14, %c0_15, %c0_16] : memref<9x64x128xbf16, #tpu.memory_space<vmem>>, vector<1x64x128xbf16>
    %19 = vector.shape_cast %18 : vector<1x64x128xbf16> to vector<64x128xbf16>
    %cst_17 = arith.constant dense<0.000000e+00> : vector<80x128xf32>
    %20 = tpu.matmul %17, %19, %cst_17 {dimension_numbers = #tpu.dot_dimension_numbers<[1], [0], [0], [1], [0, 0, 1, 1], [], []>} : vector<80x64xbf16>, vector<64x128xbf16>, vector<80x128xf32> -> vector<80x128xf32>
    %21 = arith.addf %14, %20 : vector<80x128xf32>
    %c0_18 = arith.constant 0 : index
    %c10 = arith.constant 10 : index
    %c0_19 = arith.constant 0 : index
    %22 = vector.load %arg1[%c0_18, %c10, %c0_19] : memref<1x102x64xf32, #tpu.memory_space<vmem>>, vector<1x80x64xf32>
    %23 = vector.shape_cast %22 : vector<1x80x64xf32> to vector<80x64xf32>
    %24 = arith.truncf %23 : vector<80x64xf32> to vector<80x64xbf16>
    %c3 = arith.constant 3 : index
    %c0_20 = arith.constant 0 : index
    %c0_21 = arith.constant 0 : index
    %25 = vector.load %arg2[%c3, %c0_20, %c0_21] : memref<9x64x128xbf16, #tpu.memory_space<vmem>>, vector<1x64x128xbf16>
    %26 = vector.shape_cast %25 : vector<1x64x128xbf16> to vector<64x128xbf16>
    %cst_22 = arith.constant dense<0.000000e+00> : vector<80x128xf32>
    %27 = tpu.matmul %24, %26, %cst_22 {dimension_numbers = #tpu.dot_dimension_numbers<[1], [0], [0], [1], [0, 0, 1, 1], [], []>} : vector<80x64xbf16>, vector<64x128xbf16>, vector<80x128xf32> -> vector<80x128xf32>
    %28 = arith.addf %21, %27 : vector<80x128xf32>
    %c0_23 = arith.constant 0 : index
    %c11 = arith.constant 11 : index
    %c0_24 = arith.constant 0 : index
    %29 = vector.load %arg1[%c0_23, %c11, %c0_24] : memref<1x102x64xf32, #tpu.memory_space<vmem>>, vector<1x80x64xf32>
    %30 = vector.shape_cast %29 : vector<1x80x64xf32> to vector<80x64xf32>
    %31 = arith.truncf %30 : vector<80x64xf32> to vector<80x64xbf16>
    %c4 = arith.constant 4 : index
    %c0_25 = arith.constant 0 : index
    %c0_26 = arith.constant 0 : index
    %32 = vector.load %arg2[%c4, %c0_25, %c0_26] : memref<9x64x128xbf16, #tpu.memory_space<vmem>>, vector<1x64x128xbf16>
    %33 = vector.shape_cast %32 : vector<1x64x128xbf16> to vector<64x128xbf16>
    %cst_27 = arith.constant dense<0.000000e+00> : vector<80x128xf32>
    %34 = tpu.matmul %31, %33, %cst_27 {dimension_numbers = #tpu.dot_dimension_numbers<[1], [0], [0], [1], [0, 0, 1, 1], [], []>} : vector<80x64xbf16>, vector<64x128xbf16>, vector<80x128xf32> -> vector<80x128xf32>
    %35 = arith.addf %28, %34 : vector<80x128xf32>
    %c0_28 = arith.constant 0 : index
    %c12 = arith.constant 12 : index
    %c0_29 = arith.constant 0 : index
    %36 = vector.load %arg1[%c0_28, %c12, %c0_29] : memref<1x102x64xf32, #tpu.memory_space<vmem>>, vector<1x80x64xf32>
    %37 = vector.shape_cast %36 : vector<1x80x64xf32> to vector<80x64xf32>
    %38 = arith.truncf %37 : vector<80x64xf32> to vector<80x64xbf16>
    %c5 = arith.constant 5 : index
    %c0_30 = arith.constant 0 : index
    %c0_31 = arith.constant 0 : index
    %39 = vector.load %arg2[%c5, %c0_30, %c0_31] : memref<9x64x128xbf16, #tpu.memory_space<vmem>>, vector<1x64x128xbf16>
    %40 = vector.shape_cast %39 : vector<1x64x128xbf16> to vector<64x128xbf16>
    %cst_32 = arith.constant dense<0.000000e+00> : vector<80x128xf32>
    %41 = tpu.matmul %38, %40, %cst_32 {dimension_numbers = #tpu.dot_dimension_numbers<[1], [0], [0], [1], [0, 0, 1, 1], [], []>} : vector<80x64xbf16>, vector<64x128xbf16>, vector<80x128xf32> -> vector<80x128xf32>
    %42 = arith.addf %35, %41 : vector<80x128xf32>
    %c0_33 = arith.constant 0 : index
    %c20 = arith.constant 20 : index
    %c0_34 = arith.constant 0 : index
    %43 = vector.load %arg1[%c0_33, %c20, %c0_34] : memref<1x102x64xf32, #tpu.memory_space<vmem>>, vector<1x80x64xf32>
    %44 = vector.shape_cast %43 : vector<1x80x64xf32> to vector<80x64xf32>
    %45 = arith.truncf %44 : vector<80x64xf32> to vector<80x64xbf16>
    %c6 = arith.constant 6 : index
    %c0_35 = arith.constant 0 : index
    %c0_36 = arith.constant 0 : index
    %46 = vector.load %arg2[%c6, %c0_35, %c0_36] : memref<9x64x128xbf16, #tpu.memory_space<vmem>>, vector<1x64x128xbf16>
    %47 = vector.shape_cast %46 : vector<1x64x128xbf16> to vector<64x128xbf16>
    %cst_37 = arith.constant dense<0.000000e+00> : vector<80x128xf32>
    %48 = tpu.matmul %45, %47, %cst_37 {dimension_numbers = #tpu.dot_dimension_numbers<[1], [0], [0], [1], [0, 0, 1, 1], [], []>} : vector<80x64xbf16>, vector<64x128xbf16>, vector<80x128xf32> -> vector<80x128xf32>
    %49 = arith.addf %42, %48 : vector<80x128xf32>
    %c0_38 = arith.constant 0 : index
    %c21 = arith.constant 21 : index
    %c0_39 = arith.constant 0 : index
    %50 = vector.load %arg1[%c0_38, %c21, %c0_39] : memref<1x102x64xf32, #tpu.memory_space<vmem>>, vector<1x80x64xf32>
    %51 = vector.shape_cast %50 : vector<1x80x64xf32> to vector<80x64xf32>
    %52 = arith.truncf %51 : vector<80x64xf32> to vector<80x64xbf16>
    %c7 = arith.constant 7 : index
    %c0_40 = arith.constant 0 : index
    %c0_41 = arith.constant 0 : index
    %53 = vector.load %arg2[%c7, %c0_40, %c0_41] : memref<9x64x128xbf16, #tpu.memory_space<vmem>>, vector<1x64x128xbf16>
    %54 = vector.shape_cast %53 : vector<1x64x128xbf16> to vector<64x128xbf16>
    %cst_42 = arith.constant dense<0.000000e+00> : vector<80x128xf32>
    %55 = tpu.matmul %52, %54, %cst_42 {dimension_numbers = #tpu.dot_dimension_numbers<[1], [0], [0], [1], [0, 0, 1, 1], [], []>} : vector<80x64xbf16>, vector<64x128xbf16>, vector<80x128xf32> -> vector<80x128xf32>
    %56 = arith.addf %49, %55 : vector<80x128xf32>
    %c0_43 = arith.constant 0 : index
    %c22 = arith.constant 22 : index
    %c0_44 = arith.constant 0 : index
    %57 = vector.load %arg1[%c0_43, %c22, %c0_44] : memref<1x102x64xf32, #tpu.memory_space<vmem>>, vector<1x80x64xf32>
    %58 = vector.shape_cast %57 : vector<1x80x64xf32> to vector<80x64xf32>
    %59 = arith.truncf %58 : vector<80x64xf32> to vector<80x64xbf16>
    %c8 = arith.constant 8 : index
    %c0_45 = arith.constant 0 : index
    %c0_46 = arith.constant 0 : index
    %60 = vector.load %arg2[%c8, %c0_45, %c0_46] : memref<9x64x128xbf16, #tpu.memory_space<vmem>>, vector<1x64x128xbf16>
    %61 = vector.shape_cast %60 : vector<1x64x128xbf16> to vector<64x128xbf16>
    %cst_47 = arith.constant dense<0.000000e+00> : vector<80x128xf32>
    %62 = tpu.matmul %59, %61, %cst_47 {dimension_numbers = #tpu.dot_dimension_numbers<[1], [0], [0], [1], [0, 0, 1, 1], [], []>} : vector<80x64xbf16>, vector<64x128xbf16>, vector<80x128xf32> -> vector<80x128xf32>
    %63 = arith.addf %56, %62 : vector<80x128xf32>
    %c0_48 = arith.constant 0 : index
    %c0_49 = arith.constant 0 : index
    %64 = vector.load %arg3[%c0_48, %c0_49] : memref<1x128xf32, #tpu.memory_space<vmem>>, vector<1x128xf32>
    %65 = vector.broadcast %64 : vector<1x128xf32> to vector<80x128xf32>
    %66 = arith.addf %63, %65 : vector<80x128xf32>
    %cst_50 = arith.constant 0.000000e+00 : f32
    %67 = vector.broadcast %cst_50 : f32 to vector<80x128xf32>
    %68 = arith.maximumf %66, %67 : vector<80x128xf32>
    %c0_51 = arith.constant 0 : index
    %c0_52 = arith.constant 0 : index
    %c0_53 = arith.constant 0 : index
    %69 = vector.load %arg4[%c0_51, %c0_52, %c0_53] : memref<1x80x128xf32, #tpu.memory_space<vmem>>, vector<1x80x128xf32>
    %70 = vector.shape_cast %69 : vector<1x80x128xf32> to vector<80x128xf32>
    %71 = vector.shape_cast %68 : vector<80x128xf32> to vector<1x80x128xf32>
    tpu.vector_store %arg4[%c0_51, %c0_52, %c0_53], %71 {strides = array<i32>} : memref<1x80x128xf32, #tpu.memory_space<vmem>>, vector<1x80x128xf32>,
    return
  }
  func.func @transform_0(%arg0: i32) -> (i32, i32, i32) {
    %c0_i32 = arith.constant 0 : i32
    %c0_i32_0 = arith.constant 0 : i32
    %c0_i32_1 = arith.constant 0 : i32
    return %arg0, %c0_i32, %c0_i32_0 : i32, i32, i32
  }
  func.func @transform_1(%arg0: i32) -> (i32, i32, i32) {
    %c0_i32 = arith.constant 0 : i32
    %c0_i32_0 = arith.constant 0 : i32
    %c0_i32_1 = arith.constant 0 : i32
    %c0_i32_2 = arith.constant 0 : i32
    return %c0_i32, %c0_i32_0, %c0_i32_1 : i32, i32, i32
  }
  func.func @transform_2(%arg0: i32) -> (i32, i32) {
    %c0_i32 = arith.constant 0 : i32
    %c0_i32_0 = arith.constant 0 : i32
    %c0_i32_1 = arith.constant 0 : i32
    return %c0_i32, %c0_i32_0 : i32, i32
  }
  func.func @transform_3(%arg0: i32) -> (i32, i32, i32) {
    %c0_i32 = arith.constant 0 : i32
    %c0_i32_0 = arith.constant 0 : i32
    %c0_i32_1 = arith.constant 0 : i32
    return %arg0, %c0_i32, %c0_i32_0 : i32, i32, i32
  }
}

module attributes {stable_mosaic.version = 11 : i64} {
  func.func @_conv3x3_kernel(%arg0: i32, %arg1: memref<1x38x128xf32, #tpu.memory_space<vmem>>, %arg2: memref<9x128x256xbf16, #tpu.memory_space<vmem>>, %arg3: memref<1x256xf32, #tpu.memory_space<vmem>>, %arg4: memref<1x24x256xf32, #tpu.memory_space<vmem>>) attributes {dimension_semantics = [#tpu.dimension_semantics<parallel>], iteration_bounds = array<i64: 2>, scalar_prefetch = 0 : i64, scratch_operands = 0 : i64, tpu.core_type = #tpu.core_type<tc>, window_params = [{transform_indices = @transform_0, window_bounds = array<i64: 1, 38, 128>}, {pipeline_mode = #tpu.pipeline_mode<synchronous>, transform_indices = @transform_1, window_bounds = array<i64: 9, 128, 256>}, {pipeline_mode = #tpu.pipeline_mode<synchronous>, transform_indices = @transform_2, window_bounds = array<i64: 1, 256>}, {transform_indices = @transform_3, window_bounds = array<i64: 1, 24, 256>}]} {
    %cst = arith.constant 0.000000e+00 : f32
    %0 = vector.broadcast %cst : f32 to vector<24x256xf32>
    %c0 = arith.constant 0 : index
    %c0_0 = arith.constant 0 : index
    %c0_1 = arith.constant 0 : index
    %1 = vector.load %arg1[%c0, %c0_0, %c0_1] : memref<1x38x128xf32, #tpu.memory_space<vmem>>, vector<1x24x128xf32>
    %2 = vector.shape_cast %1 : vector<1x24x128xf32> to vector<24x128xf32>
    %3 = arith.truncf %2 : vector<24x128xf32> to vector<24x128xbf16>
    %c0_2 = arith.constant 0 : index
    %c0_3 = arith.constant 0 : index
    %c0_4 = arith.constant 0 : index
    %4 = vector.load %arg2[%c0_2, %c0_3, %c0_4] : memref<9x128x256xbf16, #tpu.memory_space<vmem>>, vector<1x128x256xbf16>
    %5 = vector.shape_cast %4 : vector<1x128x256xbf16> to vector<128x256xbf16>
    %cst_5 = arith.constant dense<0.000000e+00> : vector<24x256xf32>
    %6 = tpu.matmul %3, %5, %cst_5 {dimension_numbers = #tpu.dot_dimension_numbers<[1], [0], [0], [1], [0, 0, 1, 1], [], []>} : vector<24x128xbf16>, vector<128x256xbf16>, vector<24x256xf32> -> vector<24x256xf32>
    %7 = arith.addf %0, %6 : vector<24x256xf32>
    %c0_6 = arith.constant 0 : index
    %c1 = arith.constant 1 : index
    %c0_7 = arith.constant 0 : index
    %8 = vector.load %arg1[%c0_6, %c1, %c0_7] : memref<1x38x128xf32, #tpu.memory_space<vmem>>, vector<1x24x128xf32>
    %9 = vector.shape_cast %8 : vector<1x24x128xf32> to vector<24x128xf32>
    %10 = arith.truncf %9 : vector<24x128xf32> to vector<24x128xbf16>
    %c1_8 = arith.constant 1 : index
    %c0_9 = arith.constant 0 : index
    %c0_10 = arith.constant 0 : index
    %11 = vector.load %arg2[%c1_8, %c0_9, %c0_10] : memref<9x128x256xbf16, #tpu.memory_space<vmem>>, vector<1x128x256xbf16>
    %12 = vector.shape_cast %11 : vector<1x128x256xbf16> to vector<128x256xbf16>
    %cst_11 = arith.constant dense<0.000000e+00> : vector<24x256xf32>
    %13 = tpu.matmul %10, %12, %cst_11 {dimension_numbers = #tpu.dot_dimension_numbers<[1], [0], [0], [1], [0, 0, 1, 1], [], []>} : vector<24x128xbf16>, vector<128x256xbf16>, vector<24x256xf32> -> vector<24x256xf32>
    %14 = arith.addf %7, %13 : vector<24x256xf32>
    %c0_12 = arith.constant 0 : index
    %c2 = arith.constant 2 : index
    %c0_13 = arith.constant 0 : index
    %15 = vector.load %arg1[%c0_12, %c2, %c0_13] : memref<1x38x128xf32, #tpu.memory_space<vmem>>, vector<1x24x128xf32>
    %16 = vector.shape_cast %15 : vector<1x24x128xf32> to vector<24x128xf32>
    %17 = arith.truncf %16 : vector<24x128xf32> to vector<24x128xbf16>
    %c2_14 = arith.constant 2 : index
    %c0_15 = arith.constant 0 : index
    %c0_16 = arith.constant 0 : index
    %18 = vector.load %arg2[%c2_14, %c0_15, %c0_16] : memref<9x128x256xbf16, #tpu.memory_space<vmem>>, vector<1x128x256xbf16>
    %19 = vector.shape_cast %18 : vector<1x128x256xbf16> to vector<128x256xbf16>
    %cst_17 = arith.constant dense<0.000000e+00> : vector<24x256xf32>
    %20 = tpu.matmul %17, %19, %cst_17 {dimension_numbers = #tpu.dot_dimension_numbers<[1], [0], [0], [1], [0, 0, 1, 1], [], []>} : vector<24x128xbf16>, vector<128x256xbf16>, vector<24x256xf32> -> vector<24x256xf32>
    %21 = arith.addf %14, %20 : vector<24x256xf32>
    %c0_18 = arith.constant 0 : index
    %c6 = arith.constant 6 : index
    %c0_19 = arith.constant 0 : index
    %22 = vector.load %arg1[%c0_18, %c6, %c0_19] : memref<1x38x128xf32, #tpu.memory_space<vmem>>, vector<1x24x128xf32>
    %23 = vector.shape_cast %22 : vector<1x24x128xf32> to vector<24x128xf32>
    %24 = arith.truncf %23 : vector<24x128xf32> to vector<24x128xbf16>
    %c3 = arith.constant 3 : index
    %c0_20 = arith.constant 0 : index
    %c0_21 = arith.constant 0 : index
    %25 = vector.load %arg2[%c3, %c0_20, %c0_21] : memref<9x128x256xbf16, #tpu.memory_space<vmem>>, vector<1x128x256xbf16>
    %26 = vector.shape_cast %25 : vector<1x128x256xbf16> to vector<128x256xbf16>
    %cst_22 = arith.constant dense<0.000000e+00> : vector<24x256xf32>
    %27 = tpu.matmul %24, %26, %cst_22 {dimension_numbers = #tpu.dot_dimension_numbers<[1], [0], [0], [1], [0, 0, 1, 1], [], []>} : vector<24x128xbf16>, vector<128x256xbf16>, vector<24x256xf32> -> vector<24x256xf32>
    %28 = arith.addf %21, %27 : vector<24x256xf32>
    %c0_23 = arith.constant 0 : index
    %c7 = arith.constant 7 : index
    %c0_24 = arith.constant 0 : index
    %29 = vector.load %arg1[%c0_23, %c7, %c0_24] : memref<1x38x128xf32, #tpu.memory_space<vmem>>, vector<1x24x128xf32>
    %30 = vector.shape_cast %29 : vector<1x24x128xf32> to vector<24x128xf32>
    %31 = arith.truncf %30 : vector<24x128xf32> to vector<24x128xbf16>
    %c4 = arith.constant 4 : index
    %c0_25 = arith.constant 0 : index
    %c0_26 = arith.constant 0 : index
    %32 = vector.load %arg2[%c4, %c0_25, %c0_26] : memref<9x128x256xbf16, #tpu.memory_space<vmem>>, vector<1x128x256xbf16>
    %33 = vector.shape_cast %32 : vector<1x128x256xbf16> to vector<128x256xbf16>
    %cst_27 = arith.constant dense<0.000000e+00> : vector<24x256xf32>
    %34 = tpu.matmul %31, %33, %cst_27 {dimension_numbers = #tpu.dot_dimension_numbers<[1], [0], [0], [1], [0, 0, 1, 1], [], []>} : vector<24x128xbf16>, vector<128x256xbf16>, vector<24x256xf32> -> vector<24x256xf32>
    %35 = arith.addf %28, %34 : vector<24x256xf32>
    %c0_28 = arith.constant 0 : index
    %c8 = arith.constant 8 : index
    %c0_29 = arith.constant 0 : index
    %36 = vector.load %arg1[%c0_28, %c8, %c0_29] : memref<1x38x128xf32, #tpu.memory_space<vmem>>, vector<1x24x128xf32>
    %37 = vector.shape_cast %36 : vector<1x24x128xf32> to vector<24x128xf32>
    %38 = arith.truncf %37 : vector<24x128xf32> to vector<24x128xbf16>
    %c5 = arith.constant 5 : index
    %c0_30 = arith.constant 0 : index
    %c0_31 = arith.constant 0 : index
    %39 = vector.load %arg2[%c5, %c0_30, %c0_31] : memref<9x128x256xbf16, #tpu.memory_space<vmem>>, vector<1x128x256xbf16>
    %40 = vector.shape_cast %39 : vector<1x128x256xbf16> to vector<128x256xbf16>
    %cst_32 = arith.constant dense<0.000000e+00> : vector<24x256xf32>
    %41 = tpu.matmul %38, %40, %cst_32 {dimension_numbers = #tpu.dot_dimension_numbers<[1], [0], [0], [1], [0, 0, 1, 1], [], []>} : vector<24x128xbf16>, vector<128x256xbf16>, vector<24x256xf32> -> vector<24x256xf32>
    %42 = arith.addf %35, %41 : vector<24x256xf32>
    %c0_33 = arith.constant 0 : index
    %c12 = arith.constant 12 : index
    %c0_34 = arith.constant 0 : index
    %43 = vector.load %arg1[%c0_33, %c12, %c0_34] : memref<1x38x128xf32, #tpu.memory_space<vmem>>, vector<1x24x128xf32>
    %44 = vector.shape_cast %43 : vector<1x24x128xf32> to vector<24x128xf32>
    %45 = arith.truncf %44 : vector<24x128xf32> to vector<24x128xbf16>
    %c6_35 = arith.constant 6 : index
    %c0_36 = arith.constant 0 : index
    %c0_37 = arith.constant 0 : index
    %46 = vector.load %arg2[%c6_35, %c0_36, %c0_37] : memref<9x128x256xbf16, #tpu.memory_space<vmem>>, vector<1x128x256xbf16>
    %47 = vector.shape_cast %46 : vector<1x128x256xbf16> to vector<128x256xbf16>
    %cst_38 = arith.constant dense<0.000000e+00> : vector<24x256xf32>
    %48 = tpu.matmul %45, %47, %cst_38 {dimension_numbers = #tpu.dot_dimension_numbers<[1], [0], [0], [1], [0, 0, 1, 1], [], []>} : vector<24x128xbf16>, vector<128x256xbf16>, vector<24x256xf32> -> vector<24x256xf32>
    %49 = arith.addf %42, %48 : vector<24x256xf32>
    %c0_39 = arith.constant 0 : index
    %c13 = arith.constant 13 : index
    %c0_40 = arith.constant 0 : index
    %50 = vector.load %arg1[%c0_39, %c13, %c0_40] : memref<1x38x128xf32, #tpu.memory_space<vmem>>, vector<1x24x128xf32>
    %51 = vector.shape_cast %50 : vector<1x24x128xf32> to vector<24x128xf32>
    %52 = arith.truncf %51 : vector<24x128xf32> to vector<24x128xbf16>
    %c7_41 = arith.constant 7 : index
    %c0_42 = arith.constant 0 : index
    %c0_43 = arith.constant 0 : index
    %53 = vector.load %arg2[%c7_41, %c0_42, %c0_43] : memref<9x128x256xbf16, #tpu.memory_space<vmem>>, vector<1x128x256xbf16>
    %54 = vector.shape_cast %53 : vector<1x128x256xbf16> to vector<128x256xbf16>
    %cst_44 = arith.constant dense<0.000000e+00> : vector<24x256xf32>
    %55 = tpu.matmul %52, %54, %cst_44 {dimension_numbers = #tpu.dot_dimension_numbers<[1], [0], [0], [1], [0, 0, 1, 1], [], []>} : vector<24x128xbf16>, vector<128x256xbf16>, vector<24x256xf32> -> vector<24x256xf32>
    %56 = arith.addf %49, %55 : vector<24x256xf32>
    %c0_45 = arith.constant 0 : index
    %c14 = arith.constant 14 : index
    %c0_46 = arith.constant 0 : index
    %57 = vector.load %arg1[%c0_45, %c14, %c0_46] : memref<1x38x128xf32, #tpu.memory_space<vmem>>, vector<1x24x128xf32>
    %58 = vector.shape_cast %57 : vector<1x24x128xf32> to vector<24x128xf32>
    %59 = arith.truncf %58 : vector<24x128xf32> to vector<24x128xbf16>
    %c8_47 = arith.constant 8 : index
    %c0_48 = arith.constant 0 : index
    %c0_49 = arith.constant 0 : index
    %60 = vector.load %arg2[%c8_47, %c0_48, %c0_49] : memref<9x128x256xbf16, #tpu.memory_space<vmem>>, vector<1x128x256xbf16>
    %61 = vector.shape_cast %60 : vector<1x128x256xbf16> to vector<128x256xbf16>
    %cst_50 = arith.constant dense<0.000000e+00> : vector<24x256xf32>
    %62 = tpu.matmul %59, %61, %cst_50 {dimension_numbers = #tpu.dot_dimension_numbers<[1], [0], [0], [1], [0, 0, 1, 1], [], []>} : vector<24x128xbf16>, vector<128x256xbf16>, vector<24x256xf32> -> vector<24x256xf32>
    %63 = arith.addf %56, %62 : vector<24x256xf32>
    %c0_51 = arith.constant 0 : index
    %c0_52 = arith.constant 0 : index
    %64 = vector.load %arg3[%c0_51, %c0_52] : memref<1x256xf32, #tpu.memory_space<vmem>>, vector<1x256xf32>
    %65 = vector.broadcast %64 : vector<1x256xf32> to vector<24x256xf32>
    %66 = arith.addf %63, %65 : vector<24x256xf32>
    %cst_53 = arith.constant 0.000000e+00 : f32
    %67 = vector.broadcast %cst_53 : f32 to vector<24x256xf32>
    %68 = arith.maximumf %66, %67 : vector<24x256xf32>
    %c0_54 = arith.constant 0 : index
    %c0_55 = arith.constant 0 : index
    %c0_56 = arith.constant 0 : index
    %69 = vector.load %arg4[%c0_54, %c0_55, %c0_56] : memref<1x24x256xf32, #tpu.memory_space<vmem>>, vector<1x24x256xf32>
    %70 = vector.shape_cast %69 : vector<1x24x256xf32> to vector<24x256xf32>
    %71 = vector.shape_cast %68 : vector<24x256xf32> to vector<1x24x256xf32>
    tpu.vector_store %arg4[%c0_54, %c0_55, %c0_56], %71 {strides = array<i32>} : memref<1x24x256xf32, #tpu.memory_space<vmem>>, vector<1x24x256xf32>,
    return
  }
  func.func @transform_0(%arg0: i32) -> (i32, i32, i32) {
    %c0_i32 = arith.constant 0 : i32
    %c0_i32_0 = arith.constant 0 : i32
    %c0_i32_1 = arith.constant 0 : i32
    return %arg0, %c0_i32, %c0_i32_0 : i32, i32, i32
  }
  func.func @transform_1(%arg0: i32) -> (i32, i32, i32) {
    %c0_i32 = arith.constant 0 : i32
    %c0_i32_0 = arith.constant 0 : i32
    %c0_i32_1 = arith.constant 0 : i32
    %c0_i32_2 = arith.constant 0 : i32
    return %c0_i32, %c0_i32_0, %c0_i32_1 : i32, i32, i32
  }
  func.func @transform_2(%arg0: i32) -> (i32, i32) {
    %c0_i32 = arith.constant 0 : i32
    %c0_i32_0 = arith.constant 0 : i32
    %c0_i32_1 = arith.constant 0 : i32
    return %c0_i32, %c0_i32_0 : i32, i32
  }
  func.func @transform_3(%arg0: i32) -> (i32, i32, i32) {
    %c0_i32 = arith.constant 0 : i32
    %c0_i32_0 = arith.constant 0 : i32
    %c0_i32_1 = arith.constant 0 : i32
    return %arg0, %c0_i32, %c0_i32_0 : i32, i32, i32
  }
}

module attributes {stable_mosaic.version = 11 : i64} {
  func.func @_matmul_bias_act_kernel(%arg0: i32, %arg1: memref<32x256xbf16, #tpu.memory_space<vmem>>, %arg2: memref<256x320xbf16, #tpu.memory_space<vmem>>, %arg3: memref<1x320xf32, #tpu.memory_space<vmem>>, %arg4: memref<32x320xbf16, #tpu.memory_space<vmem>>) attributes {dimension_semantics = [#tpu.dimension_semantics<parallel>], iteration_bounds = array<i64: 1>, scalar_prefetch = 0 : i64, scratch_operands = 0 : i64, tpu.core_type = #tpu.core_type<tc>, window_params = [{transform_indices = @transform_0, window_bounds = array<i64: 32, 256>}, {pipeline_mode = #tpu.pipeline_mode<synchronous>, transform_indices = @transform_1, window_bounds = array<i64: 256, 320>}, {pipeline_mode = #tpu.pipeline_mode<synchronous>, transform_indices = @transform_2, window_bounds = array<i64: 1, 320>}, {transform_indices = @transform_3, window_bounds = array<i64: 32, 320>}]} {
    %c0 = arith.constant 0 : index
    %c0_0 = arith.constant 0 : index
    %0 = vector.load %arg1[%c0, %c0_0] : memref<32x256xbf16, #tpu.memory_space<vmem>>, vector<32x256xbf16>
    %c0_1 = arith.constant 0 : index
    %c0_2 = arith.constant 0 : index
    %1 = vector.load %arg2[%c0_1, %c0_2] : memref<256x320xbf16, #tpu.memory_space<vmem>>, vector<256x320xbf16>
    %cst = arith.constant dense<0.000000e+00> : vector<32x320xf32>
    %2 = tpu.matmul %0, %1, %cst {dimension_numbers = #tpu.dot_dimension_numbers<[1], [0], [0], [1], [0, 0, 1, 1], [], []>} : vector<32x256xbf16>, vector<256x320xbf16>, vector<32x320xf32> -> vector<32x320xf32>
    %c0_3 = arith.constant 0 : index
    %c0_4 = arith.constant 0 : index
    %3 = vector.load %arg3[%c0_3, %c0_4] : memref<1x320xf32, #tpu.memory_space<vmem>>, vector<1x320xf32>
    %4 = vector.broadcast %3 : vector<1x320xf32> to vector<32x320xf32>
    %5 = arith.addf %2, %4 : vector<32x320xf32>
    %6 = arith.truncf %5 : vector<32x320xf32> to vector<32x320xbf16>
    %c0_5 = arith.constant 0 : index
    %c0_6 = arith.constant 0 : index
    %7 = vector.load %arg4[%c0_5, %c0_6] : memref<32x320xbf16, #tpu.memory_space<vmem>>, vector<32x320xbf16>
    tpu.vector_store %arg4[%c0_5, %c0_6], %6 {strides = array<i32>} : memref<32x320xbf16, #tpu.memory_space<vmem>>, vector<32x320xbf16>,
    return
  }
  func.func @transform_0(%arg0: i32) -> (i32, i32) {
    %c0_i32 = arith.constant 0 : i32
    %c0_i32_0 = arith.constant 0 : i32
    return %arg0, %c0_i32 : i32, i32
  }
  func.func @transform_1(%arg0: i32) -> (i32, i32) {
    %c0_i32 = arith.constant 0 : i32
    %c0_i32_0 = arith.constant 0 : i32
    %c0_i32_1 = arith.constant 0 : i32
    return %c0_i32, %c0_i32_0 : i32, i32
  }
  func.func @transform_2(%arg0: i32) -> (i32, i32) {
    %c0_i32 = arith.constant 0 : i32
    %c0_i32_0 = arith.constant 0 : i32
    %c0_i32_1 = arith.constant 0 : i32
    return %c0_i32, %c0_i32_0 : i32, i32
  }
  func.func @transform_3(%arg0: i32) -> (i32, i32) {
    %c0_i32 = arith.constant 0 : i32
    %c0_i32_0 = arith.constant 0 : i32
    return %arg0, %c0_i32 : i32, i32
  }
}

module attributes {stable_mosaic.version = 11 : i64} {
  func.func @_self_attn_kernel(%arg0: i32, %arg1: memref<1x16x32xbf16, #tpu.memory_space<vmem>>, %arg2: memref<1x32x16xbf16, #tpu.memory_space<vmem>>, %arg3: memref<1x16x256xbf16, #tpu.memory_space<vmem>>, %arg4: memref<1x16x256xf32, #tpu.memory_space<vmem>>, %arg5: memref<1x16x256xf32, #tpu.memory_space<vmem>>) attributes {dimension_semantics = [#tpu.dimension_semantics<parallel>], iteration_bounds = array<i64: 2>, scalar_prefetch = 0 : i64, scratch_operands = 0 : i64, tpu.core_type = #tpu.core_type<tc>, window_params = [{transform_indices = @transform_0, window_bounds = array<i64: 1, 16, 32>}, {transform_indices = @transform_1, window_bounds = array<i64: 1, 32, 16>}, {transform_indices = @transform_2, window_bounds = array<i64: 1, 16, 256>}, {transform_indices = @transform_3, window_bounds = array<i64: 1, 16, 256>}, {transform_indices = @transform_4, window_bounds = array<i64: 1, 16, 256>}]} {
    %c0 = arith.constant 0 : index
    %c0_0 = arith.constant 0 : index
    %c0_1 = arith.constant 0 : index
    %0 = vector.load %arg1[%c0, %c0_0, %c0_1] : memref<1x16x32xbf16, #tpu.memory_space<vmem>>, vector<1x16x32xbf16>
    %1 = vector.shape_cast %0 : vector<1x16x32xbf16> to vector<16x32xbf16>
    %c0_2 = arith.constant 0 : index
    %c0_3 = arith.constant 0 : index
    %c0_4 = arith.constant 0 : index
    %2 = vector.load %arg2[%c0_2, %c0_3, %c0_4] : memref<1x32x16xbf16, #tpu.memory_space<vmem>>, vector<1x32x16xbf16>
    %3 = vector.shape_cast %2 : vector<1x32x16xbf16> to vector<32x16xbf16>
    %cst = arith.constant dense<0.000000e+00> : vector<16x16xf32>
    %4 = tpu.matmul %1, %3, %cst {dimension_numbers = #tpu.dot_dimension_numbers<[1], [0], [0], [1], [0, 0, 1, 1], [], []>} : vector<16x32xbf16>, vector<32x16xbf16>, vector<16x16xf32> -> vector<16x16xf32>
    %cst_5 = arith.constant dense<0xFF800000> : vector<16xf32>
    %5 = vector.multi_reduction <maximumf>, %4, %cst_5 [1] : vector<16x16xf32> to vector<16xf32>
    %6 = vector.shape_cast %5 : vector<16xf32> to vector<16x1xf32>
    %7 = vector.broadcast %6 : vector<16x1xf32> to vector<16x16xf32>
    %8 = arith.subf %4, %7 : vector<16x16xf32>
    %9 = math.exp %8 : vector<16x16xf32>
    %cst_6 = arith.constant dense<0.000000e+00> : vector<16xf32>
    %10 = vector.multi_reduction <add>, %9, %cst_6 [1] : vector<16x16xf32> to vector<16xf32>
    %11 = vector.shape_cast %10 : vector<16xf32> to vector<16x1xf32>
    %12 = vector.broadcast %11 : vector<16x1xf32> to vector<16x16xf32>
    %13 = arith.divf %9, %12 : vector<16x16xf32>
    %14 = arith.truncf %13 : vector<16x16xf32> to vector<16x16xbf16>
    %c0_7 = arith.constant 0 : index
    %c0_8 = arith.constant 0 : index
    %c0_9 = arith.constant 0 : index
    %15 = vector.load %arg3[%c0_7, %c0_8, %c0_9] : memref<1x16x256xbf16, #tpu.memory_space<vmem>>, vector<1x16x256xbf16>
    %16 = vector.shape_cast %15 : vector<1x16x256xbf16> to vector<16x256xbf16>
    %cst_10 = arith.constant dense<0.000000e+00> : vector<16x256xf32>
    %17 = tpu.matmul %14, %16, %cst_10 {dimension_numbers = #tpu.dot_dimension_numbers<[1], [0], [0], [1], [0, 0, 1, 1], [], []>} : vector<16x16xbf16>, vector<16x256xbf16>, vector<16x256xf32> -> vector<16x256xf32>
    %c0_11 = arith.constant 0 : index
    %c0_12 = arith.constant 0 : index
    %c0_13 = arith.constant 0 : index
    %18 = vector.load %arg4[%c0_11, %c0_12, %c0_13] : memref<1x16x256xf32, #tpu.memory_space<vmem>>, vector<1x16x256xf32>
    %19 = vector.shape_cast %18 : vector<1x16x256xf32> to vector<16x256xf32>
    %20 = arith.addf %17, %19 : vector<16x256xf32>
    %c0_14 = arith.constant 0 : index
    %c0_15 = arith.constant 0 : index
    %c0_16 = arith.constant 0 : index
    %21 = vector.load %arg5[%c0_14, %c0_15, %c0_16] : memref<1x16x256xf32, #tpu.memory_space<vmem>>, vector<1x16x256xf32>
    %22 = vector.shape_cast %21 : vector<1x16x256xf32> to vector<16x256xf32>
    %23 = vector.shape_cast %20 : vector<16x256xf32> to vector<1x16x256xf32>
    tpu.vector_store %arg5[%c0_14, %c0_15, %c0_16], %23 {strides = array<i32>} : memref<1x16x256xf32, #tpu.memory_space<vmem>>, vector<1x16x256xf32>,
    return
  }
  func.func @transform_0(%arg0: i32) -> (i32, i32, i32) {
    %c0_i32 = arith.constant 0 : i32
    %c0_i32_0 = arith.constant 0 : i32
    %c0_i32_1 = arith.constant 0 : i32
    return %arg0, %c0_i32, %c0_i32_0 : i32, i32, i32
  }
  func.func @transform_1(%arg0: i32) -> (i32, i32, i32) {
    %c0_i32 = arith.constant 0 : i32
    %c0_i32_0 = arith.constant 0 : i32
    %c0_i32_1 = arith.constant 0 : i32
    return %arg0, %c0_i32, %c0_i32_0 : i32, i32, i32
  }
  func.func @transform_2(%arg0: i32) -> (i32, i32, i32) {
    %c0_i32 = arith.constant 0 : i32
    %c0_i32_0 = arith.constant 0 : i32
    %c0_i32_1 = arith.constant 0 : i32
    return %arg0, %c0_i32, %c0_i32_0 : i32, i32, i32
  }
  func.func @transform_3(%arg0: i32) -> (i32, i32, i32) {
    %c0_i32 = arith.constant 0 : i32
    %c0_i32_0 = arith.constant 0 : i32
    %c0_i32_1 = arith.constant 0 : i32
    return %arg0, %c0_i32, %c0_i32_0 : i32, i32, i32
  }
  func.func @transform_4(%arg0: i32) -> (i32, i32, i32) {
    %c0_i32 = arith.constant 0 : i32
    %c0_i32_0 = arith.constant 0 : i32
    %c0_i32_1 = arith.constant 0 : i32
    return %arg0, %c0_i32, %c0_i32_0 : i32, i32, i32
  }
}

module attributes {stable_mosaic.version = 11 : i64} {
  func.func @_head_kernel(%arg0: i32, %arg1: memref<2x16x256xf32, #tpu.memory_space<vmem>>, %arg2: memref<256x128xbf16, #tpu.memory_space<vmem>>, %arg3: memref<1x128xf32, #tpu.memory_space<vmem>>, %arg4: memref<128x64xbf16, #tpu.memory_space<vmem>>, %arg5: memref<1x64xf32, #tpu.memory_space<vmem>>, %arg6: memref<64x10xbf16, #tpu.memory_space<vmem>>, %arg7: memref<1x10xf32, #tpu.memory_space<vmem>>, %arg8: memref<2x10xf32, #tpu.memory_space<vmem>>) attributes {dimension_semantics = [#tpu.dimension_semantics<arbitrary>], iteration_bounds = array<i64: 1>, scalar_prefetch = 0 : i64, scratch_operands = 0 : i64, tpu.core_type = #tpu.core_type<tc>, window_params = [{pipeline_mode = #tpu.pipeline_mode<synchronous>, transform_indices = @transform_0, window_bounds = array<i64: 2, 16, 256>}, {pipeline_mode = #tpu.pipeline_mode<synchronous>, transform_indices = @transform_1, window_bounds = array<i64: 256, 128>}, {pipeline_mode = #tpu.pipeline_mode<synchronous>, transform_indices = @transform_2, window_bounds = array<i64: 1, 128>}, {pipeline_mode = #tpu.pipeline_mode<synchronous>, transform_indices = @transform_3, window_bounds = array<i64: 128, 64>}, {pipeline_mode = #tpu.pipeline_mode<synchronous>, transform_indices = @transform_4, window_bounds = array<i64: 1, 64>}, {pipeline_mode = #tpu.pipeline_mode<synchronous>, transform_indices = @transform_5, window_bounds = array<i64: 64, 10>}, {pipeline_mode = #tpu.pipeline_mode<synchronous>, transform_indices = @transform_6, window_bounds = array<i64: 1, 10>}, {pipeline_mode = #tpu.pipeline_mode<synchronous>, transform_indices = @transform_7, window_bounds = array<i64: 2, 10>}]} {
    %c0 = arith.constant 0 : index
    %c0_0 = arith.constant 0 : index
    %c0_1 = arith.constant 0 : index
    %0 = vector.load %arg1[%c0, %c0_0, %c0_1] : memref<2x16x256xf32, #tpu.memory_space<vmem>>, vector<2x16x256xf32>
    %cst = arith.constant dense<0.000000e+00> : vector<2x256xf32>
    %1 = vector.multi_reduction <add>, %0, %cst [1] : vector<2x16x256xf32> to vector<2x256xf32>
    %cst_2 = arith.constant 1.600000e+01 : f32
    %2 = vector.broadcast %cst_2 : f32 to vector<2x256xf32>
    %3 = arith.divf %1, %2 : vector<2x256xf32>
    %4 = arith.truncf %3 : vector<2x256xf32> to vector<2x256xbf16>
    %c0_3 = arith.constant 0 : index
    %c0_4 = arith.constant 0 : index
    %5 = vector.load %arg2[%c0_3, %c0_4] : memref<256x128xbf16, #tpu.memory_space<vmem>>, vector<256x128xbf16>
    %cst_5 = arith.constant dense<0.000000e+00> : vector<2x128xf32>
    %6 = tpu.matmul %4, %5, %cst_5 {dimension_numbers = #tpu.dot_dimension_numbers<[1], [0], [0], [1], [0, 0, 1, 1], [], []>} : vector<2x256xbf16>, vector<256x128xbf16>, vector<2x128xf32> -> vector<2x128xf32>
    %c0_6 = arith.constant 0 : index
    %c0_7 = arith.constant 0 : index
    %7 = vector.load %arg3[%c0_6, %c0_7] : memref<1x128xf32, #tpu.memory_space<vmem>>, vector<1x128xf32>
    %8 = vector.broadcast %7 : vector<1x128xf32> to vector<2x128xf32>
    %9 = arith.addf %6, %8 : vector<2x128xf32>
    %cst_8 = arith.constant 0.000000e+00 : f32
    %10 = vector.broadcast %cst_8 : f32 to vector<2x128xf32>
    %11 = arith.maximumf %9, %10 : vector<2x128xf32>
    %12 = arith.truncf %11 : vector<2x128xf32> to vector<2x128xbf16>
    %c0_9 = arith.constant 0 : index
    %c0_10 = arith.constant 0 : index
    %13 = vector.load %arg4[%c0_9, %c0_10] : memref<128x64xbf16, #tpu.memory_space<vmem>>, vector<128x64xbf16>
    %cst_11 = arith.constant dense<0.000000e+00> : vector<2x64xf32>
    %14 = tpu.matmul %12, %13, %cst_11 {dimension_numbers = #tpu.dot_dimension_numbers<[1], [0], [0], [1], [0, 0, 1, 1], [], []>} : vector<2x128xbf16>, vector<128x64xbf16>, vector<2x64xf32> -> vector<2x64xf32>
    %c0_12 = arith.constant 0 : index
    %c0_13 = arith.constant 0 : index
    %15 = vector.load %arg5[%c0_12, %c0_13] : memref<1x64xf32, #tpu.memory_space<vmem>>, vector<1x64xf32>
    %16 = vector.broadcast %15 : vector<1x64xf32> to vector<2x64xf32>
    %17 = arith.addf %14, %16 : vector<2x64xf32>
    %cst_14 = arith.constant 0.000000e+00 : f32
    %18 = vector.broadcast %cst_14 : f32 to vector<2x64xf32>
    %19 = arith.maximumf %17, %18 : vector<2x64xf32>
    %20 = arith.truncf %19 : vector<2x64xf32> to vector<2x64xbf16>
    %c0_15 = arith.constant 0 : index
    %c0_16 = arith.constant 0 : index
    %21 = vector.load %arg6[%c0_15, %c0_16] : memref<64x10xbf16, #tpu.memory_space<vmem>>, vector<64x10xbf16>
    %cst_17 = arith.constant dense<0.000000e+00> : vector<2x10xf32>
    %22 = tpu.matmul %20, %21, %cst_17 {dimension_numbers = #tpu.dot_dimension_numbers<[1], [0], [0], [1], [0, 0, 1, 1], [], []>} : vector<2x64xbf16>, vector<64x10xbf16>, vector<2x10xf32> -> vector<2x10xf32>
    %c0_18 = arith.constant 0 : index
    %c0_19 = arith.constant 0 : index
    %23 = vector.load %arg7[%c0_18, %c0_19] : memref<1x10xf32, #tpu.memory_space<vmem>>, vector<1x10xf32>
    %24 = vector.broadcast %23 : vector<1x10xf32> to vector<2x10xf32>
    %25 = arith.addf %22, %24 : vector<2x10xf32>
    %c0_20 = arith.constant 0 : index
    %c0_21 = arith.constant 0 : index
    %26 = vector.load %arg8[%c0_20, %c0_21] : memref<2x10xf32, #tpu.memory_space<vmem>>, vector<2x10xf32>
    tpu.vector_store %arg8[%c0_20, %c0_21], %25 {strides = array<i32>} : memref<2x10xf32, #tpu.memory_space<vmem>>, vector<2x10xf32>,
    return
  }
  func.func @transform_0(%arg0: i32) -> (i32, i32, i32) {
    %c0_i32 = arith.constant 0 : i32
    %c0_i32_0 = arith.constant 0 : i32
    %c0_i32_1 = arith.constant 0 : i32
    %c0_i32_2 = arith.constant 0 : i32
    return %c0_i32, %c0_i32_0, %c0_i32_1 : i32, i32, i32
  }
  func.func @transform_1(%arg0: i32) -> (i32, i32) {
    %c0_i32 = arith.constant 0 : i32
    %c0_i32_0 = arith.constant 0 : i32
    %c0_i32_1 = arith.constant 0 : i32
    return %c0_i32, %c0_i32_0 : i32, i32
  }
  func.func @transform_2(%arg0: i32) -> (i32, i32) {
    %c0_i32 = arith.constant 0 : i32
    %c0_i32_0 = arith.constant 0 : i32
    %c0_i32_1 = arith.constant 0 : i32
    return %c0_i32, %c0_i32_0 : i32, i32
  }
  func.func @transform_3(%arg0: i32) -> (i32, i32) {
    %c0_i32 = arith.constant 0 : i32
    %c0_i32_0 = arith.constant 0 : i32
    %c0_i32_1 = arith.constant 0 : i32
    return %c0_i32, %c0_i32_0 : i32, i32
  }
  func.func @transform_4(%arg0: i32) -> (i32, i32) {
    %c0_i32 = arith.constant 0 : i32
    %c0_i32_0 = arith.constant 0 : i32
    %c0_i32_1 = arith.constant 0 : i32
    return %c0_i32, %c0_i32_0 : i32, i32
  }
  func.func @transform_5(%arg0: i32) -> (i32, i32) {
    %c0_i32 = arith.constant 0 : i32
    %c0_i32_0 = arith.constant 0 : i32
    %c0_i32_1 = arith.constant 0 : i32
    return %c0_i32, %c0_i32_0 : i32, i32
  }
  func.func @transform_6(%arg0: i32) -> (i32, i32) {
    %c0_i32 = arith.constant 0 : i32
    %c0_i32_0 = arith.constant 0 : i32
    %c0_i32_1 = arith.constant 0 : i32
    return %c0_i32, %c0_i32_0 : i32, i32
  }
  func.func @transform_7(%arg0: i32) -> (i32, i32) {
    %c0_i32 = arith.constant 0 : i32
    %c0_i32_0 = arith.constant 0 : i32
    %c0_i32_1 = arith.constant 0 : i32
    return %c0_i32, %c0_i32_0 : i32, i32
  }
}

</mosaic_0001>

<bundles_post_ra>
// kernel: net_forward.7
= control target key start
LH: loop header
LB: loop body
LE: loop exit
PB: predicated region body
PF: predicated region fallthrough
CT: control target
= control target key end

     0   :  { %s1553_s12 = smov 0   ;;  %s1870_s0 = inlined_call_operand.vmem [shape: f32[2,102,64], index: 0, kind: input, shape index: {}]   ;;  %s1871_s1 = inlined_call_operand.vmem [shape: bf16[9,64,128], index: 1, kind: input, shape index: {}]   ;;  %s1872_s2 = inlined_call_operand.vmem [shape: f32[1,128], index: 2, kind: input, shape index: {}]   ;;  %s1873_s3 = inlined_call_operand.vmem [shape: f32[2,80,128], index: 3, kind: output, shape index: {}]  }
   0x1 LB: > { %s1204_s13 = sadd.s32 4294967295, %s1531_s12   ;;  %p1208_p0 = scmp.ge.s32.totalorder %s1531_s12, 1  ;;  %s1531_s12 = sphi %s1553_s12, %s13_s12  }
   0x2   : > { %p137_p1 = scmp.lt.s32.totalorder %s1531_s12, 3 }
   0x4   : > { %p138_p2 = pnand %p1208_p0, %p137_p1 }
   0x5   : > { %p161_p3 = scmp.lt.s32.totalorder (!%p138_p2), %s1204_s13, 1 }
   0x6   : > { %141 = sbr.rel (%p138_p2) target bundleno = 354 (0x162), region = 32 }
   0xb   : > { %v1473_v0 = vld [vmem:[%s1871_s1 + $0x38] sm:$0xff]  ;;  %v1472_v1 = vld [vmem:[%s1871_s1 + $0x30] sm:$0xff]  ;;  %s1875_s13 = smov (!%p161_p3, %s1204_s13), 1  ;;  %v1471_v2 = vld [vmem:[%s1871_s1 + $0x28] sm:$0xff]  ;;  %vm243_vm0 = vcmask 523264  }
   0xc   : > { %1502 = vmatpush.bf16.msra.mxu1 %v1473_v0  ;;  %1503 = vmatpush.bf16.msra.mxu2 %v1473_v0  ;;  %s1514_s18 = smul.u32 104, %s1875_s13  ;;  %v1470_v3 = vld [vmem:[%s1871_s1 + $0x20] sm:$0xff]  ;;  %v1477_v8 = vld [vmem:[%s1871_s1 + $0x58] sm:$0xff]  ;;  %v1468_v18 = vld [vmem:[%s1871_s1 + $0x10] sm:$0xff] }
   0xd   : > { %1504 = vmatpush.bf16.msra.mxu3 %v1473_v0  ;;  %263 = vmatpush.bf16.msra.mxu0 %v1473_v0  ;;  %v1469_v9 = vld [vmem:[%s1871_s1 + $0x18] sm:$0xff]  ;;  %v1476_v19 = vld [vmem:[%s1871_s1 + $0x50] sm:$0xff]  ;;  %v1467_v24 = vld [vmem:[%s1871_s1 + $0x8] sm:$0xff] }
   0xe   : > { %s1576_s23 = scalar_lea.vmem %s1870_s0, %s1514_s18  ;;  %v1481_v16 = vld [vmem:[%s1871_s1 + $0x78] sm:$0xff]  ;;  %v1480_v22 = vld [vmem:[%s1871_s1 + $0x70] sm:$0xff]  ;;  %v1475_v25 = vld [vmem:[%s1871_s1 + $0x48] sm:$0xff]  ;;  %s1515_s18 = smul.u32 80, %s1875_s13 }
   0xf   : > { %v197_v4 = vld [vmem:[%s1576_s23 + $0x11] sm:$0xff]  ;;  %v198_v5 = vld [vmem:[%s1576_s23 + $0x19] sm:$0xff]  ;;  %v199_v6 = vld [vmem:[%s1576_s23 + $0x21] sm:$0xff] }
  0x10   : > { %1505 = vmatpush.bf16.msra.mxu1 %v1472_v1  ;;  %1506 = vmatpush.bf16.msra.mxu2 %v1472_v1  ;;  %v200_v7 = vld [vmem:[%s1576_s23 + $0x29] sm:$0xff]  ;;  %v203_v10 = vld [vmem:[%s1576_s23 + $0x41] sm:$0xff]  ;;  %v206_v11 = vpack.c.bf16 %v198_v5, %v197_v4  ;;  %v1485_v17 = vld [vmem:[%s1871_s1 + $0x98] sm:$0xff]  ;;  %s1838_s21 = scalar_lea.vmem %s1873_s3, %s1515_s18 }
  0x11   : > { %1507 = vmatpush.bf16.msra.mxu3 %v1472_v1  ;;  %264 = vmatpush.bf16.msra.mxu0 %v1472_v1  ;;  %v207_v12 = vpack.c.bf16 %v200_v7, %v199_v6  ;;  %v204_v13 = vld [vmem:[%s1576_s23 + $0x49] sm:$0xff]  ;;  %v195_v14 = vld [vmem:[%s1576_s23 + $0x1] sm:$0xff]  ;;  %v1493_v30 = vld [vmem:[%s1871_s1 + $0xd8] sm:$0xff] }
  0x12   : > { %v196_v15 = vld [vmem:[%s1576_s23 + $0x9] sm:$0xff]  ;;  %v209_v20 = vpack.c.bf16 %v204_v13, %v203_v10  ;;  %v1466_v28 = vld [vmem:[%s1871_s1] sm:$0xff]  ;;  %v1489_v31 = vld [vmem:[%s1871_s1 + $0xb8] sm:$0xff] }
  0x13   : > { %v205_v21 = vpack.c.bf16 %v196_v15, %v195_v14  ;;  %v1484_v23 = vld [vmem:[%s1871_s1 + $0x90] sm:$0xff]  ;;  %v1479_v26 = vld [vmem:[%s1871_s1 + $0x68] sm:$0xff]  ;;  %v1474_v29 = vld [vmem:[%s1871_s1 + $0x40] sm:$0xff] }
  0x14   : > { %1508 = vmatpush.bf16.msra.mxu1 %v1471_v2  ;;  %1509 = vmatpush.bf16.msra.mxu2 %v1471_v2  ;;  %v1483_v27 = vld [vmem:[%s1871_s1 + $0x88] sm:$0xff]  ;;  %v201_v32 = vld [vmem:[%s1576_s23 + $0x31] sm:$0xff]  ;;  %v1478_v33 = vld [vmem:[%s1871_s1 + $0x60] sm:$0xff] }
  0x15   : > { %1510 = vmatpush.bf16.msra.mxu3 %v1471_v2  ;;  %265 = vmatpush.bf16.msra.mxu0 %v1471_v2  ;;  %v1482_v34 = vld [vmem:[%s1871_s1 + $0x80] sm:$0xff]  ;;  %v173_v37 = vld [vmem:[%s1576_s23 + $0x8] sm:$0xff]  ;;  %v1497_v38 = vld [vmem:[%s1871_s1 + $0xf8] sm:$0xff] }
  0x16   : > { %v202_v35 = vld [vmem:[%s1576_s23 + $0x39] sm:$0xff]  ;;  %v473_v40 = vld [vmem:[%s1576_s23 + $0xa] sm:$0xff]  ;;  %v366_v54 = vld [vmem:[%s1576_s23 + $0x2] sm:$0xff] }
  0x17   : > { %v172_v36 = vld [vmem:[%s1576_s23] sm:$0xff]  ;;  %v1501_v39 = vld [vmem:[%s1871_s1 + $0x118] sm:$0xff]  ;;  %v208_v41 = vpack.c.bf16 %v202_v35, %v201_v32  ;;  %v580_v44 = vld [vmem:[%s1576_s23 + $0xb] sm:$0xff]  ;;  %v376_v57 = vpack.c.bf16 %v473_v40, %v366_v54 }
  0x18   : > { %1511 = vmatpush.bf16.msra.mxu1 %v1470_v3  ;;  %1512 = vmatpush.bf16.msra.mxu2 %v1470_v3  ;;  %v182_v42 = vpack.c.bf16 %v173_v37, %v172_v36  ;;  %v474_v43 = vld [vmem:[%s1576_s23 + $0x12] sm:$0xff]  ;;  %v475_v55 = vld [vmem:[%s1576_s23 + $0x1a] sm:$0xff]  ;;  %v476_v58 = vld [vmem:[%s1576_s23 + $0x22] sm:$0xff] }
  0x19   : > { %1513 = vmatpush.bf16.msra.mxu3 %v1470_v3  ;;  %266 = vmatpush.bf16.msra.mxu0 %v1470_v3  ;;  %v581_v45 = vld [vmem:[%s1576_s23 + $0x13] sm:$0xff]  ;;  %v483_v46 = vpack.c.bf16 %v474_v43, %v473_v40  ;;  %v582_v59 = vld [vmem:[%s1576_s23 + $0x1b] sm:$0xff]  ;;  %v583_v60 = vld [vmem:[%s1576_s23 + $0x23] sm:$0xff]  ;;  %v484_v61 = vpack.c.bf16 %v476_v58, %v475_v55  ;;  %v377_v6 = vpack.c.bf16 %v475_v55, %v474_v43 }
  0x1a   : > { %v590_v47 = vpack.c.bf16 %v581_v45, %v580_v44  ;;  %v1492_v48 = vld [vmem:[%s1871_s1 + $0xd0] sm:$0xff]  ;;  %v175_v53 = vld [vmem:[%s1576_s23 + $0x18] sm:$0xff]  ;;  %v591_v62 = vpack.c.bf16 %v583_v60, %v582_v59  ;;  %v1491_v63 = vld [vmem:[%s1871_s1 + $0xc8] sm:$0xff] }
  0x1b   : > { %1236 = vmatmul.msk.bf16.vlgmr.msra.gmra.mxu1 %vm243_vm0, %v206_v11  ;;  %1237 = vmatmul.msk.bf16.vlgmr.msra.gmra.mxu2 %vm243_vm0, %v207_v12  ;;  %v1496_v49 = vld [vmem:[%s1871_s1 + $0xf0] sm:$0xff]  ;;  %v1495_v0 = vld [vmem:[%s1871_s1 + $0xe8] sm:$0xff]  ;;  %v176_v2 = vld [vmem:[%s1576_s23 + $0x20] sm:$0xff] }
  0x1c   : > { %433 = vmatpush.bf16.msrb.mxu2 %v1477_v8  ;;  %336 = vmatpush.bf16.msrb.mxu1 %v1469_v9  ;;  %v1488_v50 = vld [vmem:[%s1871_s1 + $0xb0] sm:$0xff]  ;;  %v1487_v1 = vld [vmem:[%s1871_s1 + $0xa8] sm:$0xff]  ;;  %v1490_v13 = vld [vmem:[%s1871_s1 + $0xc0] sm:$0xff] }
  0x1d   : > { %540 = vmatpush.bf16.msrb.mxu3 %v1481_v16  ;;  %647 = vmatpush.bf16.msrb.mxu0 %v1485_v17  ;;  %v1500_v51 = vld [vmem:[%s1871_s1 + $0x110] sm:$0xff]  ;;  %v177_v3 = vld [vmem:[%s1576_s23 + $0x28] sm:$0xff]  ;;  %v1486_v14 = vld [vmem:[%s1871_s1 + $0xa0] sm:$0xff] }
  0x1e   : > { %1239 = vmatmul.msk.bf16.vlgmr.msra.gmra.mxu3 %vm243_vm0, %v209_v20  ;;  %1235 = vmatmul.msk.bf16.vlgmr.msra.gmra.mxu0 %vm243_vm0, %v205_v21  ;;  %v174_v52 = vld [vmem:[%s1576_s23 + $0x10] sm:$0xff]  ;;  %v184_v5 = vpack.c.bf16 %v177_v3, %v176_v2  ;;  %v1499_v12 = vld [vmem:[%s1871_s1 + $0x108] sm:$0xff]  ;;  %v1494_v15 = vld [vmem:[%s1871_s1 + $0xe0] sm:$0xff] }
  0x1f   : > { %v183_v56 = vpack.c.bf16 %v175_v53, %v174_v52  ;;  %v477_v4 = vld [vmem:[%s1576_s23 + $0x2a] sm:$0xff]  ;;  %v478_v7 = vld [vmem:[%s1576_s23 + $0x32] sm:$0xff]  ;;  %v480_v21 = vld [vmem:[%s1576_s23 + $0x42] sm:$0xff] }
  0x20   : > { %337 = vmatpush.bf16.msrb.mxu1 %v1468_v18  ;;  %434 = vmatpush.bf16.msrb.mxu2 %v1476_v19  ;;  %v584_v8 = vld [vmem:[%s1576_s23 + $0x2b] sm:$0xff]  ;;  %v585_v9 = vld [vmem:[%s1576_s23 + $0x33] sm:$0xff]  ;;  %v485_v10 = vpack.c.bf16 %v478_v7, %v477_v4  ;;  %v378_v20 = vpack.c.bf16 %v477_v4, %v476_v58  ;;  %v1009_v44 = vld [vmem:[%s1576_s23 + $0x1e] sm:$0xff] }
  0x21   : > { %541 = vmatpush.bf16.msrb.mxu3 %v1480_v22  ;;  %648 = vmatpush.bf16.msrb.mxu0 %v1484_v23  ;;  %v592_v11 = vpack.c.bf16 %v585_v9, %v584_v8  ;;  %v178_v16 = vld [vmem:[%s1576_s23 + $0x30] sm:$0xff]  ;;  %v179_v17 = vld [vmem:[%s1576_s23 + $0x38] sm:$0xff]  ;;  %v587_v23 = vld [vmem:[%s1576_s23 + $0x43] sm:$0xff] }
  0x22   : > { %v479_v18 = vld [vmem:[%s1576_s23 + $0x3a] sm:$0xff]  ;;  %v185_v19 = vpack.c.bf16 %v179_v17, %v178_v16  ;;  %v482_v32 = vld [vmem:[%s1576_s23 + $0x52] sm:$0xff]  ;;  %v1010_v53 = vld [vmem:[%s1576_s23 + $0x26] sm:$0xff] }
  0x23   : > { %v586_v22 = vld [vmem:[%s1576_s23 + $0x3b] sm:$0xff]  ;;  %v687_v37 = vld [vmem:[%s1576_s23 + $0xc] sm:$0xff] }
  0x24   : > { %338 = vmatpush.bf16.msrb.mxu1 %v1467_v24  ;;  %435 = vmatpush.bf16.msrb.mxu2 %v1475_v25  ;;  %v486_v24 = vpack.c.bf16 %v480_v21, %v479_v18  ;;  %v593_v25 = vpack.c.bf16 %v587_v23, %v586_v22  ;;  %v1008_v43 = vld [vmem:[%s1576_s23 + $0x16] sm:$0xff]  ;;  %v904_v52 = vld [vmem:[%s1576_s23 + $0x2d] sm:$0xff] }
  0x25   : > { %542 = vmatpush.bf16.msrb.mxu3 %v1479_v26  ;;  %649 = vmatpush.bf16.msrb.mxu0 %v1483_v27  ;;  %v1498_v26 = vld [vmem:[%s1871_s1 + $0x100] sm:$0xff]  ;;  %v1011_v54 = vld [vmem:[%s1576_s23 + $0x2e] sm:$0xff] }
  0x26   : > { %v180_v27 = vld [vmem:[%s1576_s23 + $0x40] sm:$0xff]  ;;  %v692_v58 = vld [vmem:[%s1576_s23 + $0x34] sm:$0xff] }
  0x27   : > { %v905_v59 = vld [vmem:[%s1576_s23 + $0x35] sm:$0xff]  ;;  %v1014_v16 = vld [vmem:[%s1576_s23 + $0x46] sm:$0xff] }
  0x28   : > { %339 = vmatpush.bf16.msrb.mxu1 %v1466_v28  ;;  %436 = vmatpush.bf16.msrb.mxu2 %v1474_v29  ;;  %v181_v28 = vld [vmem:[%s1576_s23 + $0x48] sm:$0xff]  ;;  %v693_v9 = vld [vmem:[%s1576_s23 + $0x3c] sm:$0xff] }
  0x29   : > { %543 = vmatpush.bf16.msrb.mxu3 %v1478_v33  ;;  %650 = vmatpush.bf16.msrb.mxu0 %v1482_v34  ;;  %v481_v29 = vld [vmem:[%s1576_s23 + $0x4a] sm:$0xff]  ;;  %v589_v34 = vld [vmem:[%s1576_s23 + $0x53] sm:$0xff] }
  0x2a   : > { %v588_v33 = vld [vmem:[%s1576_s23 + $0x4b] sm:$0xff]  ;;  %v487_v35 = vpack.c.bf16 %v482_v32, %v481_v29  ;;  %v380_v40 = vpack.c.bf16 %v481_v29, %v480_v21  ;;  %v909_v32 = vld [vmem:[%s1576_s23 + $0x55] sm:$0xff] }
  0x2b   : > { %1238 = vmatmul.msk.bf16.gmra.mxu2 %vm243_vm0, %v208_v41  ;;  %1256 = vmatmul.msk.bf16.vlgmr.msrb.gmra.mxu1 %vm243_vm0, %v182_v42  ;;  %v594_v36 = vpack.c.bf16 %v589_v34, %v588_v33  ;;  %v902_v42 = vld [vmem:[%s1576_s23 + $0x1d] sm:$0xff]  ;;  %v1015_v17 = vld [vmem:[%s1576_s23 + $0x4e] sm:$0xff] }
  0x2c   : > { %861 = vmatpush.bf16.msra.mxu2 %v1493_v30  ;;  %754 = vmatpush.bf16.msra.mxu1 %v1489_v31  ;;  %v186_v30 = vpack.c.bf16 %v181_v28, %v180_v27  ;;  %v379_v31 = vpack.c.bf16 %v479_v18, %v478_v7  ;;  %v1021_v22 = vpack.c.bf16 %v1015_v17, %v1014_v16  ;;  %v695_v29 = vld [vmem:[%s1576_s23 + $0x4c] sm:$0xff] }
  0x2d   : > { %968 = vmatpush.bf16.msra.mxu3 %v1497_v38  ;;  %1075 = vmatpush.bf16.msra.mxu0 %v1501_v39  ;;  %v688_v38 = vld [vmem:[%s1576_s23 + $0x14] sm:$0xff] }
  0x2e   : > { %1314 = vmatmul.msk.bf16.vlgmr.msrb.gmra.mxu3 %vm243_vm0, %v483_v46  ;;  %1343 = vmatmul.msk.bf16.vlgmr.msrb.gmra.mxu0 %vm243_vm0, %v590_v47  ;;  %v901_v39 = vld [vmem:[%s1576_s23 + $0x15] sm:$0xff]  ;;  %v697_v41 = vpack.c.bf16 %v688_v38, %v687_v37  ;;  %v1018_v46 = vpack.c.bf16 %v1009_v44, %v1008_v43  ;;  %v1017_v37 = vld [vmem:[%s1576_s23 + $0x5e] sm:$0xff] }
  0x2f   : > { %v911_v45 = vpack.c.bf16 %v902_v42, %v901_v39  ;;  %v689_v47 = vld [vmem:[%s1576_s23 + $0x1c] sm:$0xff] }
  0x30   : > { %862 = vmatpush.bf16.msra.mxu2 %v1492_v48  ;;  %755 = vmatpush.bf16.msra.mxu1 %v1488_v50  ;;  %v690_v48 = vld [vmem:[%s1576_s23 + $0x24] sm:$0xff] }
  0x31   : > { %969 = vmatpush.bf16.msra.mxu3 %v1496_v49  ;;  %1076 = vmatpush.bf16.msra.mxu0 %v1500_v51  ;;  %v903_v49 = vld [vmem:[%s1576_s23 + $0x25] sm:$0xff]  ;;  %v698_v50 = vpack.c.bf16 %v690_v48, %v689_v47  ;;  %v804_v51 = vpack.c.bf16 %v689_v47, %v688_v38 }
  0x32   : > { %v912_v55 = vpack.c.bf16 %v904_v52, %v903_v49  ;;  %v803_v52 = vld [vmem:[%s1576_s23 + $0x5c] sm:$0xff] }
  0x34   : > { %863 = vmatpush.bf16.msra.mxu2 %v1491_v63  ;;  %756 = vmatpush.bf16.msra.mxu1 %v1487_v1  ;;  %v1012_v63 = vld [vmem:[%s1576_s23 + $0x36] sm:$0xff] }
  0x35   : > { %970 = vmatpush.bf16.msra.mxu3 %v1495_v0  ;;  %1077 = vmatpush.bf16.msra.mxu0 %v1499_v12  ;;  %v1013_v0 = vld [vmem:[%s1576_s23 + $0x3e] sm:$0xff] }
  0x36   : > { %v1020_v3 = vpack.c.bf16 %v1013_v0, %v1012_v63  ;;  %v907_v12 = vld [vmem:[%s1576_s23 + $0x45] sm:$0xff] }
  0x38   : > { %864 = vmatpush.bf16.msra.mxu2 %v1490_v13  ;;  %757 = vmatpush.bf16.msra.mxu1 %v1486_v14  ;;  %v806_v14 = vpack.c.bf16 %v693_v9, %v692_v58 }
  0x39   : > { %971 = vmatpush.bf16.msra.mxu3 %v1494_v15  ;;  %1078 = vmatpush.bf16.msra.mxu0 %v1498_v26  ;;  %v908_v15 = vld [vmem:[%s1576_s23 + $0x4d] sm:$0xff] }
  0x3a   : > { %v914_v21 = vpack.c.bf16 %v908_v15, %v907_v12 }
  0x3b   : > { %1257 = vmatmul.msk.bf16.gmra.mxu1 %vm243_vm0, %v183_v56  ;;  %1285 = vmatmul.msk.bf16.vlgmr.msrb.gmra.mxu2 %vm243_vm0, %v376_v57  ;;  %v1019_v56 = vpack.c.bf16 %v1011_v54, %v1010_v53  ;;  %v691_v57 = vld [vmem:[%s1576_s23 + $0x2c] sm:$0xff] }
  0x3c   : > { %v699_v60 = vpack.c.bf16 %v692_v58, %v691_v57 }
  0x3e   : > { %1315 = vmatmul.msk.bf16.gmra.mxu3 %vm243_vm0, %v484_v61  ;;  %1344 = vmatmul.msk.bf16.gmra.mxu0 %vm243_vm0, %v591_v62  ;;  %v805_v61 = vpack.c.bf16 %v691_v57, %v690_v48  ;;  %v906_v62 = vld [vmem:[%s1576_s23 + $0x3d] sm:$0xff] }
  0x3f   : > { %v913_v2 = vpack.c.bf16 %v906_v62, %v905_v59 }
  0x4b   : > { %1258 = vmatmul.msk.bf16.gmra.mxu1 %vm243_vm0, %v184_v5  ;;  %1286 = vmatmul.msk.bf16.gmra.mxu2 %vm243_vm0, %v377_v6 }
  0x4e   : > { %1316 = vmatmul.msk.bf16.gmra.mxu3 %vm243_vm0, %v485_v10  ;;  %1345 = vmatmul.msk.bf16.gmra.mxu0 %vm243_vm0, %v592_v11  ;;  %v694_v10 = vld [vmem:[%s1576_s23 + $0x44] sm:$0xff] }
  0x4f   : > { %v700_v13 = vpack.c.bf16 %v694_v10, %v693_v9  ;;  %v807_v34 = vpack.c.bf16 %v695_v29, %v694_v10 }
  0x5b   : > { %1259 = vmatmul.msk.bf16.gmra.mxu1 %vm243_vm0, %v185_v19  ;;  %1287 = vmatmul.msk.bf16.gmra.mxu2 %vm243_vm0, %v378_v20 }
  0x5e   : > { %1317 = vmatmul.msk.bf16.gmra.mxu3 %vm243_vm0, %v486_v24  ;;  %1346 = vmatmul.msk.bf16.gmra.mxu0 %vm243_vm0, %v593_v25 }
  0x6b   : > { %1260 = vmatmul.msk.bf16.gmra.mxu1 %vm243_vm0, %v186_v30  ;;  %1288 = vmatmul.msk.bf16.gmra.mxu2 %vm243_vm0, %v379_v31  ;;  %v696_v30 = vld [vmem:[%s1576_s23 + $0x54] sm:$0xff] }
  0x6c   : > { %v701_v33 = vpack.c.bf16 %v696_v30, %v695_v29 }
  0x6e   : > { %1318 = vmatmul.msk.bf16.gmra.mxu3 %vm243_vm0, %v487_v35  ;;  %1347 = vmatmul.msk.bf16.gmra.mxu0 %vm243_vm0, %v594_v36  ;;  %v910_v35 = vld [vmem:[%s1576_s23 + $0x5d] sm:$0xff] }
  0x6f   : > { %v1016_v36 = vld [vmem:[%s1576_s23 + $0x56] sm:$0xff] }
  0x70   : > { %v1022_v42 = vpack.c.bf16 %v1017_v37, %v1016_v36 }
  0x7b   : > { %1289 = vmatmul.msk.bf16.gmra.mxu2 %vm243_vm0, %v380_v40  ;;  %1372 = vmatmul.msk.bf16.vlgmr.msra.gmra.mxu1 %vm243_vm0, %v697_v41  ;;  %v915_v41 = vpack.c.bf16 %v910_v35, %v909_v32 }
  0x7e   : > { %1430 = vmatmul.msk.bf16.vlgmr.msra.gmra.mxu3 %vm243_vm0, %v911_v45  ;;  %1459 = vmatmul.msk.bf16.vlgmr.msra.gmra.mxu0 %vm243_vm0, %v1018_v46 }
  0x8b   : > { %1373 = vmatmul.msk.bf16.gmra.mxu1 %vm243_vm0, %v698_v50  ;;  %1401 = vmatmul.msk.bf16.vlgmr.msra.gmra.mxu2 %vm243_vm0, %v804_v51 }
  0x8e   : > { %1431 = vmatmul.msk.bf16.gmra.mxu3 %vm243_vm0, %v912_v55  ;;  %1460 = vmatmul.msk.bf16.gmra.mxu0 %vm243_vm0, %v1019_v56  ;;  %v808_v55 = vpack.c.bf16 %v803_v52, %v696_v30 }
  0x98   : > { %v273_v1 = vpop.f32.mrf.mxu1 }
  0x9b   : > { %1374 = vmatmul.msk.bf16.gmra.mxu1 %vm243_vm0, %v699_v60  ;;  %1402 = vmatmul.msk.bf16.gmra.mxu2 %vm243_vm0, %v805_v61  ;;  %v268_v4 = vpop.f32.mrf.mxu0 }
  0x9e   : > { %v1770_v5 = vpop.f32.mrf.mxu2  ;;  %1432 = vmatmul.msk.bf16.gmra.mxu3 %vm243_vm0, %v913_v2  ;;  %1461 = vmatmul.msk.bf16.gmra.mxu0 %vm243_vm0, %v1020_v3 }
  0xa0   : > { %v275_v6 = vpop.f32.mrf.mxu1 }
  0xa1   : > { %v1774_v7 = vpop.f32.mrf.mxu3 }
  0xa3   : > { %v270_v8 = vpop.f32.mrf.mxu0 }
  0xa6   : > { %v1778_v11 = vpop.f32.mrf.mxu2 }
  0xa8   : > { %v341_v18 = vpop.f32.mrf.mxu1 }
  0xa9   : > { %v342_v19 = vadd.f32 %v341_v18, %v268_v4  ;;  %v1784_v20 = vpop.f32.mrf.mxu3 }
  0xab   : > { %1375 = vmatmul.msk.bf16.gmra.mxu1 %vm243_vm0, %v700_v13  ;;  %1403 = vmatmul.msk.bf16.gmra.mxu2 %vm243_vm0, %v806_v14  ;;  %v652_v23 = vpop.f32.mrf.mxu0 }
  0xae   : > { %v283_v24 = vpop.f32.mrf.mxu2  ;;  %1433 = vmatmul.msk.bf16.gmra.mxu3 %vm243_vm0, %v914_v21  ;;  %1462 = vmatmul.msk.bf16.gmra.mxu0 %vm243_vm0, %v1021_v22 }
  0xb0   : > { %v343_v25 = vpop.f32.mrf.mxu1 }
  0xb1   : > { %v344_v26 = vadd.f32 %v343_v25, %v270_v8  ;;  %v545_v27 = vpop.f32.mrf.mxu3 }
  0xb3   : > { %v654_v28 = vpop.f32.mrf.mxu0 }
  0xb6   : > { %v285_v31 = vpop.f32.mrf.mxu2 }
  0xb8   : > { %v346_v38 = vpop.f32.mrf.mxu1 }
  0xb9   : > { %v347_v39 = vadd.f32 %v346_v38, %v273_v1  ;;  %v547_v40 = vpop.f32.mrf.mxu3 }
  0xbb   : > { %1376 = vmatmul.msk.bf16.gmra.mxu1 %vm243_vm0, %v701_v33  ;;  %1404 = vmatmul.msk.bf16.gmra.mxu2 %vm243_vm0, %v807_v34  ;;  %v657_v43 = vpop.f32.mrf.mxu0 }
  0xbe   : > { %v438_v44 = vpop.f32.mrf.mxu2  ;;  %1434 = vmatmul.msk.bf16.gmra.mxu3 %vm243_vm0, %v915_v41  ;;  %1463 = vmatmul.msk.bf16.gmra.mxu0 %vm243_vm0, %v1022_v42 }
  0xbf   : > { %v463_v45 = vadd.f32 %v438_v44, %v342_v19 }
  0xc0   : > { %v348_v46 = vpop.f32.mrf.mxu1 }
  0xc1   : > { %v570_v47 = vadd.f32 %v545_v27, %v463_v45  ;;  %v349_v48 = vadd.f32 %v348_v46, %v275_v6  ;;  %v550_v49 = vpop.f32.mrf.mxu3 }
  0xc3   : > { %v659_v50 = vpop.f32.mrf.mxu0  ;;  %v1800_v51 = vadd.f32 %v652_v23, %v570_v47 }
  0xc6   : > { %v440_v53 = vpop.f32.mrf.mxu2 }
  0xc7   : > { %v464_v54 = vadd.f32 %v440_v53, %v344_v26 }
  0xc8   : > { %v351_v56 = vpop.f32.mrf.mxu1 }
  0xc9   : > { %v571_v57 = vadd.f32 %v547_v40, %v464_v54  ;;  %v352_v58 = vadd.f32 %v351_v56, %v1770_v5  ;;  %v552_v59 = vpop.f32.mrf.mxu3 }
  0xcb   : > { %1405 = vmatmul.msk.bf16.gmra.mxu2 %vm243_vm0, %v808_v55  ;;  %v662_v60 = vpop.f32.mrf.mxu0  ;;  %v1805_v61 = vadd.f32 %v654_v28, %v571_v57 }
  0xce   : > { %v443_v62 = vpop.f32.mrf.mxu2 }
  0xcf   : > { %v465_v63 = vadd.f32 %v443_v62, %v347_v39 }
  0xd0   : > { %v353_v0 = vpop.f32.mrf.mxu1 }
  0xd1   : > { %v572_v1 = vadd.f32 %v550_v49, %v465_v63  ;;  %v354_v2 = vadd.f32 %v353_v0, %v1778_v11  ;;  %v555_v3 = vpop.f32.mrf.mxu3  ;;  %v1830_v0 = vld [vmem:[%s1872_s2] ss:$0 sm:$0xff] }
  0xd3   : > { %v664_v4 = vpop.f32.mrf.mxu0  ;;  %v1808_v6 = vadd.f32 %v657_v43, %v572_v1 }
  0xd6   : > { %v445_v8 = vpop.f32.mrf.mxu2 }
  0xd7   : > { %v466_v9 = vadd.f32 %v445_v8, %v349_v48 }
  0xd8   : > { %v356_v10 = vpop.f32.mrf.mxu1 }
  0xd9   : > { %v573_v5 = vadd.f32 %v552_v59, %v466_v9  ;;  %v357_v12 = vadd.f32 %v356_v10, %v283_v24  ;;  %v557_v13 = vpop.f32.mrf.mxu3 }
  0xdb   : > { %v667_v14 = vpop.f32.mrf.mxu0  ;;  %v1810_v15 = vadd.f32 %v659_v50, %v573_v5 }
  0xde   : > { %v448_v16 = vpop.f32.mrf.mxu2 }
  0xdf   : > { %v467_v17 = vadd.f32 %v448_v16, %v352_v58 }
  0xe0   : > { %v358_v18 = vpop.f32.mrf.mxu1 }
  0xe1   : > { %v574_v19 = vadd.f32 %v555_v3, %v467_v17  ;;  %v359_v21 = vadd.f32 %v358_v18, %v285_v31  ;;  %v560_v22 = vpop.f32.mrf.mxu3 }
  0xe3   : > { %v669_v11 = vpop.f32.mrf.mxu0  ;;  %v1812_v23 = vadd.f32 %v662_v60, %v574_v19 }
  0xe6   : > { %v450_v25 = vpop.f32.mrf.mxu2 }
  0xe7   : > { %v468_v26 = vadd.f32 %v450_v25, %v354_v2 }
  0xe8   : > { %v361_v27 = vpop.f32.mrf.mxu1 }
  0xe9   : > { %v575_v28 = vadd.f32 %v557_v13, %v468_v26  ;;  %v362_v29 = vadd.f32 %v361_v27, %v1774_v7  ;;  %v562_v24 = vpop.f32.mrf.mxu3 }
  0xeb   : > { %v1815_v30 = vadd.f32 %v664_v4, %v575_v28  ;;  %v672_v32 = vpop.f32.mrf.mxu0 }
  0xee   : > { %v453_v33 = vpop.f32.mrf.mxu2 }
  0xef   : > { %v469_v34 = vadd.f32 %v453_v33, %v357_v12 }
  0xf0   : > { %v363_v35 = vpop.f32.mrf.mxu1 }
  0xf1   : > { %v576_v36 = vadd.f32 %v560_v22, %v469_v34  ;;  %v364_v31 = vadd.f32 %v363_v35, %v1784_v20  ;;  %v565_v37 = vpop.f32.mrf.mxu3 }
  0xf3   : > { %v1818_v38 = vadd.f32 %v667_v14, %v576_v36  ;;  %v674_v40 = vpop.f32.mrf.mxu0 }
  0xf6   : > { %v455_v39 = vpop.f32.mrf.mxu2 }
  0xf7   : > { %v470_v41 = vadd.f32 %v455_v39, %v359_v21 }
  0xf8   : > { %v759_v42 = vpop.f32.mrf.mxu1 }
  0xf9   : > { %v577_v43 = vadd.f32 %v562_v24, %v470_v41  ;;  %v567_v44 = vpop.f32.mrf.mxu3  ;;  %v784_v59 = vadd.f32 %v759_v42, %v1800_v51 }
  0xfb   : > { %v1820_v7 = vadd.f32 %v669_v11, %v577_v43  ;;  %v1080_v47 = vpop.f32.mrf.mxu0 }
  0xfe   : > { %v458_v45 = vpop.f32.mrf.mxu2 }
  0xff   : > { %v471_v46 = vadd.f32 %v458_v45, %v362_v29 }
 0x100   : > { %v761_v50 = vpop.f32.mrf.mxu1 }
 0x101   : > { %v578_v48 = vadd.f32 %v565_v37, %v471_v46  ;;  %v973_v49 = vpop.f32.mrf.mxu3  ;;  %v785_v4 = vadd.f32 %v761_v50, %v1805_v61 }
 0x103   : > { %v1822_v52 = vadd.f32 %v672_v32, %v578_v48  ;;  %v1082_v56 = vpop.f32.mrf.mxu0 }
 0x106   : > { %v460_v20 = vpop.f32.mrf.mxu2 }
 0x107   : > { %v472_v53 = vadd.f32 %v460_v20, %v364_v31 }
 0x108   : > { %v764_v58 = vpop.f32.mrf.mxu1 }
 0x109   : > { %v579_v54 = vadd.f32 %v567_v44, %v472_v53  ;;  %v975_v55 = vpop.f32.mrf.mxu3  ;;  %v786_v16 = vadd.f32 %v764_v58, %v1808_v6 }
 0x10b   : > { %v1824_v57 = vadd.f32 %v674_v40, %v579_v54  ;;  %v1085_v3 = vpop.f32.mrf.mxu0 }
 0x10e   : > { %v866_v60 = vpop.f32.mrf.mxu2 }
 0x10f   : > { %v891_v62 = vadd.f32 %v866_v60, %v784_v59 }
 0x110   : > { %v766_v51 = vpop.f32.mrf.mxu1 }
 0x111   : > { %v998_v63 = vadd.f32 %v973_v49, %v891_v62  ;;  %v978_v1 = vpop.f32.mrf.mxu3  ;;  %v787_v26 = vadd.f32 %v766_v51, %v1810_v15 }
 0x113   : > { %v1105_v2 = vadd.f32 %v1080_v47, %v998_v63  ;;  %v1087_v18 = vpop.f32.mrf.mxu0 }
 0x115   : > { %v1119_v8 = vadd.f32 %v1830_v0, %v1105_v2 }
 0x116   : > { %v868_v9 = vpop.f32.mrf.mxu2 }
 0x117   : > { %v1129_v10 = vmax.f32 %v1119_v8, 0.0  ;;  %v892_v5 = vadd.f32 %v868_v9, %v785_v4 }
 0x118   : > { %v769_v22 = vpop.f32.mrf.mxu1 }
 0x119   : > { %1139 = vst [vmem:[%s1838_s21] sm:$0xff] %v1129_v10  ;;  %v999_v12 = vadd.f32 %v975_v55, %v892_v5  ;;  %v980_v14 = vpop.f32.mrf.mxu3  ;;  %v788_v36 = vadd.f32 %v769_v22, %v1812_v23 }
 0x11b   : > { %v1106_v13 = vadd.f32 %v1082_v56, %v999_v12  ;;  %v1090_v32 = vpop.f32.mrf.mxu0 }
 0x11d   : > { %v1120_v61 = vadd.f32 %v1830_v0, %v1106_v13 }
 0x11e   : > { %v871_v17 = vpop.f32.mrf.mxu2 }
 0x11f   : > { %v1130_v19 = vmax.f32 %v1120_v61, 0.0  ;;  %v893_v21 = vadd.f32 %v871_v17, %v786_v16 }
 0x120   : > { %v771_v34 = vpop.f32.mrf.mxu1 }
 0x121   : > { %1140 = vst [vmem:[%s1838_s21 + $0x8] sm:$0xff] %v1130_v19  ;;  %v1000_v11 = vadd.f32 %v978_v1, %v893_v21  ;;  %v983_v29 = vpop.f32.mrf.mxu3  ;;  %v789_v45 = vadd.f32 %v771_v34, %v1815_v30 }
 0x123   : > { %v1107_v25 = vadd.f32 %v1085_v3, %v1000_v11  ;;  %v1092_v42 = vpop.f32.mrf.mxu0 }
 0x125   : > { %v1121_v27 = vadd.f32 %v1830_v0, %v1107_v25 }
 0x126   : > { %v873_v28 = vpop.f32.mrf.mxu2 }
 0x127   : > { %v1131_v24 = vmax.f32 %v1121_v27, 0.0  ;;  %v894_v6 = vadd.f32 %v873_v28, %v787_v26 }
 0x128   : > { %v774_v44 = vpop.f32.mrf.mxu1 }
 0x129   : > { %1141 = vst [vmem:[%s1838_s21 + $0x10] sm:$0xff] %v1131_v24  ;;  %v1001_v33 = vadd.f32 %v980_v14, %v894_v6  ;;  %v985_v40 = vpop.f32.mrf.mxu3  ;;  %v790_v54 = vadd.f32 %v774_v44, %v1818_v38 }
 0x12b   : > { %v1108_v35 = vadd.f32 %v1087_v18, %v1001_v33  ;;  %v1095_v53 = vpop.f32.mrf.mxu0 }
 0x12d   : > { %v1122_v31 = vadd.f32 %v1830_v0, %v1108_v35 }
 0x12e   : > { %v876_v37 = vpop.f32.mrf.mxu2 }
 0x12f   : > { %v1132_v39 = vmax.f32 %v1122_v31, 0.0  ;;  %v895_v15 = vadd.f32 %v876_v37, %v788_v36 }
 0x130   : > { %v776_v56 = vpop.f32.mrf.mxu1 }
 0x131   : > { %1142 = vst [vmem:[%s1838_s21 + $0x18] sm:$0xff] %v1132_v39  ;;  %v1002_v41 = vadd.f32 %v983_v29, %v895_v15  ;;  %v988_v50 = vpop.f32.mrf.mxu3  ;;  %v791_v1 = vadd.f32 %v776_v56, %v1820_v7 }
 0x133   : > { %v1109_v43 = vadd.f32 %v1090_v32, %v1002_v41  ;;  %v1097_v3 = vpop.f32.mrf.mxu0 }
 0x135   : > { %v1123_v46 = vadd.f32 %v1830_v0, %v1109_v43 }
 0x136   : > { %v878_v47 = vpop.f32.mrf.mxu2 }
 0x137   : > { %v1133_v48 = vmax.f32 %v1123_v46, 0.0  ;;  %v896_v23 = vadd.f32 %v878_v47, %v789_v45 }
 0x138   : > { %v779_v51 = vpop.f32.mrf.mxu1 }
 0x139   : > { %1143 = vst [vmem:[%s1838_s21 + $0x20] sm:$0xff] %v1133_v48  ;;  %v1003_v49 = vadd.f32 %v985_v40, %v896_v23  ;;  %v990_v63 = vpop.f32.mrf.mxu3  ;;  %v792_v5 = vadd.f32 %v779_v51, %v1822_v52 }
 0x13b   : > { %v1110_v20 = vadd.f32 %v1092_v42, %v1003_v49  ;;  %v1100_v61 = vpop.f32.mrf.mxu0 }
 0x13d   : > { %v1124_v55 = vadd.f32 %v1830_v0, %v1110_v20 }
 0x13e   : > { %v881_v58 = vpop.f32.mrf.mxu2 }
 0x13f   : > { %v1134_v59 = vmax.f32 %v1124_v55, 0.0  ;;  %v897_v30 = vadd.f32 %v881_v58, %v790_v54 }
 0x140   : > { %v781_v18 = vpop.f32.mrf.mxu1 }
 0x141   : > { %1144 = vst [vmem:[%s1838_s21 + $0x28] sm:$0xff] %v1134_v59  ;;  %v1004_v60 = vadd.f32 %v988_v50, %v897_v30  ;;  %v993_v13 = vpop.f32.mrf.mxu3  ;;  %v793_v21 = vadd.f32 %v781_v18, %v1824_v57 }
 0x143   : > { %v1111_v62 = vadd.f32 %v1095_v53, %v1004_v60  ;;  %v1102_v28 = vpop.f32.mrf.mxu0 }
 0x145   : > { %v1125_v2 = vadd.f32 %v1830_v0, %v1111_v62 }
 0x146   : > { %v883_v4 = vpop.f32.mrf.mxu2 }
 0x147   : > { %v1135_v8 = vmax.f32 %v1125_v2, 0.0  ;;  %v898_v38 = vadd.f32 %v883_v4, %v791_v1 }
 0x149   : > { %1145 = vst [vmem:[%s1838_s21 + $0x30] sm:$0xff] %v1135_v8  ;;  %v1005_v9 = vadd.f32 %v990_v63, %v898_v38  ;;  %v995_v26 = vpop.f32.mrf.mxu3 }
 0x14b   : > { %v1112_v10 = vadd.f32 %v1097_v3, %v1005_v9 }
 0x14d   : > { %v1126_v12 = vadd.f32 %v1830_v0, %v1112_v10 }
 0x14e   : > { %v886_v14 = vpop.f32.mrf.mxu2 }
 0x14f   : > { %v1136_v16 = vmax.f32 %v1126_v12, 0.0  ;;  %v899_v7 = vadd.f32 %v886_v14, %v792_v5 }
 0x151   : > { %1146 = vst [vmem:[%s1838_s21 + $0x38] sm:$0xff] %v1136_v16  ;;  %v1006_v17 = vadd.f32 %v993_v13, %v899_v7 }
 0x153   : > { %v1113_v19 = vadd.f32 %v1100_v61, %v1006_v17 }
 0x155   : > { %v1127_v22 = vadd.f32 %v1830_v0, %v1113_v19 }
 0x156   : > { %v888_v11 = vpop.f32.mrf.mxu2 }
 0x157   : > { %v1137_v25 = vmax.f32 %v1127_v22, 0.0  ;;  %v900_v52 = vadd.f32 %v888_v11, %v793_v21 }
 0x159   : > { %1147 = vst [vmem:[%s1838_s21 + $0x40] sm:$0xff] %v1137_v25  ;;  %v1007_v27 = vadd.f32 %v995_v26, %v900_v52 }
 0x15b   : > { %v1114_v29 = vadd.f32 %v1102_v28, %v1007_v27 }
 0x15d   : > { %v1128_v24 = vadd.f32 %v1830_v0, %v1114_v29 }
 0x15f   : > { %v1138_v6 = vmax.f32 %v1128_v24, 0.0 }
 0x161   : > { %1148 = vst [vmem:[%s1838_s21 + $0x48] sm:$0xff] %v1138_v6 }
 0x162 PF: > { %s13_s12 = sadd.s32 1, %s1531_s12  }
 0x163   : > { %p10_p4 = scmp.ge.s32.totalorder %s13_s12, 4  }
 0x165   :  { %12 = sbr.rel (!%p10_p4) target bundleno = 1 (0x1), region = 70 }

// kernel: net_forward.6
= control target key start
LH: loop header
LB: loop body
LE: loop exit
PB: predicated region body
PF: predicated region fallthrough
CT: control target
= control target key end

     0   :  { %s2727_s12 = smov 0   ;;  %s3636_s0 = inlined_call_operand.vmem [shape: f32[2,326,3], index: 0, kind: input, shape index: {}]   ;;  %s3637_s1 = inlined_call_operand.vmem [shape: bf16[9,3,64], index: 1, kind: input, shape index: {}]   ;;  %s3638_s2 = inlined_call_operand.vmem [shape: f32[1,64], index: 2, kind: input, shape index: {}]   ;;  %s3639_s3 = inlined_call_operand.vmem [shape: f32[2,288,64], index: 3, kind: output, shape index: {}]  }
   0x1 LB: > { %s2504_s13 = sadd.s32 4294967295, %s2704_s12   ;;  %p2508_p0 = scmp.ge.s32.totalorder %s2704_s12, 1  ;;  %s2704_s12 = sphi %s2727_s12, %s13_s12  }
   0x2   : > { %p137_p1 = scmp.lt.s32.totalorder %s2704_s12, 3 }
   0x4   : > { %p138_p2 = pnand %p2508_p0, %p137_p1 }
   0x5   : > { %p161_p3 = scmp.lt.s32.totalorder (!%p138_p2), %s2504_s13, 1 }
   0x6   : > { %141 = sbr.rel (%p138_p2) target bundleno = 810 (0x32a), region = 32 }
   0xb   : > { %v2511_v0 = vld [vmem:[%s3637_s1 + $0x2] sm:$0x3]  ;;  %vm338_vm0 = vcmask 1040384   ;;  %vm339_vm1 = vcmask 1041408   ;;  %v2706_v1 = vmov 65535   ;;  %s3641_s13 = smov (!%p161_p3, %s2504_s13), 1 }
   0xc   : > { %v340_v2 = vsel %vm338_vm0, 4294967295, %v2706_v1  ;;  %v2548_v3 = vld [vmem:[%s3637_s1 + $0x4] sm:$0x3]  ;;  %v226_v4 = vld [vmem:[%s3637_s1] sm:$0x3]  ;;  %s2686_s22 = smul.u32 328, %s3641_s13 }
   0xd   : > { %v2744_v5 = vsel %vm339_vm1, %v340_v2, 0  ;;  %v2586_v6 = vld [vmem:[%s3637_s1 + $0x8] sm:$0x3]  ;;  %vm283_vm2 = vcmask 23552   ;;  %v2567_v23 = vld [vmem:[%s3637_s1 + $0x6] sm:$0x3] }
   0xe   : > { %v343_v7 = vand.u32 %v2511_v0, %v2744_v5  ;;  %v711_v8 = vand.u32 %v2548_v3, %v2744_v5  ;;  %v499_v9 = vand.u32 %v2744_v5, %v226_v4  ;;  %v1207_v10 = vand.u32 %v2586_v6, %v2744_v5  ;;  %s2759_s25 = scalar_lea.vmem %s3636_s0, %s2686_s22  ;;  %v2624_v61 = vld [vmem:[%s3637_s1 + $0xc] sm:$0x3]  ;;  %v2643_v62 = vld [vmem:[%s3637_s1 + $0xe] sm:$0x3]  ;;  %v2605_v63 = vld [vmem:[%s3637_s1 + $0xa] sm:$0x3] }
   0xf   : > { %v237_v11 = vld [vmem:[%s2759_s25 + $0x51] sm:$0xff]  ;;  %v238_v12 = vld [vmem:[%s2759_s25 + $0x59] sm:$0xff]  ;;  %v247_v13 = vld [vmem:[%s2759_s25 + $0xa1] sm:$0xff]  ;;  %v959_v24 = vand.u32 %v2567_v23, %v2744_v5  ;;  %v1703_v0 = vand.u32 %v2624_v61, %v2744_v5  ;;  %v1951_v1 = vand.u32 %v2643_v62, %v2744_v5  ;;  %v1455_v2 = vand.u32 %v2605_v63, %v2744_v5  ;;  %s2687_s11 = smul.u32 288, %s3641_s13 }
  0x10   : > { %2683 = vmatpush.bf16.msra.mxu1 %v343_v7  ;;  %2684 = vmatpush.bf16.msra.mxu2 %v343_v7  ;;  %v268_v14 = vpack.c.bf16 %v238_v12, %v237_v11  ;;  %v248_v15 = vld [vmem:[%s2759_s25 + $0xa9] sm:$0xff]  ;;  %v227_v16 = vld [vmem:[%s2759_s25 + $0x1] sm:$0xff]  ;;  %v257_v20 = vld [vmem:[%s2759_s25 + $0xf1] sm:$0xff]  ;;  %vm2412_vm3 = vcmask 523264  }
  0x11   : > { %352 = vmatpush.bf16.msra.mxu0 %v343_v7  ;;  %v228_v17 = vld [vmem:[%s2759_s25 + $0x9] sm:$0xff]  ;;  %2685 = vmatpush.bf16.msra.mxu3 %v343_v7  ;;  %v273_v18 = vpack.c.bf16 %v248_v15, %v247_v13  ;;  %v258_v21 = vld [vmem:[%s2759_s25 + $0xf9] sm:$0xff]  ;;  %v239_v25 = vld [vmem:[%s2759_s25 + $0x61] sm:$0xff]  ;;  %s3367_s16 = scalar_lea.vmem %s3639_s3, %s2687_s11 }
  0x12   : > { %v263_v19 = vpack.c.bf16 %v228_v17, %v227_v16  ;;  %v278_v22 = vpack.c.bf16 %v258_v21, %v257_v20  ;;  %v240_v26 = vld [vmem:[%s2759_s25 + $0x69] sm:$0xff]  ;;  %v249_v27 = vld [vmem:[%s2759_s25 + $0xb1] sm:$0xff]  ;;  %v250_v28 = vld [vmem:[%s2759_s25 + $0xb9] sm:$0xff] }
  0x13   : > { %2517 = vmatmul.msk.bf16.vlgmr.msra.gmra.mxu1 %vm283_vm2, %v268_v14  ;;  %2522 = vmatmul.msk.bf16.vlgmr.msra.gmra.mxu2 %vm283_vm2, %v273_v18  ;;  %v229_v29 = vld [vmem:[%s2759_s25 + $0x11] sm:$0xff]  ;;  %v230_v30 = vld [vmem:[%s2759_s25 + $0x19] sm:$0xff]  ;;  %v269_v31 = vpack.c.bf16 %v240_v26, %v239_v25  ;;  %v274_v32 = vpack.c.bf16 %v250_v28, %v249_v27  ;;  %v259_v34 = vld [vmem:[%s2759_s25 + $0x101] sm:$0xff] }
  0x14   : > { %720 = vmatpush.bf16.msrb.mxu2 %v711_v8  ;;  %508 = vmatpush.bf16.msrb.mxu1 %v499_v9  ;;  %v264_v33 = vpack.c.bf16 %v230_v30, %v229_v29  ;;  %v260_v35 = vld [vmem:[%s2759_s25 + $0x109] sm:$0xff]  ;;  %v241_v37 = vld [vmem:[%s2759_s25 + $0x71] sm:$0xff]  ;;  %v242_v38 = vld [vmem:[%s2759_s25 + $0x79] sm:$0xff] }
  0x15   : > { %1216 = vmatpush.bf16.msrb.mxu0 %v1207_v10  ;;  %2527 = vmatmul.msk.bf16.vlgmr.msra.gmra.mxu3 %vm283_vm2, %v278_v22  ;;  %v279_v36 = vpack.c.bf16 %v260_v35, %v259_v34  ;;  %v251_v39 = vld [vmem:[%s2759_s25 + $0xc1] sm:$0xff]  ;;  %v252_v40 = vld [vmem:[%s2759_s25 + $0xc9] sm:$0xff]  ;;  %v270_v43 = vpack.c.bf16 %v242_v38, %v241_v37  ;;  %v261_v46 = vld [vmem:[%s2759_s25 + $0x111] sm:$0xff] }
  0x16   : > { %2512 = vmatmul.msk.bf16.vlgmr.msra.gmra.mxu0 %vm283_vm2, %v263_v19  ;;  %968 = vmatpush.bf16.msrb.mxu3 %v959_v24  ;;  %v231_v41 = vld [vmem:[%s2759_s25 + $0x21] sm:$0xff]  ;;  %v232_v42 = vld [vmem:[%s2759_s25 + $0x29] sm:$0xff]  ;;  %v275_v44 = vpack.c.bf16 %v252_v40, %v251_v39  ;;  %v262_v47 = vld [vmem:[%s2759_s25 + $0x119] sm:$0xff] }
  0x17   : > { %v265_v45 = vpack.c.bf16 %v232_v42, %v231_v41  ;;  %v280_v48 = vpack.c.bf16 %v262_v47, %v261_v46  ;;  %v243_v49 = vld [vmem:[%s2759_s25 + $0x81] sm:$0xff]  ;;  %v244_v50 = vld [vmem:[%s2759_s25 + $0x89] sm:$0xff]  ;;  %v253_v51 = vld [vmem:[%s2759_s25 + $0xd1] sm:$0xff] }
  0x18   : > { %v254_v52 = vld [vmem:[%s2759_s25 + $0xd9] sm:$0xff]  ;;  %v233_v53 = vld [vmem:[%s2759_s25 + $0x31] sm:$0xff]  ;;  %v271_v55 = vpack.c.bf16 %v244_v50, %v243_v49  ;;  %1712 = vmatpush.bf16.msra.mxu2 %v1703_v0  ;;  %1464 = vmatpush.bf16.msra.mxu1 %v1455_v2  ;;  %v255_v8 = vld [vmem:[%s2759_s25 + $0xe1] sm:$0xff] }
  0x19   : > { %v234_v54 = vld [vmem:[%s2759_s25 + $0x39] sm:$0xff]  ;;  %v276_v56 = vpack.c.bf16 %v254_v52, %v253_v51  ;;  %v2662_v3 = vld [vmem:[%s3637_s1 + $0x10] sm:$0x3]  ;;  %v235_v10 = vld [vmem:[%s2759_s25 + $0x41] sm:$0xff] }
  0x1a   : > { %v266_v57 = vpack.c.bf16 %v234_v54, %v233_v53  ;;  %v848_v58 = vld [vmem:[%s2759_s25 + $0x12] sm:$0xff]  ;;  %v849_v59 = vld [vmem:[%s2759_s25 + $0x1a] sm:$0xff]  ;;  %v2199_v4 = vand.u32 %v2662_v3, %v2744_v5  ;;  %1960 = vmatpush.bf16.msra.mxu3 %v1951_v1  ;;  %v256_v9 = vld [vmem:[%s2759_s25 + $0xe9] sm:$0xff] }
  0x1b   : > { %v884_v60 = vpack.c.bf16 %v849_v59, %v848_v58  ;;  %v245_v6 = vld [vmem:[%s2759_s25 + $0x91] sm:$0xff]  ;;  %v246_v7 = vld [vmem:[%s2759_s25 + $0x99] sm:$0xff]  ;;  %v236_v11 = vld [vmem:[%s2759_s25 + $0x49] sm:$0xff]  ;;  %v277_v12 = vpack.c.bf16 %v256_v9, %v255_v8 }
  0x1c   : > { %2208 = vmatpush.bf16.msra.mxu0 %v2199_v4  ;;  %v272_v5 = vpack.c.bf16 %v246_v7, %v245_v6  ;;  %v267_v13 = vpack.c.bf16 %v236_v11, %v235_v10  ;;  %v850_v14 = vld [vmem:[%s2759_s25 + $0x22] sm:$0xff]  ;;  %v851_v15 = vld [vmem:[%s2759_s25 + $0x2a] sm:$0xff]  ;;  %v1096_v21 = vld [vmem:[%s2759_s25 + $0x13] sm:$0xff] }
  0x1d   : > { %v885_v16 = vpack.c.bf16 %v851_v15, %v850_v14  ;;  %v172_v17 = vld [vmem:[%s2759_s25] sm:$0xff]  ;;  %v173_v18 = vld [vmem:[%s2759_s25 + $0x8] sm:$0xff]  ;;  %v852_v26 = vld [vmem:[%s2759_s25 + $0x32] sm:$0xff] }
  0x1e   : > { %v600_v19 = vld [vmem:[%s2759_s25 + $0x2] sm:$0xff]  ;;  %v601_v20 = vld [vmem:[%s2759_s25 + $0xa] sm:$0xff]  ;;  %v208_v23 = vpack.c.bf16 %v173_v18, %v172_v17  ;;  %v853_v27 = vld [vmem:[%s2759_s25 + $0x3a] sm:$0xff] }
  0x1f   : > { %v1097_v22 = vld [vmem:[%s2759_s25 + $0x1b] sm:$0xff]  ;;  %v636_v24 = vpack.c.bf16 %v601_v20, %v600_v19  ;;  %v886_v28 = vpack.c.bf16 %v853_v27, %v852_v26  ;;  %v174_v29 = vld [vmem:[%s2759_s25 + $0x10] sm:$0xff]  ;;  %v177_v39 = vld [vmem:[%s2759_s25 + $0x28] sm:$0xff] }
  0x20   : > { %v1132_v25 = vpack.c.bf16 %v1097_v22, %v1096_v21  ;;  %v175_v30 = vld [vmem:[%s2759_s25 + $0x18] sm:$0xff]  ;;  %v854_v35 = vld [vmem:[%s2759_s25 + $0x42] sm:$0xff]  ;;  %v178_v47 = vld [vmem:[%s2759_s25 + $0x30] sm:$0xff] }
  0x21   : > { %v176_v38 = vld [vmem:[%s2759_s25 + $0x20] sm:$0xff]  ;;  %v1100_v40 = vld [vmem:[%s2759_s25 + $0x33] sm:$0xff]  ;;  %v1103_v50 = vld [vmem:[%s2759_s25 + $0x4b] sm:$0xff] }
  0x22   : > { %v1101_v41 = vld [vmem:[%s2759_s25 + $0x3b] sm:$0xff]  ;;  %v210_v42 = vpack.c.bf16 %v177_v39, %v176_v38  ;;  %v1102_v49 = vld [vmem:[%s2759_s25 + $0x43] sm:$0xff]  ;;  %v1104_v0 = vld [vmem:[%s2759_s25 + $0x53] sm:$0xff] }
  0x23   : > { %2518 = vmatmul.msk.bf16.gmra.mxu1 %vm283_vm2, %v269_v31  ;;  %2523 = vmatmul.msk.bf16.gmra.mxu2 %vm283_vm2, %v274_v32  ;;  %v1098_v31 = vld [vmem:[%s2759_s25 + $0x23] sm:$0xff]  ;;  %v1099_v32 = vld [vmem:[%s2759_s25 + $0x2b] sm:$0xff]  ;;  %v1135_v53 = vpack.c.bf16 %v1103_v50, %v1102_v49  ;;  %v1105_v1 = vld [vmem:[%s2759_s25 + $0x5b] sm:$0xff] }
  0x24   : > { %v1133_v34 = vpack.c.bf16 %v1099_v32, %v1098_v31  ;;  %v858_v54 = vld [vmem:[%s2759_s25 + $0x62] sm:$0xff]  ;;  %v1136_v6 = vpack.c.bf16 %v1105_v1, %v1104_v0  ;;  %v860_v7 = vld [vmem:[%s2759_s25 + $0x72] sm:$0xff]  ;;  %v861_v8 = vld [vmem:[%s2759_s25 + $0x7a] sm:$0xff] }
  0x25   : > { %2528 = vmatmul.msk.bf16.gmra.mxu3 %vm283_vm2, %v279_v36  ;;  %v855_v36 = vld [vmem:[%s2759_s25 + $0x4a] sm:$0xff]  ;;  %v180_v62 = vld [vmem:[%s2759_s25 + $0x40] sm:$0xff]  ;;  %v2913_v11 = vpack.c.bf16 %v861_v8, %v860_v7  ;;  %v187_v50 = vld [vmem:[%s2759_s25 + $0x78] sm:$0xff] }
  0x26   : > { %2513 = vmatmul.msk.bf16.gmra.mxu0 %vm283_vm2, %v264_v33  ;;  %v209_v33 = vpack.c.bf16 %v175_v30, %v174_v29  ;;  %v887_v37 = vpack.c.bf16 %v855_v36, %v854_v35  ;;  %v181_v63 = vld [vmem:[%s2759_s25 + $0x48] sm:$0xff]  ;;  %v182_v15 = vld [vmem:[%s2759_s25 + $0x50] sm:$0xff]  ;;  %v184_v32 = vld [vmem:[%s2759_s25 + $0x60] sm:$0xff] }
  0x27   : > { %v212_v3 = vpack.c.bf16 %v181_v63, %v180_v62  ;;  %v1106_v17 = vld [vmem:[%s2759_s25 + $0x63] sm:$0xff]  ;;  %v1107_v18 = vld [vmem:[%s2759_s25 + $0x6b] sm:$0xff]  ;;  %v1109_v35 = vld [vmem:[%s2759_s25 + $0x7b] sm:$0xff] }
  0x28   : > { %v1137_v22 = vpack.c.bf16 %v1107_v18, %v1106_v17  ;;  %v186_v49 = vld [vmem:[%s2759_s25 + $0x70] sm:$0xff]  ;;  %v866_v63 = vld [vmem:[%s2759_s25 + $0xa2] sm:$0xff] }
  0x29   : > { %v867_v0 = vld [vmem:[%s2759_s25 + $0xaa] sm:$0xff]  ;;  %v188_v17 = vld [vmem:[%s2759_s25 + $0x80] sm:$0xff] }
  0x2a   : > { %v189_v18 = vld [vmem:[%s2759_s25 + $0x88] sm:$0xff] }
  0x33   : > { %2519 = vmatmul.msk.bf16.gmra.mxu1 %vm283_vm2, %v270_v43  ;;  %2524 = vmatmul.msk.bf16.gmra.mxu2 %vm283_vm2, %v275_v44  ;;  %v1134_v43 = vpack.c.bf16 %v1101_v41, %v1100_v40  ;;  %v856_v44 = vld [vmem:[%s2759_s25 + $0x52] sm:$0xff]  ;;  %v865_v41 = vld [vmem:[%s2759_s25 + $0x9a] sm:$0xff] }
  0x34   : > { %v864_v40 = vld [vmem:[%s2759_s25 + $0x92] sm:$0xff] }
  0x35   : > { %2529 = vmatmul.msk.bf16.gmra.mxu3 %vm283_vm2, %v280_v48  ;;  %v179_v48 = vld [vmem:[%s2759_s25 + $0x38] sm:$0xff] }
  0x36   : > { %2514 = vmatmul.msk.bf16.gmra.mxu0 %vm283_vm2, %v265_v45  ;;  %v857_v45 = vld [vmem:[%s2759_s25 + $0x5a] sm:$0xff]  ;;  %v211_v51 = vpack.c.bf16 %v179_v48, %v178_v47 }
  0x37   : > { %v888_v46 = vpack.c.bf16 %v857_v45, %v856_v44  ;;  %v2971_v44 = vpack.c.bf16 %v865_v41, %v864_v40 }
  0x43   : > { %2520 = vmatmul.msk.bf16.gmra.mxu1 %vm283_vm2, %v271_v55  ;;  %2525 = vmatmul.msk.bf16.gmra.mxu2 %vm283_vm2, %v276_v56  ;;  %v859_v55 = vld [vmem:[%s2759_s25 + $0x6a] sm:$0xff] }
  0x45   : > { %2568 = vmatmul.msk.bf16.vlgmr.msrb.gmra.mxu3 %vm283_vm2, %v884_v60 }
  0x46   : > { %2515 = vmatmul.msk.bf16.gmra.mxu0 %vm283_vm2, %v266_v57  ;;  %v2884_v57 = vpack.c.bf16 %v859_v55, %v858_v54  ;;  %v215_v55 = vpack.c.bf16 %v187_v50, %v186_v49 }
  0x53   : > { %2521 = vmatmul.msk.bf16.gmra.mxu1 %vm283_vm2, %v272_v5  ;;  %2526 = vmatmul.msk.bf16.gmra.mxu2 %vm283_vm2, %v277_v12 }
  0x55   : > { %2569 = vmatmul.msk.bf16.gmra.mxu3 %vm283_vm2, %v885_v16 }
  0x56   : > { %2516 = vmatmul.msk.bf16.gmra.mxu0 %vm283_vm2, %v267_v13 }
  0x63   : > { %2530 = vmatmul.msk.bf16.vlgmr.msrb.gmra.mxu1 %vm283_vm2, %v208_v23  ;;  %2549 = vmatmul.msk.bf16.vlgmr.msrb.gmra.mxu2 %vm283_vm2, %v636_v24  ;;  %v862_v23 = vld [vmem:[%s2759_s25 + $0x82] sm:$0xff]  ;;  %v863_v24 = vld [vmem:[%s2759_s25 + $0x8a] sm:$0xff] }
  0x64   : > { %v2942_v27 = vpack.c.bf16 %v863_v24, %v862_v23 }
  0x65   : > { %2570 = vmatmul.msk.bf16.gmra.mxu3 %vm283_vm2, %v886_v28 }
  0x66   : > { %2587 = vmatmul.msk.bf16.vlgmr.msrb.gmra.mxu0 %vm283_vm2, %v1132_v25 }
  0x73   : > { %2531 = vmatmul.msk.bf16.gmra.mxu1 %vm283_vm2, %v209_v33  ;;  %2550 = vmatmul.msk.bf16.gmra.mxu2 %vm283_vm2, %v884_v60  ;;  %v185_v33 = vld [vmem:[%s2759_s25 + $0x68] sm:$0xff] }
  0x75   : > { %2571 = vmatmul.msk.bf16.gmra.mxu3 %vm283_vm2, %v887_v37 }
  0x76   : > { %2588 = vmatmul.msk.bf16.gmra.mxu0 %vm283_vm2, %v1133_v34  ;;  %v1108_v34 = vld [vmem:[%s2759_s25 + $0x73] sm:$0xff] }
  0x77   : > { %v1138_v39 = vpack.c.bf16 %v1109_v35, %v1108_v34  ;;  %v869_v34 = vld [vmem:[%s2759_s25 + $0xba] sm:$0xff] }
  0x83   : > { %2532 = vmatmul.msk.bf16.gmra.mxu1 %vm283_vm2, %v210_v42  ;;  %2551 = vmatmul.msk.bf16.gmra.mxu2 %vm283_vm2, %v885_v16  ;;  %v183_v16 = vld [vmem:[%s2759_s25 + $0x58] sm:$0xff] }
  0x84   : > { %v213_v20 = vpack.c.bf16 %v183_v16, %v182_v15 }
  0x85   : > { %2572 = vmatmul.msk.bf16.gmra.mxu3 %vm283_vm2, %v888_v46 }
  0x86   : > { %2589 = vmatmul.msk.bf16.gmra.mxu0 %vm283_vm2, %v1134_v43 }
  0x90   : > { %v2877_v52 = vpop.f32.mrf.mxu1 }
  0x93   : > { %v2881_v56 = vpop.f32.mrf.mxu0  ;;  %2533 = vmatmul.msk.bf16.gmra.mxu1 %vm283_vm2, %v211_v51  ;;  %2552 = vmatmul.msk.bf16.gmra.mxu2 %vm283_vm2, %v886_v28  ;;  %v1110_v51 = vld [vmem:[%s2759_s25 + $0x83] sm:$0xff] }
  0x95   : > { %2573 = vmatmul.msk.bf16.gmra.mxu3 %vm283_vm2, %v2884_v57 }
  0x96   : > { %2590 = vmatmul.msk.bf16.gmra.mxu0 %vm283_vm2, %v1135_v53  ;;  %v2888_v58 = vpop.f32.mrf.mxu2  ;;  %v1111_v53 = vld [vmem:[%s2759_s25 + $0x8b] sm:$0xff] }
  0x97   : > { %v1139_v62 = vpack.c.bf16 %v1111_v53, %v1110_v51 }
  0x98   : > { %v2892_v59 = vpop.f32.mrf.mxu1  ;;  %v2896_v61 = vpop.f32.mrf.mxu3 }
  0x9b   : > { %v2894_v60 = vpop.f32.mrf.mxu0 }
  0x9e   : > { %v2902_v2 = vpop.f32.mrf.mxu2 }
  0xa0   : > { %v2904_v4 = vpop.f32.mrf.mxu1  ;;  %v2910_v10 = vpop.f32.mrf.mxu3 }
  0xa3   : > { %v2908_v9 = vpop.f32.mrf.mxu0  ;;  %2534 = vmatmul.msk.bf16.gmra.mxu1 %vm283_vm2, %v212_v3  ;;  %2553 = vmatmul.msk.bf16.gmra.mxu2 %vm283_vm2, %v887_v37  ;;  %v214_v37 = vpack.c.bf16 %v185_v33, %v184_v32  ;;  %v868_v33 = vld [vmem:[%s2759_s25 + $0xb2] sm:$0xff] }
  0xa5   : > { %2574 = vmatmul.msk.bf16.gmra.mxu3 %vm283_vm2, %v2913_v11 }
  0xa6   : > { %2591 = vmatmul.msk.bf16.gmra.mxu0 %vm283_vm2, %v1136_v6  ;;  %v2917_v5 = vpop.f32.mrf.mxu2  ;;  %v2997_v6 = vpack.c.bf16 %v867_v0, %v866_v63  ;;  %v191_v63 = vld [vmem:[%s2759_s25 + $0x98] sm:$0xff] }
  0xa8   : > { %v2921_v12 = vpop.f32.mrf.mxu1  ;;  %v2925_v14 = vpop.f32.mrf.mxu3 }
  0xab   : > { %v2923_v13 = vpop.f32.mrf.mxu0 }
  0xae   : > { %v2931_v19 = vpop.f32.mrf.mxu2 }
  0xb0   : > { %v2933_v21 = vpop.f32.mrf.mxu1  ;;  %v2939_v26 = vpop.f32.mrf.mxu3 }
  0xb3   : > { %v2937_v25 = vpop.f32.mrf.mxu0  ;;  %2535 = vmatmul.msk.bf16.gmra.mxu1 %vm283_vm2, %v213_v20  ;;  %2554 = vmatmul.msk.bf16.gmra.mxu2 %vm283_vm2, %v888_v46  ;;  %v1112_v20 = vld [vmem:[%s2759_s25 + $0x93] sm:$0xff] }
  0xb5   : > { %2575 = vmatmul.msk.bf16.gmra.mxu3 %vm283_vm2, %v2942_v27 }
  0xb6   : > { %2592 = vmatmul.msk.bf16.gmra.mxu0 %vm283_vm2, %v1137_v22  ;;  %v2946_v28 = vpop.f32.mrf.mxu2  ;;  %v1113_v22 = vld [vmem:[%s2759_s25 + $0x9b] sm:$0xff] }
  0xb7   : > { %v1140_v32 = vpack.c.bf16 %v1113_v22, %v1112_v20 }
  0xb8   : > { %v2950_v29 = vpop.f32.mrf.mxu1  ;;  %v2954_v31 = vpop.f32.mrf.mxu3 }
  0xbb   : > { %v2952_v30 = vpop.f32.mrf.mxu0 }
  0xbe   : > { %v2960_v36 = vpop.f32.mrf.mxu2 }
  0xc0   : > { %v2962_v38 = vpop.f32.mrf.mxu1  ;;  %v2968_v43 = vpop.f32.mrf.mxu3 }
  0xc3   : > { %v2966_v42 = vpop.f32.mrf.mxu0  ;;  %2536 = vmatmul.msk.bf16.gmra.mxu1 %vm283_vm2, %v214_v37  ;;  %2555 = vmatmul.msk.bf16.gmra.mxu2 %vm283_vm2, %v2884_v57 }
  0xc5   : > { %2576 = vmatmul.msk.bf16.gmra.mxu3 %vm283_vm2, %v2971_v44 }
  0xc6   : > { %2593 = vmatmul.msk.bf16.gmra.mxu0 %vm283_vm2, %v1138_v39  ;;  %v2976_v45 = vpop.f32.mrf.mxu2  ;;  %v3019_v39 = vpack.c.bf16 %v869_v34, %v868_v33  ;;  %v871_v33 = vld [vmem:[%s2759_s25 + $0xca] sm:$0xff] }
  0xc8   : > { %v2980_v46 = vpop.f32.mrf.mxu1  ;;  %v970_v48 = vpop.f32.mrf.mxu3 }
  0xcb   : > { %v2982_v47 = vpop.f32.mrf.mxu0 }
  0xce   : > { %v2988_v54 = vpop.f32.mrf.mxu2 }
  0xd0   : > { %v2990_v57 = vpop.f32.mrf.mxu1  ;;  %v972_v3 = vpop.f32.mrf.mxu3 }
  0xd3   : > { %v2994_v1 = vpop.f32.mrf.mxu0  ;;  %2537 = vmatmul.msk.bf16.gmra.mxu1 %vm283_vm2, %v215_v55  ;;  %2556 = vmatmul.msk.bf16.gmra.mxu2 %vm283_vm2, %v2913_v11  ;;  %v216_v11 = vpack.c.bf16 %v189_v18, %v188_v17  ;;  %v1115_v17 = vld [vmem:[%s2759_s25 + $0xab] sm:$0xff] }
  0xd5   : > { %2577 = vmatmul.msk.bf16.gmra.mxu3 %vm283_vm2, %v2997_v6 }
  0xd6   : > { %2594 = vmatmul.msk.bf16.gmra.mxu0 %vm283_vm2, %v1139_v62  ;;  %v3002_v7 = vpop.f32.mrf.mxu2  ;;  %v190_v62 = vld [vmem:[%s2759_s25 + $0x90] sm:$0xff] }
  0xd7   : > { %v217_v20 = vpack.c.bf16 %v191_v63, %v190_v62 }
  0xd8   : > { %v3006_v8 = vpop.f32.mrf.mxu1  ;;  %v975_v16 = vpop.f32.mrf.mxu3 }
  0xdb   : > { %v3008_v15 = vpop.f32.mrf.mxu0 }
  0xde   : > { %v3014_v23 = vpop.f32.mrf.mxu2 }
  0xe0   : > { %v510_v24 = vpop.f32.mrf.mxu1  ;;  %v977_v37 = vpop.f32.mrf.mxu3 }
  0xe1   : > { %v511_v40 = vadd.f32 %v510_v24, %v2881_v56 }
  0xe3   : > { %v1218_v35 = vpop.f32.mrf.mxu0  ;;  %2538 = vmatmul.msk.bf16.gmra.mxu1 %vm283_vm2, %v216_v11  ;;  %2557 = vmatmul.msk.bf16.gmra.mxu2 %vm283_vm2, %v2942_v27  ;;  %v1114_v27 = vld [vmem:[%s2759_s25 + $0xa3] sm:$0xff] }
  0xe4   : > { %v1141_v24 = vpack.c.bf16 %v1115_v17, %v1114_v27  ;;  %v192_v27 = vld [vmem:[%s2759_s25 + $0xa0] sm:$0xff]  ;;  %v193_v17 = vld [vmem:[%s2759_s25 + $0xa8] sm:$0xff] }
  0xe5   : > { %2578 = vmatmul.msk.bf16.gmra.mxu3 %vm283_vm2, %v3019_v39 }
  0xe6   : > { %2595 = vmatmul.msk.bf16.gmra.mxu0 %vm283_vm2, %v1140_v32  ;;  %v722_v41 = vpop.f32.mrf.mxu2  ;;  %v870_v32 = vld [vmem:[%s2759_s25 + $0xc2] sm:$0xff] }
  0xe7   : > { %v812_v49 = vadd.f32 %v722_v41, %v511_v40 }
  0xe8   : > { %v512_v50 = vpop.f32.mrf.mxu1  ;;  %v980_v55 = vpop.f32.mrf.mxu3 }
  0xe9   : > { %v1060_v53 = vadd.f32 %v970_v48, %v812_v49  ;;  %v513_v18 = vadd.f32 %v512_v50, %v2894_v60 }
  0xeb   : > { %v1220_v51 = vpop.f32.mrf.mxu0  ;;  %v3029_v0 = vadd.f32 %v1218_v35, %v1060_v53  ;;  %v3037_v35 = vpack.c.bf16 %v871_v33, %v870_v32  ;;  %v872_v32 = vld [vmem:[%s2759_s25 + $0xd2] sm:$0xff]  ;;  %v873_v33 = vld [vmem:[%s2759_s25 + $0xda] sm:$0xff] }
  0xee   : > { %v724_v56 = vpop.f32.mrf.mxu2 }
  0xef   : > { %v813_v22 = vadd.f32 %v724_v56, %v513_v18  ;;  %v1116_v18 = vld [vmem:[%s2759_s25 + $0xb3] sm:$0xff] }
  0xf0   : > { %v515_v11 = vpop.f32.mrf.mxu1  ;;  %v982_v48 = vpop.f32.mrf.mxu3 }
  0xf1   : > { %v1061_v40 = vadd.f32 %v972_v3, %v813_v22  ;;  %v516_v41 = vadd.f32 %v515_v11, %v2908_v9 }
  0xf3   : > { %v1223_v34 = vpop.f32.mrf.mxu0  ;;  %2539 = vmatmul.msk.bf16.gmra.mxu1 %vm283_vm2, %v217_v20  ;;  %2558 = vmatmul.msk.bf16.gmra.mxu2 %vm283_vm2, %v2971_v44  ;;  %v3042_v60 = vadd.f32 %v1220_v51, %v1061_v40  ;;  %v1117_v51 = vld [vmem:[%s2759_s25 + $0xbb] sm:$0xff]  ;;  %v218_v20 = vpack.c.bf16 %v193_v17, %v192_v27 }
  0xf5   : > { %2579 = vmatmul.msk.bf16.gmra.mxu3 %vm283_vm2, %v3037_v35 }
  0xf6   : > { %2596 = vmatmul.msk.bf16.gmra.mxu0 %vm283_vm2, %v1141_v24  ;;  %v727_v49 = vpop.f32.mrf.mxu2  ;;  %v1142_v24 = vpack.c.bf16 %v1117_v51, %v1116_v18  ;;  %v194_v18 = vld [vmem:[%s2759_s25 + $0xb0] sm:$0xff]  ;;  %v195_v51 = vld [vmem:[%s2759_s25 + $0xb8] sm:$0xff] }
  0xf7   : > { %v814_v3 = vadd.f32 %v727_v49, %v516_v41 }
  0xf8   : > { %v517_v50 = vpop.f32.mrf.mxu1  ;;  %v985_v63 = vpop.f32.mrf.mxu3 }
  0xf9   : > { %v1062_v62 = vadd.f32 %v975_v16, %v814_v3  ;;  %v518_v56 = vadd.f32 %v517_v50, %v2923_v13 }
  0xfb   : > { %v1225_v53 = vpop.f32.mrf.mxu0  ;;  %v3049_v44 = vadd.f32 %v1223_v34, %v1062_v62  ;;  %v3057_v34 = vpack.c.bf16 %v873_v33, %v872_v32  ;;  %v874_v32 = vld [vmem:[%s2759_s25 + $0xe2] sm:$0xff]  ;;  %v875_v33 = vld [vmem:[%s2759_s25 + $0xea] sm:$0xff] }
  0xfe   : > { %v729_v9 = vpop.f32.mrf.mxu2 }
  0xff   : > { %v815_v22 = vadd.f32 %v729_v9, %v518_v56  ;;  %v1118_v56 = vld [vmem:[%s2759_s25 + $0xc3] sm:$0xff] }
 0x100   : > { %v520_v11 = vpop.f32.mrf.mxu1  ;;  %v987_v16 = vpop.f32.mrf.mxu3 }
 0x101   : > { %v1063_v41 = vadd.f32 %v977_v37, %v815_v22  ;;  %v521_v49 = vadd.f32 %v520_v11, %v2937_v25 }
 0x103   : > { %v1228_v40 = vpop.f32.mrf.mxu0  ;;  %2540 = vmatmul.msk.bf16.gmra.mxu1 %vm283_vm2, %v218_v20  ;;  %2559 = vmatmul.msk.bf16.gmra.mxu2 %vm283_vm2, %v2997_v6  ;;  %v3062_v13 = vadd.f32 %v1225_v53, %v1063_v41  ;;  %v1119_v53 = vld [vmem:[%s2759_s25 + $0xcb] sm:$0xff]  ;;  %v219_v20 = vpack.c.bf16 %v195_v51, %v194_v18 }
 0x105   : > { %2580 = vmatmul.msk.bf16.gmra.mxu3 %vm283_vm2, %v3057_v34 }
 0x106   : > { %2597 = vmatmul.msk.bf16.gmra.mxu0 %vm283_vm2, %v1142_v24  ;;  %v732_v3 = vpop.f32.mrf.mxu2  ;;  %v1143_v24 = vpack.c.bf16 %v1119_v53, %v1118_v56  ;;  %v196_v56 = vld [vmem:[%s2759_s25 + $0xc0] sm:$0xff]  ;;  %v197_v53 = vld [vmem:[%s2759_s25 + $0xc8] sm:$0xff] }
 0x107   : > { %v816_v37 = vadd.f32 %v732_v3, %v521_v49 }
 0x108   : > { %v522_v50 = vpop.f32.mrf.mxu1  ;;  %v990_v17 = vpop.f32.mrf.mxu3 }
 0x109   : > { %v1064_v27 = vadd.f32 %v980_v55, %v816_v37  ;;  %v523_v9 = vadd.f32 %v522_v50, %v2952_v30 }
 0x10b   : > { %v1230_v62 = vpop.f32.mrf.mxu0  ;;  %v3069_v6 = vadd.f32 %v1228_v40, %v1064_v27  ;;  %v3077_v40 = vpack.c.bf16 %v875_v33, %v874_v32  ;;  %v876_v32 = vld [vmem:[%s2759_s25 + $0xf2] sm:$0xff]  ;;  %v877_v33 = vld [vmem:[%s2759_s25 + $0xfa] sm:$0xff] }
 0x10e   : > { %v734_v25 = vpop.f32.mrf.mxu2 }
 0x10f   : > { %v817_v22 = vadd.f32 %v734_v25, %v523_v9  ;;  %v1120_v9 = vld [vmem:[%s2759_s25 + $0xd3] sm:$0xff] }
 0x110   : > { %v525_v11 = vpop.f32.mrf.mxu1  ;;  %v992_v55 = vpop.f32.mrf.mxu3 }
 0x111   : > { %v1065_v49 = vadd.f32 %v982_v48, %v817_v22  ;;  %v526_v3 = vadd.f32 %v525_v11, %v2966_v42 }
 0x113   : > { %v1233_v41 = vpop.f32.mrf.mxu0  ;;  %2541 = vmatmul.msk.bf16.gmra.mxu1 %vm283_vm2, %v219_v20  ;;  %2560 = vmatmul.msk.bf16.gmra.mxu2 %vm283_vm2, %v3019_v39  ;;  %v3082_v30 = vadd.f32 %v1230_v62, %v1065_v49  ;;  %v1121_v62 = vld [vmem:[%s2759_s25 + $0xdb] sm:$0xff]  ;;  %v220_v20 = vpack.c.bf16 %v197_v53, %v196_v56 }
 0x115   : > { %2581 = vmatmul.msk.bf16.gmra.mxu3 %vm283_vm2, %v3077_v40 }
 0x116   : > { %2598 = vmatmul.msk.bf16.gmra.mxu0 %vm283_vm2, %v1143_v24  ;;  %v737_v37 = vpop.f32.mrf.mxu2  ;;  %v1144_v24 = vpack.c.bf16 %v1121_v62, %v1120_v9  ;;  %v198_v9 = vld [vmem:[%s2759_s25 + $0xd0] sm:$0xff]  ;;  %v199_v62 = vld [vmem:[%s2759_s25 + $0xd8] sm:$0xff] }
 0x117   : > { %v818_v48 = vadd.f32 %v737_v37, %v526_v3 }
 0x118   : > { %v527_v50 = vpop.f32.mrf.mxu1  ;;  %v995_v51 = vpop.f32.mrf.mxu3 }
 0x119   : > { %v1066_v18 = vadd.f32 %v985_v63, %v818_v48  ;;  %v528_v25 = vadd.f32 %v527_v50, %v2982_v47 }
 0x11b   : > { %v1235_v27 = vpop.f32.mrf.mxu0  ;;  %v3089_v39 = vadd.f32 %v1233_v41, %v1066_v18  ;;  %v3097_v41 = vpack.c.bf16 %v877_v33, %v876_v32  ;;  %v878_v32 = vld [vmem:[%s2759_s25 + $0x102] sm:$0xff]  ;;  %v879_v33 = vld [vmem:[%s2759_s25 + $0x10a] sm:$0xff] }
 0x11e   : > { %v739_v42 = vpop.f32.mrf.mxu2 }
 0x11f   : > { %v819_v22 = vadd.f32 %v739_v42, %v528_v25  ;;  %v1122_v25 = vld [vmem:[%s2759_s25 + $0xe3] sm:$0xff] }
 0x120   : > { %v530_v11 = vpop.f32.mrf.mxu1  ;;  %v997_v63 = vpop.f32.mrf.mxu3 }
 0x121   : > { %v1067_v3 = vadd.f32 %v987_v16, %v819_v22  ;;  %v531_v37 = vadd.f32 %v530_v11, %v2994_v1 }
 0x123   : > { %v1238_v49 = vpop.f32.mrf.mxu0  ;;  %2542 = vmatmul.msk.bf16.gmra.mxu1 %vm283_vm2, %v220_v20  ;;  %2561 = vmatmul.msk.bf16.gmra.mxu2 %vm283_vm2, %v3037_v35  ;;  %v3102_v47 = vadd.f32 %v1235_v27, %v1067_v3  ;;  %v1123_v27 = vld [vmem:[%s2759_s25 + $0xeb] sm:$0xff]  ;;  %v221_v20 = vpack.c.bf16 %v199_v62, %v198_v9 }
 0x125   : > { %2582 = vmatmul.msk.bf16.gmra.mxu3 %vm283_vm2, %v3097_v41 }
 0x126   : > { %2599 = vmatmul.msk.bf16.gmra.mxu0 %vm283_vm2, %v1144_v24  ;;  %v742_v48 = vpop.f32.mrf.mxu2  ;;  %v1145_v24 = vpack.c.bf16 %v1123_v27, %v1122_v25  ;;  %v200_v25 = vld [vmem:[%s2759_s25 + $0xe0] sm:$0xff]  ;;  %v201_v27 = vld [vmem:[%s2759_s25 + $0xe8] sm:$0xff] }
 0x127   : > { %v820_v16 = vadd.f32 %v742_v48, %v531_v37 }
 0x128   : > { %v532_v50 = vpop.f32.mrf.mxu1  ;;  %v1000_v53 = vpop.f32.mrf.mxu3 }
 0x129   : > { %v1068_v56 = vadd.f32 %v990_v17, %v820_v16  ;;  %v533_v42 = vadd.f32 %v532_v50, %v3008_v15 }
 0x12b   : > { %v1240_v18 = vpop.f32.mrf.mxu0  ;;  %v3109_v35 = vadd.f32 %v1238_v49, %v1068_v56  ;;  %v3117_v49 = vpack.c.bf16 %v879_v33, %v878_v32  ;;  %v880_v32 = vld [vmem:[%s2759_s25 + $0x112] sm:$0xff]  ;;  %v881_v33 = vld [vmem:[%s2759_s25 + $0x11a] sm:$0xff] }
 0x12e   : > { %v744_v1 = vpop.f32.mrf.mxu2 }
 0x12f   : > { %v821_v22 = vadd.f32 %v744_v1, %v533_v42  ;;  %v1124_v42 = vld [vmem:[%s2759_s25 + $0xf3] sm:$0xff] }
 0x130   : > { %v535_v11 = vpop.f32.mrf.mxu1  ;;  %v1002_v17 = vpop.f32.mrf.mxu3 }
 0x131   : > { %v1069_v37 = vadd.f32 %v992_v55, %v821_v22  ;;  %v536_v48 = vadd.f32 %v535_v11, %v2877_v52 }
 0x133   : > { %v1243_v3 = vpop.f32.mrf.mxu0  ;;  %2543 = vmatmul.msk.bf16.gmra.mxu1 %vm283_vm2, %v221_v20  ;;  %2562 = vmatmul.msk.bf16.gmra.mxu2 %vm283_vm2, %v3057_v34  ;;  %v3122_v15 = vadd.f32 %v1240_v18, %v1069_v37  ;;  %v1125_v18 = vld [vmem:[%s2759_s25 + $0xfb] sm:$0xff]  ;;  %v222_v20 = vpack.c.bf16 %v201_v27, %v200_v25 }
 0x135   : > { %2583 = vmatmul.msk.bf16.gmra.mxu3 %vm283_vm2, %v3117_v49 }
 0x136   : > { %2600 = vmatmul.msk.bf16.gmra.mxu0 %vm283_vm2, %v1145_v24  ;;  %v747_v16 = vpop.f32.mrf.mxu2  ;;  %v1146_v24 = vpack.c.bf16 %v1125_v18, %v1124_v42  ;;  %v202_v42 = vld [vmem:[%s2759_s25 + $0xf0] sm:$0xff]  ;;  %v203_v18 = vld [vmem:[%s2759_s25 + $0xf8] sm:$0xff] }
 0x137   : > { %v822_v55 = vadd.f32 %v747_v16, %v536_v48 }
 0x138   : > { %v537_v50 = vpop.f32.mrf.mxu1  ;;  %v1005_v62 = vpop.f32.mrf.mxu3 }
 0x139   : > { %v1070_v9 = vadd.f32 %v995_v51, %v822_v55  ;;  %v538_v1 = vadd.f32 %v537_v50, %v2892_v59 }
 0x13b   : > { %v1245_v56 = vpop.f32.mrf.mxu0  ;;  %v3129_v34 = vadd.f32 %v1243_v3, %v1070_v9  ;;  %v3137_v3 = vpack.c.bf16 %v881_v33, %v880_v32  ;;  %v882_v32 = vld [vmem:[%s2759_s25 + $0x122] sm:$0xff]  ;;  %v883_v33 = vld [vmem:[%s2759_s25 + $0x12a] sm:$0xff] }
 0x13e   : > { %v749_v52 = vpop.f32.mrf.mxu2 }
 0x13f   : > { %v823_v22 = vadd.f32 %v749_v52, %v538_v1  ;;  %v1126_v1 = vld [vmem:[%s2759_s25 + $0x103] sm:$0xff] }
 0x140   : > { %v540_v11 = vpop.f32.mrf.mxu1  ;;  %v1007_v51 = vpop.f32.mrf.mxu3 }
 0x141   : > { %v1071_v48 = vadd.f32 %v997_v63, %v823_v22  ;;  %v541_v16 = vadd.f32 %v540_v11, %v2904_v4 }
 0x143   : > { %v1248_v37 = vpop.f32.mrf.mxu0  ;;  %2544 = vmatmul.msk.bf16.gmra.mxu1 %vm283_vm2, %v222_v20  ;;  %2563 = vmatmul.msk.bf16.gmra.mxu2 %vm283_vm2, %v3077_v40  ;;  %v3142_v59 = vadd.f32 %v1245_v56, %v1071_v48  ;;  %v1127_v56 = vld [vmem:[%s2759_s25 + $0x10b] sm:$0xff]  ;;  %v223_v20 = vpack.c.bf16 %v203_v18, %v202_v42 }
 0x145   : > { %2584 = vmatmul.msk.bf16.gmra.mxu3 %vm283_vm2, %v3137_v3 }
 0x146   : > { %2601 = vmatmul.msk.bf16.gmra.mxu0 %vm283_vm2, %v1146_v24  ;;  %v752_v55 = vpop.f32.mrf.mxu2  ;;  %v1147_v24 = vpack.c.bf16 %v1127_v56, %v1126_v1  ;;  %v204_v1 = vld [vmem:[%s2759_s25 + $0x100] sm:$0xff]  ;;  %v205_v56 = vld [vmem:[%s2759_s25 + $0x108] sm:$0xff] }
 0x147   : > { %v824_v63 = vadd.f32 %v752_v55, %v541_v16 }
 0x148   : > { %v542_v50 = vpop.f32.mrf.mxu1  ;;  %v1010_v27 = vpop.f32.mrf.mxu3 }
 0x149   : > { %v1072_v25 = vadd.f32 %v1000_v53, %v824_v63  ;;  %v543_v52 = vadd.f32 %v542_v50, %v2921_v12 }
 0x14b   : > { %v1250_v9 = vpop.f32.mrf.mxu0  ;;  %v3149_v40 = vadd.f32 %v1248_v37, %v1072_v25  ;;  %v901_v37 = vpack.c.bf16 %v883_v33, %v882_v32  ;;  %v1840_v32 = vld [vmem:[%s2759_s25 + $0x25] sm:$0xff]  ;;  %v1841_v33 = vld [vmem:[%s2759_s25 + $0x2d] sm:$0xff] }
 0x14e   : > { %v754_v4 = vpop.f32.mrf.mxu2 }
 0x14f   : > { %v825_v22 = vadd.f32 %v754_v4, %v543_v52  ;;  %v1129_v4 = vld [vmem:[%s2759_s25 + $0x11b] sm:$0xff] }
 0x150   : > { %v545_v11 = vpop.f32.mrf.mxu1  ;;  %v1012_v53 = vpop.f32.mrf.mxu3 }
 0x151   : > { %v1073_v16 = vadd.f32 %v1002_v17, %v825_v22  ;;  %v546_v55 = vadd.f32 %v545_v11, %v2933_v21  ;;  %v224_v21 = vpack.c.bf16 %v205_v56, %v204_v1  ;;  %v206_v56 = vld [vmem:[%s2759_s25 + $0x110] sm:$0xff] }
 0x153   : > { %v1253_v48 = vpop.f32.mrf.mxu0  ;;  %2545 = vmatmul.msk.bf16.gmra.mxu1 %vm283_vm2, %v223_v20  ;;  %2564 = vmatmul.msk.bf16.gmra.mxu2 %vm283_vm2, %v3097_v41  ;;  %v3160_v12 = vadd.f32 %v1250_v9, %v1073_v16  ;;  %v1128_v41 = vld [vmem:[%s2759_s25 + $0x113] sm:$0xff] }
 0x155   : > { %2585 = vmatmul.msk.bf16.gmra.mxu3 %vm283_vm2, %v901_v37 }
 0x156   : > { %2602 = vmatmul.msk.bf16.gmra.mxu0 %vm283_vm2, %v1147_v24  ;;  %v757_v63 = vpop.f32.mrf.mxu2  ;;  %v1148_v24 = vpack.c.bf16 %v1129_v4, %v1128_v41  ;;  %v207_v41 = vld [vmem:[%s2759_s25 + $0x118] sm:$0xff] }
 0x157   : > { %v826_v17 = vadd.f32 %v757_v63, %v546_v55 }
 0x158   : > { %v547_v50 = vpop.f32.mrf.mxu1  ;;  %v1015_v18 = vpop.f32.mrf.mxu3 }
 0x159   : > { %v1074_v42 = vadd.f32 %v1005_v62, %v826_v17  ;;  %v548_v9 = vadd.f32 %v547_v50, %v2950_v29 }
 0x15b   : > { %v1255_v25 = vpop.f32.mrf.mxu0  ;;  %v3166_v52 = vadd.f32 %v1253_v48, %v1074_v42  ;;  %v1876_v48 = vpack.c.bf16 %v1841_v33, %v1840_v32  ;;  %v1843_v32 = vld [vmem:[%s2759_s25 + $0x3d] sm:$0xff] }
 0x15e   : > { %v759_v20 = vpop.f32.mrf.mxu2 }
 0x15f   : > { %v827_v22 = vadd.f32 %v759_v20, %v548_v9  ;;  %v1131_v9 = vld [vmem:[%s2759_s25 + $0x12b] sm:$0xff] }
 0x160   : > { %v550_v11 = vpop.f32.mrf.mxu1  ;;  %v1017_v62 = vpop.f32.mrf.mxu3 }
 0x161   : > { %v1075_v37 = vadd.f32 %v1007_v51, %v827_v22  ;;  %v551_v55 = vadd.f32 %v550_v11, %v2962_v38  ;;  %v225_v38 = vpack.c.bf16 %v207_v41, %v206_v56  ;;  %v1344_v56 = vld [vmem:[%s2759_s25 + $0x14] sm:$0xff]  ;;  %v1592_v41 = vld [vmem:[%s2759_s25 + $0x24] sm:$0xff] }
 0x163   : > { %v1258_v16 = vpop.f32.mrf.mxu0  ;;  %2546 = vmatmul.msk.bf16.gmra.mxu1 %vm283_vm2, %v224_v21  ;;  %2565 = vmatmul.msk.bf16.gmra.mxu2 %vm283_vm2, %v3117_v49  ;;  %v3177_v29 = vadd.f32 %v1255_v25, %v1075_v37  ;;  %v1130_v49 = vld [vmem:[%s2759_s25 + $0x123] sm:$0xff] }
 0x164   : > { %v1149_v11 = vpack.c.bf16 %v1131_v9, %v1130_v49  ;;  %v1593_v9 = vld [vmem:[%s2759_s25 + $0x2c] sm:$0xff] }
 0x165   : > { %2644 = vmatmul.msk.bf16.vlgmr.msra.gmra.mxu3 %vm283_vm2, %v1876_v48 }
 0x166   : > { %2603 = vmatmul.msk.bf16.gmra.mxu0 %vm283_vm2, %v1148_v24  ;;  %v762_v63 = vpop.f32.mrf.mxu2  ;;  %v1842_v24 = vld [vmem:[%s2759_s25 + $0x35] sm:$0xff] }
 0x167   : > { %v828_v51 = vadd.f32 %v762_v63, %v551_v55 }
 0x168   : > { %v552_v17 = vpop.f32.mrf.mxu1  ;;  %v1020_v1 = vpop.f32.mrf.mxu3 }
 0x169   : > { %v1076_v42 = vadd.f32 %v1010_v27, %v828_v51  ;;  %v553_v25 = vadd.f32 %v552_v17, %v2980_v46 }
 0x16b   : > { %v1260_v50 = vpop.f32.mrf.mxu0  ;;  %v3183_v4 = vadd.f32 %v1258_v16, %v1076_v42  ;;  %v1877_v16 = vpack.c.bf16 %v1843_v32, %v1842_v24  ;;  %v1845_v32 = vld [vmem:[%s2759_s25 + $0x4d] sm:$0xff] }
 0x16e   : > { %v764_v20 = vpop.f32.mrf.mxu2 }
 0x16f   : > { %v829_v21 = vadd.f32 %v764_v20, %v553_v25  ;;  %v2089_v25 = vld [vmem:[%s2759_s25 + $0x2e] sm:$0xff] }
 0x170   : > { %v555_v22 = vpop.f32.mrf.mxu1  ;;  %v1022_v27 = vpop.f32.mrf.mxu3 }
 0x171   : > { %v1077_v37 = vadd.f32 %v1012_v53, %v829_v21  ;;  %v556_v48 = vadd.f32 %v555_v22, %v2990_v57 }
 0x173   : > { %v1263_v33 = vpop.f32.mrf.mxu0  ;;  %2547 = vmatmul.msk.bf16.gmra.mxu1 %vm283_vm2, %v225_v38  ;;  %2566 = vmatmul.msk.bf16.gmra.mxu2 %vm283_vm2, %v3137_v3  ;;  %v3194_v46 = vadd.f32 %v1260_v50, %v1077_v37  ;;  %v1345_v3 = vld [vmem:[%s2759_s25 + $0x1c] sm:$0xff]  ;;  %v2088_v50 = vld [vmem:[%s2759_s25 + $0x26] sm:$0xff] }
 0x174   : > { %v1380_v38 = vpack.c.bf16 %v1345_v3, %v1344_v56  ;;  %v2124_v24 = vpack.c.bf16 %v2089_v25, %v2088_v50  ;;  %v1595_v50 = vld [vmem:[%s2759_s25 + $0x3c] sm:$0xff] }
 0x175   : > { %2645 = vmatmul.msk.bf16.gmra.mxu3 %vm283_vm2, %v1877_v16  ;;  %v2090_v25 = vld [vmem:[%s2759_s25 + $0x36] sm:$0xff] }
 0x176   : > { %2604 = vmatmul.msk.bf16.gmra.mxu0 %vm283_vm2, %v1149_v11  ;;  %v767_v55 = vpop.f32.mrf.mxu2  ;;  %v1628_v11 = vpack.c.bf16 %v1593_v9, %v1592_v41  ;;  %v1594_v41 = vld [vmem:[%s2759_s25 + $0x34] sm:$0xff] }
 0x177   : > { %v830_v53 = vadd.f32 %v767_v55, %v556_v48 }
 0x178   : > { %v557_v63 = vpop.f32.mrf.mxu1  ;;  %v1025_v42 = vpop.f32.mrf.mxu3 }
 0x179   : > { %v1078_v17 = vadd.f32 %v1015_v18, %v830_v53  ;;  %v558_v57 = vadd.f32 %v557_v63, %v3006_v8  ;;  %v1844_v18 = vld [vmem:[%s2759_s25 + $0x45] sm:$0xff] }
 0x17b   : > { %v1265_v51 = vpop.f32.mrf.mxu0  ;;  %v3201_v49 = vadd.f32 %v1263_v33, %v1078_v17  ;;  %v1878_v33 = vpack.c.bf16 %v1845_v32, %v1844_v18  ;;  %v1847_v18 = vld [vmem:[%s2759_s25 + $0x5d] sm:$0xff] }
 0x17e   : > { %v769_v20 = vpop.f32.mrf.mxu2 }
 0x17f   : > { %v831_v21 = vadd.f32 %v769_v20, %v558_v57  ;;  %v2091_v57 = vld [vmem:[%s2759_s25 + $0x3e] sm:$0xff] }
 0x180   : > { %v560_v22 = vpop.f32.mrf.mxu1  ;;  %v1027_v48 = vpop.f32.mrf.mxu3 }
 0x181   : > { %v1079_v16 = vadd.f32 %v1017_v62, %v831_v21  ;;  %v561_v55 = vadd.f32 %v560_v22, %v2888_v58  ;;  %v1629_v21 = vpack.c.bf16 %v1595_v50, %v1594_v41  ;;  %v2125_v22 = vpack.c.bf16 %v2091_v57, %v2090_v25  ;;  %v1597_v50 = vld [vmem:[%s2759_s25 + $0x4c] sm:$0xff] }
 0x182   : > { %v2092_v25 = vld [vmem:[%s2759_s25 + $0x46] sm:$0xff]  ;;  %v2093_v57 = vld [vmem:[%s2759_s25 + $0x4e] sm:$0xff] }
 0x183   : > { %v1268_v37 = vpop.f32.mrf.mxu0  ;;  %2606 = vmatmul.msk.bf16.vlgmr.msra.gmra.mxu1 %vm283_vm2, %v1380_v38  ;;  %2625 = vmatmul.msk.bf16.vlgmr.msra.gmra.mxu2 %vm283_vm2, %v1628_v11  ;;  %v3212_v8 = vadd.f32 %v1265_v51, %v1079_v16 }
 0x185   : > { %2646 = vmatmul.msk.bf16.gmra.mxu3 %vm283_vm2, %v1878_v33 }
 0x186   : > { %2663 = vmatmul.msk.bf16.vlgmr.msra.gmra.mxu0 %vm283_vm2, %v2124_v24  ;;  %v772_v53 = vpop.f32.mrf.mxu2  ;;  %v1846_v24 = vld [vmem:[%s2759_s25 + $0x55] sm:$0xff] }
 0x187   : > { %v832_v63 = vadd.f32 %v772_v53, %v561_v55 }
 0x188   : > { %v562_v62 = vpop.f32.mrf.mxu1  ;;  %v1030_v3 = vpop.f32.mrf.mxu3 }
 0x189   : > { %v1080_v56 = vadd.f32 %v1020_v1, %v832_v63  ;;  %v563_v51 = vadd.f32 %v562_v62, %v2902_v2 }
 0x18b   : > { %v1270_v17 = vpop.f32.mrf.mxu0  ;;  %v3217_v9 = vadd.f32 %v1268_v37, %v1080_v56  ;;  %v1879_v37 = vpack.c.bf16 %v1847_v18, %v1846_v24  ;;  %v1596_v56 = vld [vmem:[%s2759_s25 + $0x44] sm:$0xff]  ;;  %v1849_v24 = vld [vmem:[%s2759_s25 + $0x6d] sm:$0xff] }
 0x18e   : > { %v774_v20 = vpop.f32.mrf.mxu2 }
 0x18f   : > { %v833_v58 = vadd.f32 %v774_v20, %v563_v51 }
 0x190   : > { %v565_v38 = vpop.f32.mrf.mxu1  ;;  %v1032_v1 = vpop.f32.mrf.mxu3 }
 0x191   : > { %v1081_v16 = vadd.f32 %v1022_v27, %v833_v58  ;;  %v566_v33 = vadd.f32 %v565_v38, %v2917_v5  ;;  %v1630_v58 = vpack.c.bf16 %v1597_v50, %v1596_v56  ;;  %v2126_v38 = vpack.c.bf16 %v2093_v57, %v2092_v25  ;;  %v1599_v50 = vld [vmem:[%s2759_s25 + $0x5c] sm:$0xff] }
 0x192   : > { %v2094_v25 = vld [vmem:[%s2759_s25 + $0x56] sm:$0xff]  ;;  %v2095_v57 = vld [vmem:[%s2759_s25 + $0x5e] sm:$0xff] }
 0x193   : > { %v1273_v32 = vpop.f32.mrf.mxu0  ;;  %2607 = vmatmul.msk.bf16.gmra.mxu1 %vm283_vm2, %v1628_v11  ;;  %2626 = vmatmul.msk.bf16.gmra.mxu2 %vm283_vm2, %v1629_v21  ;;  %v3228_v2 = vadd.f32 %v1270_v17, %v1081_v16 }
 0x195   : > { %2647 = vmatmul.msk.bf16.gmra.mxu3 %vm283_vm2, %v1879_v37 }
 0x196   : > { %2664 = vmatmul.msk.bf16.gmra.mxu0 %vm283_vm2, %v2125_v22  ;;  %v777_v55 = vpop.f32.mrf.mxu2  ;;  %v1848_v22 = vld [vmem:[%s2759_s25 + $0x65] sm:$0xff] }
 0x197   : > { %v834_v53 = vadd.f32 %v777_v55, %v566_v33 }
 0x198   : > { %v567_v27 = vpop.f32.mrf.mxu1  ;;  %v1035_v62 = vpop.f32.mrf.mxu3 }
 0x199   : > { %v1082_v11 = vadd.f32 %v1025_v42, %v834_v53  ;;  %v568_v17 = vadd.f32 %v567_v27, %v2931_v19 }
 0x19b   : > { %v1275_v63 = vpop.f32.mrf.mxu0  ;;  %v3233_v41 = vadd.f32 %v1273_v32, %v1082_v11  ;;  %v1880_v32 = vpack.c.bf16 %v1849_v24, %v1848_v22  ;;  %v1598_v11 = vld [vmem:[%s2759_s25 + $0x54] sm:$0xff]  ;;  %v1851_v22 = vld [vmem:[%s2759_s25 + $0x7d] sm:$0xff] }
 0x19e   : > { %v779_v51 = vpop.f32.mrf.mxu2 }
 0x19f   : > { %v835_v5 = vadd.f32 %v779_v51, %v568_v17 }
 0x1a0   : > { %v570_v20 = vpop.f32.mrf.mxu1  ;;  %v1037_v42 = vpop.f32.mrf.mxu3 }
 0x1a1   : > { %v1083_v16 = vadd.f32 %v1027_v48, %v835_v5  ;;  %v571_v37 = vadd.f32 %v570_v20, %v2946_v28  ;;  %v1631_v5 = vpack.c.bf16 %v1599_v50, %v1598_v11  ;;  %v2127_v20 = vpack.c.bf16 %v2095_v57, %v2094_v25  ;;  %v1601_v50 = vld [vmem:[%s2759_s25 + $0x6c] sm:$0xff] }
 0x1a2   : > { %v2096_v25 = vld [vmem:[%s2759_s25 + $0x66] sm:$0xff]  ;;  %v2097_v57 = vld [vmem:[%s2759_s25 + $0x6e] sm:$0xff] }
 0x1a3   : > { %v1278_v18 = vpop.f32.mrf.mxu0  ;;  %2608 = vmatmul.msk.bf16.gmra.mxu1 %vm283_vm2, %v1629_v21  ;;  %2627 = vmatmul.msk.bf16.gmra.mxu2 %vm283_vm2, %v1630_v58  ;;  %v3244_v19 = vadd.f32 %v1275_v63, %v1083_v16 }
 0x1a5   : > { %2648 = vmatmul.msk.bf16.gmra.mxu3 %vm283_vm2, %v1880_v32 }
 0x1a6   : > { %2665 = vmatmul.msk.bf16.gmra.mxu0 %vm283_vm2, %v2126_v38  ;;  %v782_v33 = vpop.f32.mrf.mxu2  ;;  %v1850_v38 = vld [vmem:[%s2759_s25 + $0x75] sm:$0xff] }
 0x1a7   : > { %v836_v55 = vadd.f32 %v782_v33, %v571_v37 }
 0x1a8   : > { %v572_v48 = vpop.f32.mrf.mxu1  ;;  %v1040_v27 = vpop.f32.mrf.mxu3 }
 0x1a9   : > { %v1084_v21 = vadd.f32 %v1030_v3, %v836_v55  ;;  %v573_v63 = vadd.f32 %v572_v48, %v2960_v36 }
 0x1ab   : > { %v1280_v53 = vpop.f32.mrf.mxu0  ;;  %v3249_v56 = vadd.f32 %v1278_v18, %v1084_v21  ;;  %v1881_v18 = vpack.c.bf16 %v1851_v22, %v1850_v38  ;;  %v1600_v21 = vld [vmem:[%s2759_s25 + $0x64] sm:$0xff]  ;;  %v1853_v38 = vld [vmem:[%s2759_s25 + $0x8d] sm:$0xff] }
 0x1ae   : > { %v784_v17 = vpop.f32.mrf.mxu2 }
 0x1af   : > { %v837_v28 = vadd.f32 %v784_v17, %v573_v63 }
 0x1b0   : > { %v575_v51 = vpop.f32.mrf.mxu1  ;;  %v1042_v3 = vpop.f32.mrf.mxu3 }
 0x1b1   : > { %v1085_v16 = vadd.f32 %v1032_v1, %v837_v28  ;;  %v576_v32 = vadd.f32 %v575_v51, %v2976_v45  ;;  %v1632_v28 = vpack.c.bf16 %v1601_v50, %v1600_v21  ;;  %v2128_v51 = vpack.c.bf16 %v2097_v57, %v2096_v25  ;;  %v1603_v50 = vld [vmem:[%s2759_s25 + $0x7c] sm:$0xff] }
 0x1b2   : > { %v2098_v25 = vld [vmem:[%s2759_s25 + $0x76] sm:$0xff]  ;;  %v2099_v57 = vld [vmem:[%s2759_s25 + $0x7e] sm:$0xff] }
 0x1b3   : > { %v1283_v24 = vpop.f32.mrf.mxu0  ;;  %2609 = vmatmul.msk.bf16.gmra.mxu1 %vm283_vm2, %v1630_v58  ;;  %2628 = vmatmul.msk.bf16.gmra.mxu2 %vm283_vm2, %v1631_v5  ;;  %v3260_v36 = vadd.f32 %v1280_v53, %v1085_v16 }
 0x1b5   : > { %2649 = vmatmul.msk.bf16.gmra.mxu3 %vm283_vm2, %v1881_v18 }
 0x1b6   : > { %2666 = vmatmul.msk.bf16.gmra.mxu0 %vm283_vm2, %v2127_v20  ;;  %v787_v37 = vpop.f32.mrf.mxu2  ;;  %v1852_v20 = vld [vmem:[%s2759_s25 + $0x85] sm:$0xff] }
 0x1b7   : > { %v838_v33 = vadd.f32 %v787_v37, %v576_v32 }
 0x1b8   : > { %v577_v1 = vpop.f32.mrf.mxu1  ;;  %v1045_v48 = vpop.f32.mrf.mxu3 }
 0x1b9   : > { %v1086_v58 = vadd.f32 %v1035_v62, %v838_v33  ;;  %v578_v53 = vadd.f32 %v577_v1, %v2988_v54 }
 0x1bb   : > { %v1285_v55 = vpop.f32.mrf.mxu0  ;;  %v3265_v11 = vadd.f32 %v1283_v24, %v1086_v58  ;;  %v1882_v24 = vpack.c.bf16 %v1853_v38, %v1852_v20  ;;  %v1602_v58 = vld [vmem:[%s2759_s25 + $0x74] sm:$0xff]  ;;  %v1855_v20 = vld [vmem:[%s2759_s25 + $0x9d] sm:$0xff] }
 0x1be   : > { %v789_v63 = vpop.f32.mrf.mxu2 }
 0x1bf   : > { %v839_v45 = vadd.f32 %v789_v63, %v578_v53 }
 0x1c0   : > { %v580_v17 = vpop.f32.mrf.mxu1  ;;  %v1047_v62 = vpop.f32.mrf.mxu3 }
 0x1c1   : > { %v1087_v16 = vadd.f32 %v1037_v42, %v839_v45  ;;  %v581_v18 = vadd.f32 %v580_v17, %v3002_v7  ;;  %v1633_v45 = vpack.c.bf16 %v1603_v50, %v1602_v58  ;;  %v2129_v17 = vpack.c.bf16 %v2099_v57, %v2098_v25  ;;  %v1605_v50 = vld [vmem:[%s2759_s25 + $0x8c] sm:$0xff] }
 0x1c2   : > { %v2100_v25 = vld [vmem:[%s2759_s25 + $0x86] sm:$0xff]  ;;  %v2101_v57 = vld [vmem:[%s2759_s25 + $0x8e] sm:$0xff] }
 0x1c3   : > { %v1288_v22 = vpop.f32.mrf.mxu0  ;;  %2610 = vmatmul.msk.bf16.gmra.mxu1 %vm283_vm2, %v1631_v5  ;;  %2629 = vmatmul.msk.bf16.gmra.mxu2 %vm283_vm2, %v1632_v28  ;;  %v3276_v54 = vadd.f32 %v1285_v55, %v1087_v16 }
 0x1c5   : > { %2650 = vmatmul.msk.bf16.gmra.mxu3 %vm283_vm2, %v1882_v24 }
 0x1c6   : > { %2667 = vmatmul.msk.bf16.gmra.mxu0 %vm283_vm2, %v2128_v51  ;;  %v792_v32 = vpop.f32.mrf.mxu2  ;;  %v1854_v51 = vld [vmem:[%s2759_s25 + $0x95] sm:$0xff] }
 0x1c7   : > { %v840_v37 = vadd.f32 %v792_v32, %v581_v18 }
 0x1c8   : > { %v582_v42 = vpop.f32.mrf.mxu1  ;;  %v1050_v1 = vpop.f32.mrf.mxu3 }
 0x1c9   : > { %v1088_v5 = vadd.f32 %v1040_v27, %v840_v37  ;;  %v583_v55 = vadd.f32 %v582_v42, %v3014_v23 }
 0x1cb   : > { %v1290_v33 = vpop.f32.mrf.mxu0  ;;  %v3281_v21 = vadd.f32 %v1288_v22, %v1088_v5  ;;  %v1883_v22 = vpack.c.bf16 %v1855_v20, %v1854_v51  ;;  %v1604_v5 = vld [vmem:[%s2759_s25 + $0x84] sm:$0xff]  ;;  %v1857_v51 = vld [vmem:[%s2759_s25 + $0xad] sm:$0xff] }
 0x1ce   : > { %v794_v53 = vpop.f32.mrf.mxu2 }
 0x1cf   : > { %v841_v7 = vadd.f32 %v794_v53, %v583_v55 }
 0x1d0   : > { %v585_v63 = vpop.f32.mrf.mxu1  ;;  %v1052_v27 = vpop.f32.mrf.mxu3 }
 0x1d1   : > { %v1089_v16 = vadd.f32 %v1042_v3, %v841_v7  ;;  %v586_v24 = vadd.f32 %v585_v63, %v2896_v61  ;;  %v1634_v7 = vpack.c.bf16 %v1605_v50, %v1604_v5  ;;  %v2130_v63 = vpack.c.bf16 %v2101_v57, %v2100_v25  ;;  %v1607_v50 = vld [vmem:[%s2759_s25 + $0x9c] sm:$0xff] }
 0x1d2   : > { %v2102_v25 = vld [vmem:[%s2759_s25 + $0x96] sm:$0xff]  ;;  %v2103_v57 = vld [vmem:[%s2759_s25 + $0x9e] sm:$0xff] }
 0x1d3   : > { %v1293_v38 = vpop.f32.mrf.mxu0  ;;  %2611 = vmatmul.msk.bf16.gmra.mxu1 %vm283_vm2, %v1632_v28  ;;  %2630 = vmatmul.msk.bf16.gmra.mxu2 %vm283_vm2, %v1633_v45  ;;  %v3292_v23 = vadd.f32 %v1290_v33, %v1089_v16 }
 0x1d5   : > { %2651 = vmatmul.msk.bf16.gmra.mxu3 %vm283_vm2, %v1883_v22 }
 0x1d6   : > { %2668 = vmatmul.msk.bf16.gmra.mxu0 %vm283_vm2, %v2129_v17  ;;  %v797_v18 = vpop.f32.mrf.mxu2  ;;  %v1856_v17 = vld [vmem:[%s2759_s25 + $0xa5] sm:$0xff] }
 0x1d7   : > { %v842_v32 = vadd.f32 %v797_v18, %v586_v24 }
 0x1d8   : > { %v587_v3 = vpop.f32.mrf.mxu1  ;;  %v1055_v42 = vpop.f32.mrf.mxu3 }
 0x1d9   : > { %v1090_v28 = vadd.f32 %v1045_v48, %v842_v32  ;;  %v588_v33 = vadd.f32 %v587_v3, %v2910_v10 }
 0x1db   : > { %v1295_v37 = vpop.f32.mrf.mxu0  ;;  %v3297_v58 = vadd.f32 %v1293_v38, %v1090_v28  ;;  %v1884_v38 = vpack.c.bf16 %v1857_v51, %v1856_v17  ;;  %v1606_v28 = vld [vmem:[%s2759_s25 + $0x94] sm:$0xff]  ;;  %v1859_v17 = vld [vmem:[%s2759_s25 + $0xbd] sm:$0xff] }
 0x1de   : > { %v799_v55 = vpop.f32.mrf.mxu2 }
 0x1df   : > { %v843_v61 = vadd.f32 %v799_v55, %v588_v33 }
 0x1e0   : > { %v590_v53 = vpop.f32.mrf.mxu1  ;;  %v1057_v48 = vpop.f32.mrf.mxu3 }
 0x1e1   : > { %v1091_v16 = vadd.f32 %v1047_v62, %v843_v61  ;;  %v591_v22 = vadd.f32 %v590_v53, %v2925_v14  ;;  %v1635_v61 = vpack.c.bf16 %v1607_v50, %v1606_v28  ;;  %v2131_v53 = vpack.c.bf16 %v2103_v57, %v2102_v25  ;;  %v1609_v50 = vld [vmem:[%s2759_s25 + $0xac] sm:$0xff] }
 0x1e2   : > { %v2104_v25 = vld [vmem:[%s2759_s25 + $0xa6] sm:$0xff] }
 0x1e3   : > { %v1298_v20 = vpop.f32.mrf.mxu0  ;;  %2612 = vmatmul.msk.bf16.gmra.mxu1 %vm283_vm2, %v1633_v45  ;;  %2631 = vmatmul.msk.bf16.gmra.mxu2 %vm283_vm2, %v1634_v7  ;;  %v3308_v10 = vadd.f32 %v1295_v37, %v1091_v16 }
 0x1e5   : > { %2652 = vmatmul.msk.bf16.gmra.mxu3 %vm283_vm2, %v1884_v38 }
 0x1e6   : > { %2669 = vmatmul.msk.bf16.gmra.mxu0 %vm283_vm2, %v2130_v63  ;;  %v802_v24 = vpop.f32.mrf.mxu2  ;;  %v1858_v63 = vld [vmem:[%s2759_s25 + $0xb5] sm:$0xff] }
 0x1e7   : > { %v844_v18 = vadd.f32 %v802_v24, %v591_v22 }
 0x1e8   : > { %v592_v62 = vpop.f32.mrf.mxu1  ;;  %v1962_v3 = vpop.f32.mrf.mxu3 }
 0x1e9   : > { %v1092_v45 = vadd.f32 %v1050_v1, %v844_v18  ;;  %v593_v37 = vadd.f32 %v592_v62, %v2939_v26 }
 0x1eb   : > { %v1300_v32 = vpop.f32.mrf.mxu0  ;;  %v3313_v5 = vadd.f32 %v1298_v20, %v1092_v45  ;;  %v1885_v20 = vpack.c.bf16 %v1859_v17, %v1858_v63  ;;  %v1608_v45 = vld [vmem:[%s2759_s25 + $0xa4] sm:$0xff]  ;;  %v1861_v63 = vld [vmem:[%s2759_s25 + $0xcd] sm:$0xff] }
 0x1ee   : > { %v804_v33 = vpop.f32.mrf.mxu2 }
 0x1ef   : > { %v845_v14 = vadd.f32 %v804_v33, %v593_v37 }
 0x1f0   : > { %v595_v55 = vpop.f32.mrf.mxu1  ;;  %v3321_v1 = vpop.f32.mrf.mxu3 }
 0x1f1   : > { %v1093_v16 = vadd.f32 %v1052_v27, %v845_v14  ;;  %v596_v38 = vadd.f32 %v595_v55, %v2954_v31  ;;  %v1636_v14 = vpack.c.bf16 %v1609_v50, %v1608_v45  ;;  %v1610_v45 = vld [vmem:[%s2759_s25 + $0xb4] sm:$0xff] }
 0x1f2   : > { %v2106_v50 = vld [vmem:[%s2759_s25 + $0xb6] sm:$0xff] }
 0x1f3   : > { %v1303_v51 = vpop.f32.mrf.mxu0  ;;  %2613 = vmatmul.msk.bf16.gmra.mxu1 %vm283_vm2, %v1634_v7  ;;  %2632 = vmatmul.msk.bf16.gmra.mxu2 %vm283_vm2, %v1635_v61  ;;  %v3326_v26 = vadd.f32 %v1300_v32, %v1093_v16  ;;  %v2105_v32 = vld [vmem:[%s2759_s25 + $0xae] sm:$0xff] }
 0x1f4   : > { %v2132_v55 = vpack.c.bf16 %v2105_v32, %v2104_v25  ;;  %v2107_v25 = vld [vmem:[%s2759_s25 + $0xbe] sm:$0xff] }
 0x1f5   : > { %2653 = vmatmul.msk.bf16.gmra.mxu3 %vm283_vm2, %v1885_v20 }
 0x1f6   : > { %2670 = vmatmul.msk.bf16.gmra.mxu0 %vm283_vm2, %v2131_v53  ;;  %v807_v22 = vpop.f32.mrf.mxu2  ;;  %v1860_v53 = vld [vmem:[%s2759_s25 + $0xc5] sm:$0xff] }
 0x1f7   : > { %v846_v27 = vadd.f32 %v807_v22, %v596_v38 }
 0x1f8   : > { %v597_v24 = vpop.f32.mrf.mxu1  ;;  %v3330_v62 = vpop.f32.mrf.mxu3 }
 0x1f9   : > { %v1094_v7 = vadd.f32 %v1055_v42, %v846_v27  ;;  %v598_v57 = vadd.f32 %v597_v24, %v2968_v43  ;;  %v3353_v24 = vld [vmem:[%s3638_s2] ss:$0 sm:$0xff] }
 0x1fb   : > { %v1305_v18 = vpop.f32.mrf.mxu0  ;;  %v3333_v28 = vadd.f32 %v1303_v51, %v1094_v7  ;;  %v1886_v51 = vpack.c.bf16 %v1861_v63, %v1860_v53  ;;  %v2133_v53 = vpack.c.bf16 %v2107_v25, %v2106_v50  ;;  %v1862_v63 = vld [vmem:[%s2759_s25 + $0xd5] sm:$0xff]  ;;  %v1612_v25 = vld [vmem:[%s2759_s25 + $0xc4] sm:$0xff] }
 0x1fe   : > { %v809_v31 = vpop.f32.mrf.mxu2 }
 0x1ff   : > { %v847_v37 = vadd.f32 %v809_v31, %v598_v57 }
 0x200   : > { %v1466_v33 = vpop.f32.mrf.mxu1  ;;  %v3341_v42 = vpop.f32.mrf.mxu3 }
 0x201   : > { %v1095_v16 = vadd.f32 %v1057_v48, %v847_v37  ;;  %v1556_v20 = vadd.f32 %v1466_v33, %v3029_v0  ;;  %v1611_v0 = vld [vmem:[%s2759_s25 + $0xbc] sm:$0xff] }
 0x203   : > { %v2210_v17 = vpop.f32.mrf.mxu0  ;;  %2614 = vmatmul.msk.bf16.gmra.mxu1 %vm283_vm2, %v1635_v61  ;;  %2633 = vmatmul.msk.bf16.gmra.mxu2 %vm283_vm2, %v1636_v14  ;;  %v3346_v43 = vadd.f32 %v1305_v18, %v1095_v16 }
 0x205   : > { %2654 = vmatmul.msk.bf16.gmra.mxu3 %vm283_vm2, %v1886_v51 }
 0x206   : > { %2671 = vmatmul.msk.bf16.gmra.mxu0 %vm283_vm2, %v2132_v55  ;;  %v1714_v38 = vpop.f32.mrf.mxu2  ;;  %v1637_v55 = vpack.c.bf16 %v1611_v0, %v1610_v45 }
 0x207   : > { %v1804_v48 = vadd.f32 %v1714_v38, %v1556_v20 }
 0x208   : > { %v1468_v22 = vpop.f32.mrf.mxu1  ;;  %v3355_v7 = vpop.f32.mrf.mxu3 }
 0x209   : > { %v2052_v61 = vadd.f32 %v1962_v3, %v1804_v48  ;;  %v1557_v57 = vadd.f32 %v1468_v22, %v3042_v60 }
 0x20b   : > { %v2212_v27 = vpop.f32.mrf.mxu0  ;;  %v2300_v18 = vadd.f32 %v2210_v17, %v2052_v61  ;;  %v1863_v17 = vld [vmem:[%s2759_s25 + $0xdd] sm:$0xff] }
 0x20c   : > { %v1887_v20 = vpack.c.bf16 %v1863_v17, %v1862_v63 }
 0x20d   : > { %v2340_v32 = vadd.f32 %v3353_v24, %v2300_v18 }
 0x20e   : > { %v1716_v3 = vpop.f32.mrf.mxu2 }
 0x20f   : > { %v2376_v31 = vmax.f32 %v2340_v32, 0.0  ;;  %v1805_v37 = vadd.f32 %v1716_v3, %v1557_v57  ;;  %v1613_v32 = vld [vmem:[%s2759_s25 + $0xcc] sm:$0xff] }
 0x210   : > { %v1471_v33 = vpop.f32.mrf.mxu1  ;;  %v3374_v51 = vpop.f32.mrf.mxu3  ;;  %v2109_v57 = vld [vmem:[%s2759_s25 + $0xce] sm:$0xff]  ;;  %v1638_v17 = vpack.c.bf16 %v1613_v32, %v1612_v25 }
 0x211   : > { %2413 = vst.msk [vmem:[%s3367_s16] sm:$0xff] %vm2412_vm3, %v2376_v31  ;;  %v2053_v60 = vadd.f32 %v3321_v1, %v1805_v37  ;;  %v1558_v22 = vadd.f32 %v1471_v33, %v3049_v44  ;;  %v2108_v44 = vld [vmem:[%s2759_s25 + $0xc6] sm:$0xff]  ;;  %v1614_v32 = vld [vmem:[%s2759_s25 + $0xd4] sm:$0xff] }
 0x213   : > { %v2215_v16 = vpop.f32.mrf.mxu0  ;;  %2615 = vmatmul.msk.bf16.gmra.mxu1 %vm283_vm2, %v1636_v14  ;;  %v2301_v38 = vadd.f32 %v2212_v27, %v2053_v60  ;;  %2634 = vmatmul.msk.bf16.gmra.mxu2 %vm283_vm2, %v1637_v55  ;;  %v2134_v60 = vpack.c.bf16 %v2109_v57, %v2108_v44  ;;  %v1615_v44 = vld [vmem:[%s2759_s25 + $0xdc] sm:$0xff] }
 0x214   : > { %v2111_v57 = vld [vmem:[%s2759_s25 + $0xde] sm:$0xff] }
 0x215   : > { %v2341_v48 = vadd.f32 %v3353_v24, %v2301_v38  ;;  %2655 = vmatmul.msk.bf16.gmra.mxu3 %vm283_vm2, %v1887_v20  ;;  %v1865_v20 = vld [vmem:[%s2759_s25 + $0xed] sm:$0xff] }
 0x216   : > { %2672 = vmatmul.msk.bf16.gmra.mxu0 %vm283_vm2, %v2133_v53  ;;  %v1719_v61 = vpop.f32.mrf.mxu2 }
 0x217   : > { %v2377_v1 = vmax.f32 %v2341_v48, 0.0  ;;  %v1806_v18 = vadd.f32 %v1719_v61, %v1558_v22 }
 0x218   : > { %v1473_v14 = vpop.f32.mrf.mxu1  ;;  %v3385_v0 = vpop.f32.mrf.mxu3 }
 0x219   : > { %2414 = vst.msk [vmem:[%s3367_s16 + $0x8] sm:$0xff] %vm2412_vm3, %v2377_v1  ;;  %v2054_v27 = vadd.f32 %v3330_v62, %v1806_v18  ;;  %v1559_v31 = vadd.f32 %v1473_v14, %v3062_v13  ;;  %v1864_v62 = vld [vmem:[%s2759_s25 + $0xe5] sm:$0xff] }
 0x21a   : > { %v1888_v22 = vpack.c.bf16 %v1865_v20, %v1864_v62  ;;  %v1867_v20 = vld [vmem:[%s2759_s25 + $0xfd] sm:$0xff] }
 0x21b   : > { %v2217_v45 = vpop.f32.mrf.mxu0  ;;  %v2302_v50 = vadd.f32 %v2215_v16, %v2054_v27 }
 0x21d   : > { %v2342_v3 = vadd.f32 %v3353_v24, %v2302_v50 }
 0x21e   : > { %v1721_v37 = vpop.f32.mrf.mxu2 }
 0x21f   : > { %v2378_v33 = vmax.f32 %v2342_v3, 0.0  ;;  %v1807_v53 = vadd.f32 %v1721_v37, %v1559_v31 }
 0x220   : > { %v1476_v63 = vpop.f32.mrf.mxu1  ;;  %v3398_v48 = vpop.f32.mrf.mxu3 }
 0x221   : > { %2415 = vst.msk [vmem:[%s3367_s16 + $0x10] sm:$0xff] %vm2412_vm3, %v2378_v33  ;;  %v2055_v16 = vadd.f32 %v3341_v42, %v1807_v53  ;;  %v1560_v1 = vadd.f32 %v1476_v63, %v3069_v6  ;;  %v2110_v6 = vld [vmem:[%s2759_s25 + $0xd6] sm:$0xff] }
 0x222   : > { %v2135_v62 = vpack.c.bf16 %v2111_v57, %v2110_v6 }
 0x223   : > { %v2220_v38 = vpop.f32.mrf.mxu0  ;;  %2616 = vmatmul.msk.bf16.gmra.mxu1 %vm283_vm2, %v1637_v55  ;;  %v2303_v13 = vadd.f32 %v2217_v45, %v2055_v16  ;;  %2635 = vmatmul.msk.bf16.gmra.mxu2 %vm283_vm2, %v1638_v17 }
 0x225   : > { %v2343_v61 = vadd.f32 %v3353_v24, %v2303_v13  ;;  %2656 = vmatmul.msk.bf16.gmra.mxu3 %vm283_vm2, %v1888_v22 }
 0x226   : > { %2673 = vmatmul.msk.bf16.gmra.mxu0 %vm283_vm2, %v2134_v60  ;;  %v1724_v18 = vpop.f32.mrf.mxu2  ;;  %v1639_v60 = vpack.c.bf16 %v1615_v44, %v1614_v32  ;;  %v1617_v32 = vld [vmem:[%s2759_s25 + $0xec] sm:$0xff] }
 0x227   : > { %v2379_v42 = vmax.f32 %v2343_v61, 0.0  ;;  %v1808_v14 = vadd.f32 %v1724_v18, %v1560_v1  ;;  %v2113_v44 = vld [vmem:[%s2759_s25 + $0xee] sm:$0xff] }
 0x228   : > { %v1478_v55 = vpop.f32.mrf.mxu1  ;;  %v3409_v50 = vpop.f32.mrf.mxu3 }
 0x229   : > { %2416 = vst.msk [vmem:[%s3367_s16 + $0x18] sm:$0xff] %vm2412_vm3, %v2379_v42  ;;  %v2056_v45 = vadd.f32 %v3355_v7, %v1808_v14  ;;  %v1561_v31 = vadd.f32 %v1478_v55, %v3082_v30  ;;  %v1866_v7 = vld [vmem:[%s2759_s25 + $0xf5] sm:$0xff] }
 0x22a   : > { %v1889_v13 = vpack.c.bf16 %v1867_v20, %v1866_v7 }
 0x22b   : > { %v2222_v27 = vpop.f32.mrf.mxu0  ;;  %v2304_v25 = vadd.f32 %v2220_v38, %v2056_v45 }
 0x22d   : > { %v2344_v3 = vadd.f32 %v3353_v24, %v2304_v25  ;;  %v1616_v25 = vld [vmem:[%s2759_s25 + $0xe4] sm:$0xff] }
 0x22e   : > { %v1726_v37 = vpop.f32.mrf.mxu2 }
 0x22f   : > { %v2380_v33 = vmax.f32 %v2344_v3, 0.0  ;;  %v1809_v53 = vadd.f32 %v1726_v37, %v1561_v31 }
 0x230   : > { %v1481_v63 = vpop.f32.mrf.mxu1  ;;  %v3422_v22 = vpop.f32.mrf.mxu3 }
 0x231   : > { %2417 = vst.msk [vmem:[%s3367_s16 + $0x20] sm:$0xff] %vm2412_vm3, %v2380_v33  ;;  %v2057_v38 = vadd.f32 %v3374_v51, %v1809_v53  ;;  %v1562_v1 = vadd.f32 %v1481_v63, %v3089_v39  ;;  %v2112_v39 = vld [vmem:[%s2759_s25 + $0xe6] sm:$0xff]  ;;  %v1640_v53 = vpack.c.bf16 %v1617_v32, %v1616_v25 }
 0x232   : > { %v2136_v63 = vpack.c.bf16 %v2113_v44, %v2112_v39 }
 0x233   : > { %v2225_v16 = vpop.f32.mrf.mxu0  ;;  %2617 = vmatmul.msk.bf16.gmra.mxu1 %vm283_vm2, %v1638_v17  ;;  %v2305_v30 = vadd.f32 %v2222_v27, %v2057_v38  ;;  %2636 = vmatmul.msk.bf16.gmra.mxu2 %vm283_vm2, %v1639_v60 }
 0x235   : > { %v2345_v61 = vadd.f32 %v3353_v24, %v2305_v30  ;;  %2657 = vmatmul.msk.bf16.gmra.mxu3 %vm283_vm2, %v1889_v13 }
 0x236   : > { %2674 = vmatmul.msk.bf16.gmra.mxu0 %vm283_vm2, %v2135_v62  ;;  %v1729_v18 = vpop.f32.mrf.mxu2  ;;  %v1869_v62 = vld [vmem:[%s2759_s25 + $0x10d] sm:$0xff] }
 0x237   : > { %v2381_v51 = vmax.f32 %v2345_v61, 0.0  ;;  %v1810_v42 = vadd.f32 %v1729_v18, %v1562_v1 }
 0x238   : > { %v1483_v17 = vpop.f32.mrf.mxu1  ;;  %v3433_v27 = vpop.f32.mrf.mxu3 }
 0x239   : > { %2418 = vst.msk [vmem:[%s3367_s16 + $0x28] sm:$0xff] %vm2412_vm3, %v2381_v51  ;;  %v2058_v55 = vadd.f32 %v3385_v0, %v1810_v42  ;;  %v1563_v57 = vadd.f32 %v1483_v17, %v3102_v47  ;;  %v1868_v0 = vld [vmem:[%s2759_s25 + $0x105] sm:$0xff] }
 0x23a   : > { %v1890_v38 = vpack.c.bf16 %v1869_v62, %v1868_v0 }
 0x23b   : > { %v2227_v14 = vpop.f32.mrf.mxu0  ;;  %v2306_v45 = vadd.f32 %v2225_v16, %v2058_v55  ;;  %v1619_v55 = vld [vmem:[%s2759_s25 + $0xfc] sm:$0xff] }
 0x23d   : > { %v2346_v6 = vadd.f32 %v3353_v24, %v2306_v45  ;;  %v2115_v45 = vld [vmem:[%s2759_s25 + $0xfe] sm:$0xff] }
 0x23e   : > { %v1731_v3 = vpop.f32.mrf.mxu2 }
 0x23f   : > { %v2382_v31 = vmax.f32 %v2346_v6, 0.0  ;;  %v1811_v37 = vadd.f32 %v1731_v3, %v1563_v57 }
 0x240   : > { %v1486_v33 = vpop.f32.mrf.mxu1  ;;  %v3446_v16 = vpop.f32.mrf.mxu3 }
 0x241   : > { %2419 = vst.msk [vmem:[%s3367_s16 + $0x30] sm:$0xff] %vm2412_vm3, %v2382_v31  ;;  %v2059_v20 = vadd.f32 %v3398_v48, %v1811_v37  ;;  %v1564_v30 = vadd.f32 %v1486_v33, %v3109_v35  ;;  %v2114_v35 = vld [vmem:[%s2759_s25 + $0xf6] sm:$0xff] }
 0x242   : > { %v2137_v31 = vpack.c.bf16 %v2115_v45, %v2114_v35  ;;  %v1871_v37 = vld [vmem:[%s2759_s25 + $0x11d] sm:$0xff] }
 0x243   : > { %v2230_v7 = vpop.f32.mrf.mxu0  ;;  %2618 = vmatmul.msk.bf16.gmra.mxu1 %vm283_vm2, %v1639_v60  ;;  %v2307_v47 = vadd.f32 %v2227_v14, %v2059_v20  ;;  %2637 = vmatmul.msk.bf16.gmra.mxu2 %vm283_vm2, %v1640_v53  ;;  %v1618_v14 = vld [vmem:[%s2759_s25 + $0xf4] sm:$0xff] }
 0x244   : > { %v1641_v3 = vpack.c.bf16 %v1619_v55, %v1618_v14 }
 0x245   : > { %v2347_v13 = vadd.f32 %v3353_v24, %v2307_v47  ;;  %2658 = vmatmul.msk.bf16.gmra.mxu3 %vm283_vm2, %v1890_v38 }
 0x246   : > { %2675 = vmatmul.msk.bf16.gmra.mxu0 %vm283_vm2, %v2136_v63  ;;  %v1734_v61 = vpop.f32.mrf.mxu2 }
 0x247   : > { %v2383_v48 = vmax.f32 %v2347_v13, 0.0  ;;  %v1812_v1 = vadd.f32 %v1734_v61, %v1564_v30 }
 0x248   : > { %v1488_v60 = vpop.f32.mrf.mxu1  ;;  %v3457_v42 = vpop.f32.mrf.mxu3 }
 0x249   : > { %2420 = vst.msk [vmem:[%s3367_s16 + $0x38] sm:$0xff] %vm2412_vm3, %v2383_v48  ;;  %v2060_v51 = vadd.f32 %v3409_v50, %v1812_v1  ;;  %v1565_v32 = vadd.f32 %v1488_v60, %v3122_v15  ;;  %v1870_v50 = vld [vmem:[%s2759_s25 + $0x115] sm:$0xff]  ;;  %v1620_v1 = vld [vmem:[%s2759_s25 + $0x104] sm:$0xff]  ;;  %v1621_v60 = vld [vmem:[%s2759_s25 + $0x10c] sm:$0xff] }
 0x24a   : > { %v1891_v62 = vpack.c.bf16 %v1871_v37, %v1870_v50 }
 0x24b   : > { %v2232_v18 = vpop.f32.mrf.mxu0  ;;  %v2308_v17 = vadd.f32 %v2230_v7, %v2060_v51 }
 0x24d   : > { %v2348_v25 = vadd.f32 %v3353_v24, %v2308_v17 }
 0x24e   : > { %v1736_v39 = vpop.f32.mrf.mxu2 }
 0x24f   : > { %v2384_v44 = vmax.f32 %v2348_v25, 0.0  ;;  %v1813_v6 = vadd.f32 %v1736_v39, %v1565_v32  ;;  %v1642_v25 = vpack.c.bf16 %v1621_v60, %v1620_v1  ;;  %v1873_v39 = vld [vmem:[%s2759_s25 + $0x12d] sm:$0xff] }
 0x250   : > { %v1491_v57 = vpop.f32.mrf.mxu1  ;;  %v3470_v0 = vpop.f32.mrf.mxu3 }
 0x251   : > { %2421 = vst.msk [vmem:[%s3367_s16 + $0x40] sm:$0xff] %vm2412_vm3, %v2384_v44  ;;  %v2061_v63 = vadd.f32 %v3422_v22, %v1813_v6  ;;  %v1566_v20 = vadd.f32 %v1491_v57, %v3129_v34  ;;  %v2116_v34 = vld [vmem:[%s2759_s25 + $0x106] sm:$0xff] }
 0x253   : > { %v2235_v33 = vpop.f32.mrf.mxu0  ;;  %2619 = vmatmul.msk.bf16.gmra.mxu1 %vm283_vm2, %v1640_v53  ;;  %v2309_v15 = vadd.f32 %v2232_v18, %v2061_v63  ;;  %2638 = vmatmul.msk.bf16.gmra.mxu2 %vm283_vm2, %v1641_v3  ;;  %v2117_v18 = vld [vmem:[%s2759_s25 + $0x10e] sm:$0xff] }
 0x254   : > { %v2138_v32 = vpack.c.bf16 %v2117_v18, %v2116_v34 }
 0x255   : > { %v2349_v7 = vadd.f32 %v3353_v24, %v2309_v15  ;;  %2659 = vmatmul.msk.bf16.gmra.mxu3 %vm283_vm2, %v1891_v62 }
 0x256   : > { %2676 = vmatmul.msk.bf16.gmra.mxu0 %vm283_vm2, %v2137_v31  ;;  %v1739_v38 = vpop.f32.mrf.mxu2 }
 0x257   : > { %v2385_v22 = vmax.f32 %v2349_v7, 0.0  ;;  %v1814_v47 = vadd.f32 %v1739_v38, %v1566_v20  ;;  %v1622_v38 = vld [vmem:[%s2759_s25 + $0x114] sm:$0xff] }
 0x258   : > { %v1493_v53 = vpop.f32.mrf.mxu1  ;;  %v3481_v61 = vpop.f32.mrf.mxu3 }
 0x259   : > { %2422 = vst.msk [vmem:[%s3367_s16 + $0x48] sm:$0xff] %vm2412_vm3, %v2385_v22  ;;  %v2062_v30 = vadd.f32 %v3433_v27, %v1814_v47  ;;  %v1567_v17 = vadd.f32 %v1493_v53, %v3142_v59  ;;  %v1872_v27 = vld [vmem:[%s2759_s25 + $0x125] sm:$0xff]  ;;  %v1623_v22 = vld [vmem:[%s2759_s25 + $0x11c] sm:$0xff] }
 0x25a   : > { %v1892_v31 = vpack.c.bf16 %v1873_v39, %v1872_v27  ;;  %v2119_v47 = vld [vmem:[%s2759_s25 + $0x11e] sm:$0xff]  ;;  %v1643_v34 = vpack.c.bf16 %v1623_v22, %v1622_v38 }
 0x25b   : > { %v2237_v13 = vpop.f32.mrf.mxu0  ;;  %v2310_v48 = vadd.f32 %v2235_v33, %v2062_v30 }
 0x25d   : > { %v2350_v51 = vadd.f32 %v3353_v24, %v2310_v48 }
 0x25e   : > { %v1741_v14 = vpop.f32.mrf.mxu2 }
 0x25f   : > { %v2386_v55 = vmax.f32 %v2350_v51, 0.0  ;;  %v1815_v35 = vadd.f32 %v1741_v14, %v1567_v17  ;;  %v1875_v51 = vld [vmem:[%s2759_s25 + $0x13d] sm:$0xff] }
 0x260   : > { %v1496_v45 = vpop.f32.mrf.mxu1  ;;  %v3494_v57 = vpop.f32.mrf.mxu3 }
 0x261   : > { %2423 = vst.msk [vmem:[%s3367_s16 + $0x50] sm:$0xff] %vm2412_vm3, %v2386_v55  ;;  %v2063_v6 = vadd.f32 %v3446_v16, %v1815_v35  ;;  %v1568_v37 = vadd.f32 %v1496_v45, %v3149_v40  ;;  %v2118_v40 = vld [vmem:[%s2759_s25 + $0x116] sm:$0xff] }
 0x262   : > { %v2139_v18 = vpack.c.bf16 %v2119_v47, %v2118_v40 }
 0x263   : > { %v2240_v44 = vpop.f32.mrf.mxu0  ;;  %2620 = vmatmul.msk.bf16.gmra.mxu1 %vm283_vm2, %v1641_v3  ;;  %v2311_v59 = vadd.f32 %v2237_v13, %v2063_v6  ;;  %2639 = vmatmul.msk.bf16.gmra.mxu2 %vm283_vm2, %v1642_v25 }
 0x265   : > { %v2351_v50 = vadd.f32 %v3353_v24, %v2311_v59  ;;  %2660 = vmatmul.msk.bf16.gmra.mxu3 %vm283_vm2, %v1892_v31 }
 0x266   : > { %2677 = vmatmul.msk.bf16.gmra.mxu0 %vm283_vm2, %v2138_v32  ;;  %v1744_v33 = vpop.f32.mrf.mxu2 }
 0x267   : > { %v2387_v16 = vmax.f32 %v2351_v50, 0.0  ;;  %v1816_v63 = vadd.f32 %v1744_v33, %v1568_v37  ;;  %v1624_v50 = vld [vmem:[%s2759_s25 + $0x124] sm:$0xff]  ;;  %v1625_v37 = vld [vmem:[%s2759_s25 + $0x12c] sm:$0xff] }
 0x268   : > { %v1498_v3 = vpop.f32.mrf.mxu1  ;;  %v3505_v7 = vpop.f32.mrf.mxu3  ;;  %v2120_v33 = vld [vmem:[%s2759_s25 + $0x126] sm:$0xff]  ;;  %v1644_v38 = vpack.c.bf16 %v1625_v37, %v1624_v50 }
 0x269   : > { %2424 = vst.msk [vmem:[%s3367_s16 + $0x58] sm:$0xff] %vm2412_vm3, %v2387_v16  ;;  %v2064_v15 = vadd.f32 %v3457_v42, %v1816_v63  ;;  %v1569_v13 = vadd.f32 %v1498_v3, %v3160_v12  ;;  %v1874_v42 = vld [vmem:[%s2759_s25 + $0x135] sm:$0xff] }
 0x26a   : > { %v1893_v35 = vpack.c.bf16 %v1875_v51, %v1874_v42  ;;  %v2121_v16 = vld [vmem:[%s2759_s25 + $0x12e] sm:$0xff] }
 0x26b   : > { %v2242_v62 = vpop.f32.mrf.mxu0  ;;  %v2312_v20 = vadd.f32 %v2240_v44, %v2064_v15  ;;  %v2140_v22 = vpack.c.bf16 %v2121_v16, %v2120_v33  ;;  %v1626_v51 = vld [vmem:[%s2759_s25 + $0x134] sm:$0xff] }
 0x26d   : > { %v2352_v53 = vadd.f32 %v3353_v24, %v2312_v20 }
 0x26e   : > { %v1746_v30 = vpop.f32.mrf.mxu2 }
 0x26f   : > { %v2388_v48 = vmax.f32 %v2352_v53, 0.0  ;;  %v1817_v1 = vadd.f32 %v1746_v30, %v1569_v13 }
 0x270   : > { %v1501_v60 = vpop.f32.mrf.mxu1  ;;  %v3518_v55 = vpop.f32.mrf.mxu3 }
 0x271   : > { %2425 = vst.msk [vmem:[%s3367_s16 + $0x60] sm:$0xff] %vm2412_vm3, %v2388_v48  ;;  %v2065_v14 = vadd.f32 %v3470_v0, %v1817_v1  ;;  %v1570_v32 = vadd.f32 %v1501_v60, %v3166_v52 }
 0x273   : > { %v2245_v17 = vpop.f32.mrf.mxu0  ;;  %2621 = vmatmul.msk.bf16.gmra.mxu1 %vm283_vm2, %v1642_v25  ;;  %v2313_v12 = vadd.f32 %v2242_v62, %v2065_v14  ;;  %2640 = vmatmul.msk.bf16.gmra.mxu2 %vm283_vm2, %v1643_v34  ;;  %v2122_v14 = vld [vmem:[%s2759_s25 + $0x136] sm:$0xff] }
 0x275   : > { %v2353_v45 = vadd.f32 %v3353_v24, %v2313_v12  ;;  %2661 = vmatmul.msk.bf16.gmra.mxu3 %vm283_vm2, %v1893_v35  ;;  %v2123_v35 = vld [vmem:[%s2759_s25 + $0x13e] sm:$0xff] }
 0x276   : > { %2678 = vmatmul.msk.bf16.gmra.mxu0 %vm283_vm2, %v2139_v18  ;;  %v1749_v27 = vpop.f32.mrf.mxu2 }
 0x277   : > { %v2389_v0 = vmax.f32 %v2353_v45, 0.0  ;;  %v1818_v39 = vadd.f32 %v1749_v27, %v1570_v32 }
 0x278   : > { %v1503_v25 = vpop.f32.mrf.mxu1  ;;  %v2007_v31 = vpop.f32.mrf.mxu3 }
 0x279   : > { %2426 = vst.msk [vmem:[%s3367_s16 + $0x68] sm:$0xff] %vm2412_vm3, %v2389_v0  ;;  %v2066_v6 = vadd.f32 %v3481_v61, %v1818_v39  ;;  %v1571_v63 = vadd.f32 %v1503_v25, %v3177_v29  ;;  %v2141_v25 = vpack.c.bf16 %v2123_v35, %v2122_v14 }
 0x27b   : > { %v2247_v44 = vpop.f32.mrf.mxu0  ;;  %v2314_v59 = vadd.f32 %v2245_v17, %v2066_v6  ;;  %v1627_v17 = vld [vmem:[%s2759_s25 + $0x13c] sm:$0xff] }
 0x27c   : > { %v1645_v39 = vpack.c.bf16 %v1627_v17, %v1626_v51 }
 0x27d   : > { %v2354_v52 = vadd.f32 %v3353_v24, %v2314_v59 }
 0x27e   : > { %v1751_v3 = vpop.f32.mrf.mxu2 }
 0x27f   : > { %v2390_v62 = vmax.f32 %v2354_v52, 0.0  ;;  %v1819_v15 = vadd.f32 %v1751_v3, %v1571_v63 }
 0x280   : > { %v1506_v20 = vpop.f32.mrf.mxu1  ;;  %v2009_v47 = vpop.f32.mrf.mxu3 }
 0x281   : > { %2427 = vst.msk [vmem:[%s3367_s16 + $0x70] sm:$0xff] %vm2412_vm3, %v2390_v62  ;;  %v2067_v61 = vadd.f32 %v3494_v57, %v1819_v15  ;;  %v1572_v13 = vadd.f32 %v1506_v20, %v3183_v4 }
 0x283   : > { %v2250_v40 = vpop.f32.mrf.mxu0  ;;  %2622 = vmatmul.msk.bf16.gmra.mxu1 %vm283_vm2, %v1643_v34  ;;  %v2315_v53 = vadd.f32 %v2247_v44, %v2067_v61  ;;  %2641 = vmatmul.msk.bf16.gmra.mxu2 %vm283_vm2, %v1644_v38 }
 0x285   : > { %v2355_v29 = vadd.f32 %v3353_v24, %v2315_v53 }
 0x286   : > { %2679 = vmatmul.msk.bf16.gmra.mxu0 %vm283_vm2, %v2140_v22  ;;  %v1754_v30 = vpop.f32.mrf.mxu2 }
 0x287   : > { %v2391_v48 = vmax.f32 %v2355_v29, 0.0  ;;  %v1820_v1 = vadd.f32 %v1754_v30, %v1572_v13 }
 0x288   : > { %v1508_v57 = vpop.f32.mrf.mxu1  ;;  %v2012_v18 = vpop.f32.mrf.mxu3 }
 0x289   : > { %2428 = vst.msk [vmem:[%s3367_s16 + $0x78] sm:$0xff] %vm2412_vm3, %v2391_v48  ;;  %v2068_v34 = vadd.f32 %v3505_v7, %v1820_v1  ;;  %v1573_v4 = vadd.f32 %v1508_v57, %v3194_v46 }
 0x28b   : > { %v2252_v60 = vpop.f32.mrf.mxu0  ;;  %v2316_v42 = vadd.f32 %v2250_v40, %v2068_v34 }
 0x28d   : > { %v2356_v12 = vadd.f32 %v3353_v24, %v2316_v42 }
 0x28e   : > { %v1756_v45 = vpop.f32.mrf.mxu2 }
 0x28f   : > { %v2392_v32 = vmax.f32 %v2356_v12, 0.0  ;;  %v1821_v27 = vadd.f32 %v1756_v45, %v1573_v4 }
 0x290   : > { %v1511_v0 = vpop.f32.mrf.mxu1  ;;  %v2014_v46 = vpop.f32.mrf.mxu3 }
 0x291   : > { %2429 = vst.msk [vmem:[%s3367_s16 + $0x80] sm:$0xff] %vm2412_vm3, %v2392_v32  ;;  %v2069_v7 = vadd.f32 %v3518_v55, %v1821_v27  ;;  %v1574_v50 = vadd.f32 %v1511_v0, %v3201_v49 }
 0x293   : > { %v2255_v44 = vpop.f32.mrf.mxu0  ;;  %2623 = vmatmul.msk.bf16.gmra.mxu1 %vm283_vm2, %v1644_v38  ;;  %v2317_v6 = vadd.f32 %v2252_v60, %v2069_v7  ;;  %2642 = vmatmul.msk.bf16.gmra.mxu2 %vm283_vm2, %v1645_v39 }
 0x295   : > { %v2357_v59 = vadd.f32 %v3353_v24, %v2317_v6 }
 0x296   : > { %2680 = vmatmul.msk.bf16.gmra.mxu0 %vm283_vm2, %v2141_v25  ;;  %v1759_v37 = vpop.f32.mrf.mxu2 }
 0x297   : > { %v2393_v33 = vmax.f32 %v2357_v59, 0.0  ;;  %v1822_v16 = vadd.f32 %v1759_v37, %v1574_v50 }
 0x298   : > { %v1513_v52 = vpop.f32.mrf.mxu1  ;;  %v2017_v38 = vpop.f32.mrf.mxu3 }
 0x299   : > { %2430 = vst.msk [vmem:[%s3367_s16 + $0x88] sm:$0xff] %vm2412_vm3, %v2393_v33  ;;  %v2070_v55 = vadd.f32 %v2007_v31, %v1822_v16  ;;  %v1575_v15 = vadd.f32 %v1513_v52, %v3212_v8 }
 0x29b   : > { %v2257_v63 = vpop.f32.mrf.mxu0  ;;  %v2318_v3 = vadd.f32 %v2255_v44, %v2070_v55 }
 0x29d   : > { %v2358_v62 = vadd.f32 %v3353_v24, %v2318_v3 }
 0x29e   : > { %v1761_v20 = vpop.f32.mrf.mxu2 }
 0x29f   : > { %v2394_v22 = vmax.f32 %v2358_v62, 0.0  ;;  %v1823_v40 = vadd.f32 %v1761_v20, %v1575_v15 }
 0x2a0   : > { %v1516_v49 = vpop.f32.mrf.mxu1  ;;  %v2019_v60 = vpop.f32.mrf.mxu3 }
 0x2a1   : > { %2431 = vst.msk [vmem:[%s3367_s16 + $0x90] sm:$0xff] %vm2412_vm3, %v2394_v22  ;;  %v2071_v53 = vadd.f32 %v2009_v47, %v1823_v40  ;;  %v1576_v31 = vadd.f32 %v1516_v49, %v3217_v9 }
 0x2a3   : > { %v2260_v61 = vpop.f32.mrf.mxu0  ;;  %v2319_v29 = vadd.f32 %v2257_v63, %v2071_v53 }
 0x2a5   : > { %v2359_v13 = vadd.f32 %v3353_v24, %v2319_v29 }
 0x2a6   : > { %v1764_v30 = vpop.f32.mrf.mxu2 }
 0x2a7   : > { %v2395_v48 = vmax.f32 %v2359_v13, 0.0  ;;  %v1824_v1 = vadd.f32 %v1764_v30, %v1576_v31 }
 0x2a8   : > { %v1518_v8 = vpop.f32.mrf.mxu1  ;;  %v2022_v45 = vpop.f32.mrf.mxu3 }
 0x2a9   : > { %2432 = vst.msk [vmem:[%s3367_s16 + $0x98] sm:$0xff] %vm2412_vm3, %v2395_v48  ;;  %v2072_v34 = vadd.f32 %v2012_v18, %v1824_v1  ;;  %v1577_v47 = vadd.f32 %v1518_v8, %v3228_v2 }
 0x2ab   : > { %v2262_v57 = vpop.f32.mrf.mxu0  ;;  %v2320_v42 = vadd.f32 %v2260_v61, %v2072_v34 }
 0x2ad   : > { %v2360_v51 = vadd.f32 %v3353_v24, %v2320_v42 }
 0x2ae   : > { %v1766_v17 = vpop.f32.mrf.mxu2 }
 0x2af   : > { %v2396_v14 = vmax.f32 %v2360_v51, 0.0  ;;  %v1825_v35 = vadd.f32 %v1766_v17, %v1577_v47 }
 0x2b0   : > { %v1521_v9 = vpop.f32.mrf.mxu1  ;;  %v2024_v59 = vpop.f32.mrf.mxu3 }
 0x2b1   : > { %2433 = vst.msk [vmem:[%s3367_s16 + $0xa0] sm:$0xff] %vm2412_vm3, %v2396_v14  ;;  %v2073_v4 = vadd.f32 %v2014_v46, %v1825_v35  ;;  %v1578_v18 = vadd.f32 %v1521_v9, %v3233_v41 }
 0x2b3   : > { %v2265_v12 = vpop.f32.mrf.mxu0  ;;  %v2321_v32 = vadd.f32 %v2262_v57, %v2073_v4 }
 0x2b5   : > { %v2361_v27 = vadd.f32 %v3353_v24, %v2321_v32 }
 0x2b6   : > { %v1769_v0 = vpop.f32.mrf.mxu2 }
 0x2b7   : > { %v2397_v39 = vmax.f32 %v2361_v27, 0.0  ;;  %v1826_v25 = vadd.f32 %v1769_v0, %v1578_v18 }
 0x2b8   : > { %v1523_v2 = vpop.f32.mrf.mxu1  ;;  %v2027_v20 = vpop.f32.mrf.mxu3 }
 0x2b9   : > { %2434 = vst.msk [vmem:[%s3367_s16 + $0xa8] sm:$0xff] %vm2412_vm3, %v2397_v39  ;;  %v2074_v7 = vadd.f32 %v2017_v38, %v1826_v25  ;;  %v1579_v46 = vadd.f32 %v1523_v2, %v3244_v19 }
 0x2bb   : > { %v2267_v44 = vpop.f32.mrf.mxu0  ;;  %v2322_v6 = vadd.f32 %v2265_v12, %v2074_v7 }
 0x2bd   : > { %v2362_v50 = vadd.f32 %v3353_v24, %v2322_v6 }
 0x2be   : > { %v1771_v37 = vpop.f32.mrf.mxu2 }
 0x2bf   : > { %v2398_v33 = vmax.f32 %v2362_v50, 0.0  ;;  %v1827_v16 = vadd.f32 %v1771_v37, %v1579_v46 }
 0x2c0   : > { %v1526_v41 = vpop.f32.mrf.mxu1  ;;  %v2029_v1 = vpop.f32.mrf.mxu3 }
 0x2c1   : > { %2435 = vst.msk [vmem:[%s3367_s16 + $0xb0] sm:$0xff] %vm2412_vm3, %v2398_v33  ;;  %v2075_v63 = vadd.f32 %v2019_v60, %v1827_v16  ;;  %v1580_v62 = vadd.f32 %v1526_v41, %v3249_v56 }
 0x2c3   : > { %v2270_v52 = vpop.f32.mrf.mxu0  ;;  %v2323_v55 = vadd.f32 %v2267_v44, %v2075_v63 }
 0x2c5   : > { %v2363_v3 = vadd.f32 %v3353_v24, %v2323_v55 }
 0x2c6   : > { %v1774_v15 = vpop.f32.mrf.mxu2 }
 0x2c7   : > { %v2399_v38 = vmax.f32 %v2363_v3, 0.0  ;;  %v1828_v22 = vadd.f32 %v1774_v15, %v1580_v62 }
 0x2c8   : > { %v1528_v19 = vpop.f32.mrf.mxu1  ;;  %v2032_v35 = vpop.f32.mrf.mxu3 }
 0x2c9   : > { %2436 = vst.msk [vmem:[%s3367_s16 + $0xb8] sm:$0xff] %vm2412_vm3, %v2399_v38  ;;  %v2076_v49 = vadd.f32 %v2022_v45, %v1828_v22  ;;  %v1581_v29 = vadd.f32 %v1528_v19, %v3260_v36 }
 0x2cb   : > { %v2272_v40 = vpop.f32.mrf.mxu0  ;;  %v2324_v61 = vadd.f32 %v2270_v52, %v2076_v49 }
 0x2cd   : > { %v2364_v53 = vadd.f32 %v3353_v24, %v2324_v61 }
 0x2ce   : > { %v1776_v13 = vpop.f32.mrf.mxu2 }
 0x2cf   : > { %v2400_v31 = vmax.f32 %v2364_v53, 0.0  ;;  %v1829_v30 = vadd.f32 %v1776_v13, %v1581_v29 }
 0x2d0   : > { %v1531_v56 = vpop.f32.mrf.mxu1  ;;  %v2034_v25 = vpop.f32.mrf.mxu3 }
 0x2d1   : > { %2437 = vst.msk [vmem:[%s3367_s16 + $0xc0] sm:$0xff] %vm2412_vm3, %v2400_v31  ;;  %v2077_v8 = vadd.f32 %v2024_v59, %v1829_v30  ;;  %v1582_v34 = vadd.f32 %v1531_v56, %v3265_v11 }
 0x2d3   : > { %v2275_v48 = vpop.f32.mrf.mxu0  ;;  %v2325_v57 = vadd.f32 %v2272_v40, %v2077_v8 }
 0x2d5   : > { %v2365_v60 = vadd.f32 %v3353_v24, %v2325_v57 }
 0x2d6   : > { %v1779_v42 = vpop.f32.mrf.mxu2 }
 0x2d7   : > { %v2401_v51 = vmax.f32 %v2365_v60, 0.0  ;;  %v1830_v47 = vadd.f32 %v1779_v42, %v1582_v34 }
 0x2d8   : > { %v1533_v36 = vpop.f32.mrf.mxu1  ;;  %v2037_v52 = vpop.f32.mrf.mxu3 }
 0x2d9   : > { %2438 = vst.msk [vmem:[%s3367_s16 + $0xc8] sm:$0xff] %vm2412_vm3, %v2401_v51  ;;  %v2078_v14 = vadd.f32 %v2027_v20, %v1830_v47  ;;  %v1583_v4 = vadd.f32 %v1533_v36, %v3276_v54 }
 0x2db   : > { %v2277_v17 = vpop.f32.mrf.mxu0  ;;  %v2326_v9 = vadd.f32 %v2275_v48, %v2078_v14 }
 0x2dd   : > { %v2366_v12 = vadd.f32 %v3353_v24, %v2326_v9 }
 0x2de   : > { %v1781_v45 = vpop.f32.mrf.mxu2 }
 0x2df   : > { %v2402_v32 = vmax.f32 %v2366_v12, 0.0  ;;  %v1831_v27 = vadd.f32 %v1781_v45, %v1583_v4 }
 0x2e0   : > { %v1536_v11 = vpop.f32.mrf.mxu1  ;;  %v2039_v49 = vpop.f32.mrf.mxu3 }
 0x2e1   : > { %2439 = vst.msk [vmem:[%s3367_s16 + $0xd0] sm:$0xff] %vm2412_vm3, %v2402_v32  ;;  %v2079_v0 = vadd.f32 %v2029_v1, %v1831_v27  ;;  %v1584_v44 = vadd.f32 %v1536_v11, %v3281_v21 }
 0x2e3   : > { %v2280_v18 = vpop.f32.mrf.mxu0  ;;  %v2327_v39 = vadd.f32 %v2277_v17, %v2079_v0 }
 0x2e5   : > { %v2367_v2 = vadd.f32 %v3353_v24, %v2327_v39 }
 0x2e6   : > { %v1784_v7 = vpop.f32.mrf.mxu2 }
 0x2e7   : > { %v2403_v6 = vmax.f32 %v2367_v2, 0.0  ;;  %v1832_v59 = vadd.f32 %v1784_v7, %v1584_v44 }
 0x2e8   : > { %v1538_v54 = vpop.f32.mrf.mxu1  ;;  %v2042_v8 = vpop.f32.mrf.mxu3 }
 0x2e9   : > { %2440 = vst.msk [vmem:[%s3367_s16 + $0xd8] sm:$0xff] %vm2412_vm3, %v2403_v6  ;;  %v2080_v46 = vadd.f32 %v2032_v35, %v1832_v59  ;;  %v1585_v16 = vadd.f32 %v1538_v54, %v3292_v23 }
 0x2eb   : > { %v2282_v50 = vpop.f32.mrf.mxu0  ;;  %v2328_v37 = vadd.f32 %v2280_v18, %v2080_v46 }
 0x2ed   : > { %v2368_v33 = vadd.f32 %v3353_v24, %v2328_v37 }
 0x2ee   : > { %v1786_v41 = vpop.f32.mrf.mxu2 }
 0x2ef   : > { %v2404_v63 = vmax.f32 %v2368_v33, 0.0  ;;  %v1833_v55 = vadd.f32 %v1786_v41, %v1585_v16 }
 0x2f0   : > { %v1541_v21 = vpop.f32.mrf.mxu1  ;;  %v2044_v35 = vpop.f32.mrf.mxu3 }
 0x2f1   : > { %2441 = vst.msk [vmem:[%s3367_s16 + $0xe0] sm:$0xff] %vm2412_vm3, %v2404_v63  ;;  %v2081_v62 = vadd.f32 %v2034_v25, %v1833_v55  ;;  %v1586_v38 = vadd.f32 %v1541_v21, %v3297_v58 }
 0x2f3   : > { %v2285_v3 = vpop.f32.mrf.mxu0  ;;  %v2329_v15 = vadd.f32 %v2282_v50, %v2081_v62 }
 0x2f5   : > { %v2369_v20 = vadd.f32 %v3353_v24, %v2329_v15 }
 0x2f6   : > { %v1789_v22 = vpop.f32.mrf.mxu2 }
 0x2f7   : > { %v2405_v19 = vmax.f32 %v2369_v20, 0.0  ;;  %v1834_v40 = vadd.f32 %v1789_v22, %v1586_v38 }
 0x2f8   : > { %v1543_v23 = vpop.f32.mrf.mxu1  ;;  %v2047_v25 = vpop.f32.mrf.mxu3 }
 0x2f9   : > { %2442 = vst.msk [vmem:[%s3367_s16 + $0xe8] sm:$0xff] %vm2412_vm3, %v2405_v19  ;;  %v2082_v61 = vadd.f32 %v2037_v52, %v1834_v40  ;;  %v1587_v31 = vadd.f32 %v1543_v23, %v3308_v10 }
 0x2fb   : > { %v2287_v53 = vpop.f32.mrf.mxu0  ;;  %v2330_v29 = vadd.f32 %v2285_v3, %v2082_v61 }
 0x2fd   : > { %v2370_v13 = vadd.f32 %v3353_v24, %v2330_v29 }
 0x2fe   : > { %v1791_v30 = vpop.f32.mrf.mxu2 }
 0x2ff   : > { %v2406_v56 = vmax.f32 %v2370_v13, 0.0  ;;  %v1835_v48 = vadd.f32 %v1791_v30, %v1587_v31 }
 0x300   : > { %v1546_v58 = vpop.f32.mrf.mxu1 }
 0x301   : > { %2443 = vst.msk [vmem:[%s3367_s16 + $0xf0] sm:$0xff] %vm2412_vm3, %v2406_v56  ;;  %v2083_v1 = vadd.f32 %v2039_v49, %v1835_v48  ;;  %v1588_v42 = vadd.f32 %v1546_v58, %v3313_v5 }
 0x303   : > { %v2331_v57 = vadd.f32 %v2287_v53, %v2083_v1  ;;  %v2290_v60 = vpop.f32.mrf.mxu0 }
 0x305   : > { %v2371_v34 = vadd.f32 %v3353_v24, %v2331_v57 }
 0x306   : > { %v1794_v51 = vpop.f32.mrf.mxu2 }
 0x307   : > { %v2407_v47 = vmax.f32 %v2371_v34, 0.0  ;;  %v1836_v36 = vadd.f32 %v1794_v51, %v1588_v42 }
 0x308   : > { %v1548_v10 = vpop.f32.mrf.mxu1 }
 0x309   : > { %2444 = vst.msk [vmem:[%s3367_s16 + $0xf8] sm:$0xff] %vm2412_vm3, %v2407_v47  ;;  %v2084_v17 = vadd.f32 %v2042_v8, %v1836_v36  ;;  %v1589_v12 = vadd.f32 %v1548_v10, %v3326_v26 }
 0x30b   : > { %v2332_v14 = vadd.f32 %v2290_v60, %v2084_v17  ;;  %v2292_v4 = vpop.f32.mrf.mxu0 }
 0x30d   : > { %v2372_v9 = vadd.f32 %v3353_v24, %v2332_v14 }
 0x30e   : > { %v1796_v45 = vpop.f32.mrf.mxu2 }
 0x30f   : > { %v2408_v32 = vmax.f32 %v2372_v9, 0.0  ;;  %v1837_v27 = vadd.f32 %v1796_v45, %v1589_v12 }
 0x310   : > { %v1551_v5 = vpop.f32.mrf.mxu1 }
 0x311   : > { %2445 = vst.msk [vmem:[%s3367_s16 + $0x100] sm:$0xff] %vm2412_vm3, %v2408_v32  ;;  %v2085_v11 = vadd.f32 %v2044_v35, %v1837_v27  ;;  %v1590_v39 = vadd.f32 %v1551_v5, %v3333_v28  ;;  %v2049_v28 = vpop.f32.mrf.mxu3 }
 0x313   : > { %v2333_v18 = vadd.f32 %v2292_v4, %v2085_v11  ;;  %v2295_v26 = vpop.f32.mrf.mxu0 }
 0x315   : > { %v2373_v0 = vadd.f32 %v3353_v24, %v2333_v18 }
 0x316   : > { %v1799_v2 = vpop.f32.mrf.mxu2 }
 0x317   : > { %v2409_v44 = vmax.f32 %v2373_v0, 0.0  ;;  %v1838_v7 = vadd.f32 %v1799_v2, %v1590_v39 }
 0x318   : > { %v1553_v59 = vpop.f32.mrf.mxu1 }
 0x319   : > { %2446 = vst.msk [vmem:[%s3367_s16 + $0x108] sm:$0xff] %vm2412_vm3, %v2409_v44  ;;  %v2086_v6 = vadd.f32 %v2047_v25, %v1838_v7  ;;  %v1591_v46 = vadd.f32 %v1553_v59, %v3346_v43 }
 0x31b   : > { %v2334_v54 = vadd.f32 %v2295_v26, %v2086_v6  ;;  %v2297_v52 = vpop.f32.mrf.mxu0 }
 0x31d   : > { %v2374_v50 = vadd.f32 %v3353_v24, %v2334_v54 }
 0x31e   : > { %v1801_v37 = vpop.f32.mrf.mxu2 }
 0x31f   : > { %v2410_v33 = vmax.f32 %v2374_v50, 0.0  ;;  %v1839_v16 = vadd.f32 %v1801_v37, %v1591_v46 }
 0x321   : > { %2447 = vst.msk [vmem:[%s3367_s16 + $0x110] sm:$0xff] %vm2412_vm3, %v2410_v33  ;;  %v2087_v41 = vadd.f32 %v2049_v28, %v1839_v16 }
 0x323   : > { %v2335_v63 = vadd.f32 %v2297_v52, %v2087_v41 }
 0x325   : > { %v2375_v55 = vadd.f32 %v3353_v24, %v2335_v63 }
 0x327   : > { %v2411_v21 = vmax.f32 %v2375_v55, 0.0 }
 0x329   : > { %2448 = vst.msk [vmem:[%s3367_s16 + $0x118] sm:$0xff] %vm2412_vm3, %v2411_v21 }
 0x32a PF: > { %s13_s12 = sadd.s32 1, %s2704_s12  }
 0x32b   : > { %p10_p4 = scmp.ge.s32.totalorder %s13_s12, 4  }
 0x32d   :  { %12 = sbr.rel (!%p10_p4) target bundleno = 1 (0x1), region = 70 }

// kernel: net_forward.9
= control target key start
LH: loop header
LB: loop body
LE: loop exit
PB: predicated region body
PF: predicated region fallthrough
CT: control target
= control target key end

     0   :  { %vm489_vm0 = vcmask 519168   ;;  %s1150_s1 = inlined_call_operand.vmem [shape: bf16[256,320], index: 1, kind: input, shape index: {}]   ;;  %s1151_s0 = inlined_call_operand.vmem [shape: bf16[32,256], index: 0, kind: input, shape index: {}]   ;;  %s1152_s2 = inlined_call_operand.vmem [shape: f32[1,320], index: 2, kind: input, shape index: {}]   ;;  %s1153_s3 = inlined_call_operand.vmem [shape: bf16[32,320], index: 3, kind: output, shape index: {}]  }
   0x1   :  { %v603_v0 = vld [vmem:[%s1150_s1 + $0xa8] sm:$0xf]  ;;  %v735_v1 = vld [vmem:[%s1150_s1 + $0xb0] sm:$0xf0]  ;;  %v734_v5 = vld [vmem:[%s1150_s1 + $0xac] sm:$0xf] }
   0x2   :  { %v699_v2 = vld [vmem:[%s1150_s1 + $0x168] sm:$0xf]  ;;  %v604_v3 = vor.u32 %v735_v1, %v603_v0  ;;  %v759_v4 = vld [vmem:[%s1150_s1 + $0x170] sm:$0xf0]  ;;  %v605_v6 = vld [vmem:[%s1150_s1 + $0xb4] sm:$0xf0] }
   0x3   :  { %v700_v7 = vor.u32 %v759_v4, %v699_v2  ;;  %v608_v8 = vor.u32 %v734_v5, %v605_v6  ;;  %v758_v9 = vld [vmem:[%s1150_s1 + $0x16c] sm:$0xf]  ;;  %v701_v10 = vld [vmem:[%s1150_s1 + $0x174] sm:$0xf0]  ;;  %v591_v11 = vld [vmem:[%s1150_s1 + $0x90] sm:$0xf] }
   0x4   :  { %366 = vmatpush.bf16.msra.mxu0 %v604_v3  ;;  %v704_v12 = vor.u32 %v758_v9, %v701_v10  ;;  %v732_v13 = vld [vmem:[%s1150_s1 + $0x98] sm:$0xf0]  ;;  %v687_v14 = vld [vmem:[%s1150_s1 + $0x150] sm:$0xf]  ;;  %v731_v18 = vld [vmem:[%s1150_s1 + $0x94] sm:$0xf] }
   0x5   :  { %v756_v15 = vld [vmem:[%s1150_s1 + $0x158] sm:$0xf0]  ;;  %385 = vmatpush.bf16.msra.mxu1 %v700_v7  ;;  %404 = vmatpush.bf16.msra.mxu2 %v608_v8  ;;  %v592_v16 = vor.u32 %v732_v13, %v591_v11  ;;  %v593_v19 = vld [vmem:[%s1150_s1 + $0x9c] sm:$0xf0]  ;;  %v755_v20 = vld [vmem:[%s1150_s1 + $0x154] sm:$0xf] }
   0x6   :  { %v688_v17 = vor.u32 %v756_v15, %v687_v14  ;;  %423 = vmatpush.bf16.msra.mxu3 %v704_v12  ;;  %v596_v21 = vor.u32 %v731_v18, %v593_v19  ;;  %v689_v22 = vld [vmem:[%s1150_s1 + $0x15c] sm:$0xf0]  ;;  %v579_v23 = vld [vmem:[%s1150_s1 + $0x78] sm:$0xf]  ;;  %v729_v24 = vld [vmem:[%s1150_s1 + $0x80] sm:$0xf0] }
   0x7   :  { %v692_v25 = vor.u32 %v755_v20, %v689_v22  ;;  %v675_v26 = vld [vmem:[%s1150_s1 + $0x138] sm:$0xf]  ;;  %v753_v27 = vld [vmem:[%s1150_s1 + $0x140] sm:$0xf0]  ;;  %v728_v28 = vld [vmem:[%s1150_s1 + $0x7c] sm:$0xf]  ;;  %v580_v29 = vor.u32 %v729_v24, %v579_v23 }
   0x8   :  { %367 = vmatpush.bf16.msra.mxu0 %v592_v16  ;;  %v581_v30 = vld [vmem:[%s1150_s1 + $0x84] sm:$0xf0]  ;;  %v752_v31 = vld [vmem:[%s1150_s1 + $0x13c] sm:$0xf]  ;;  %v676_v33 = vor.u32 %v753_v27, %v675_v26  ;;  %v567_v35 = vld [vmem:[%s1150_s1 + $0x60] sm:$0xf] }
   0x9   :  { %v677_v32 = vld [vmem:[%s1150_s1 + $0x144] sm:$0xf0]  ;;  %386 = vmatpush.bf16.msra.mxu1 %v688_v17  ;;  %405 = vmatpush.bf16.msra.mxu2 %v596_v21  ;;  %v584_v34 = vor.u32 %v728_v28, %v581_v30  ;;  %v726_v36 = vld [vmem:[%s1150_s1 + $0x68] sm:$0xf0]  ;;  %v663_v37 = vld [vmem:[%s1150_s1 + $0x120] sm:$0xf] }
   0xa   :  { %424 = vmatpush.bf16.msra.mxu3 %v692_v25  ;;  %v680_v38 = vor.u32 %v752_v31, %v677_v32  ;;  %v750_v39 = vld [vmem:[%s1150_s1 + $0x128] sm:$0xf0]  ;;  %v725_v40 = vld [vmem:[%s1150_s1 + $0x64] sm:$0xf]  ;;  %v569_v41 = vld [vmem:[%s1150_s1 + $0x6c] sm:$0xf0]  ;;  %v568_v44 = vor.u32 %v726_v36, %v567_v35 }
   0xb   :  { %v749_v42 = vld [vmem:[%s1150_s1 + $0x124] sm:$0xf]  ;;  %v665_v43 = vld [vmem:[%s1150_s1 + $0x12c] sm:$0xf0]  ;;  %v664_v45 = vor.u32 %v750_v39, %v663_v37  ;;  %v572_v46 = vor.u32 %v725_v40, %v569_v41  ;;  %v555_v47 = vld [vmem:[%s1150_s1 + $0x48] sm:$0xf] }
   0xc   :  { %368 = vmatpush.bf16.msra.mxu0 %v580_v29  ;;  %v723_v48 = vld [vmem:[%s1150_s1 + $0x50] sm:$0xf0]  ;;  %v651_v49 = vld [vmem:[%s1150_s1 + $0x108] sm:$0xf]  ;;  %v668_v50 = vor.u32 %v749_v42, %v665_v43  ;;  %v722_v52 = vld [vmem:[%s1150_s1 + $0x4c] sm:$0xf] }
   0xd   :  { %387 = vmatpush.bf16.msra.mxu1 %v676_v33  ;;  %406 = vmatpush.bf16.msra.mxu2 %v584_v34  ;;  %v747_v51 = vld [vmem:[%s1150_s1 + $0x110] sm:$0xf0]  ;;  %v557_v53 = vld [vmem:[%s1150_s1 + $0x54] sm:$0xf0]  ;;  %v746_v54 = vld [vmem:[%s1150_s1 + $0x10c] sm:$0xf]  ;;  %v556_v56 = vor.u32 %v723_v48, %v555_v47 }
   0xe   :  { %425 = vmatpush.bf16.msra.mxu3 %v680_v38  ;;  %v653_v55 = vld [vmem:[%s1150_s1 + $0x114] sm:$0xf0]  ;;  %v652_v57 = vor.u32 %v747_v51, %v651_v49  ;;  %v560_v58 = vor.u32 %v722_v52, %v557_v53  ;;  %v543_v59 = vld [vmem:[%s1150_s1 + $0x30] sm:$0xf]  ;;  %v720_v60 = vld [vmem:[%s1150_s1 + $0x38] sm:$0xf0] }
   0xf   :  { %v639_v61 = vld [vmem:[%s1150_s1 + $0xf0] sm:$0xf]  ;;  %v656_v62 = vor.u32 %v746_v54, %v653_v55  ;;  %v744_v63 = vld [vmem:[%s1150_s1 + $0xf8] sm:$0xf0]  ;;  %v719_v0 = vld [vmem:[%s1150_s1 + $0x34] sm:$0xf]  ;;  %v544_v4 = vor.u32 %v720_v60, %v543_v59 }
  0x10   :  { %369 = vmatpush.bf16.msra.mxu0 %v568_v44  ;;  %v545_v1 = vld [vmem:[%s1150_s1 + $0x3c] sm:$0xf0]  ;;  %v743_v2 = vld [vmem:[%s1150_s1 + $0xf4] sm:$0xf]  ;;  %v640_v5 = vor.u32 %v744_v63, %v639_v61  ;;  %v531_v7 = vld [vmem:[%s1150_s1 + $0x18] sm:$0xf] }
  0x11   :  { %388 = vmatpush.bf16.msra.mxu1 %v664_v45  ;;  %407 = vmatpush.bf16.msra.mxu2 %v572_v46  ;;  %v641_v3 = vld [vmem:[%s1150_s1 + $0xfc] sm:$0xf0]  ;;  %v548_v6 = vor.u32 %v719_v0, %v545_v1  ;;  %v717_v8 = vld [vmem:[%s1150_s1 + $0x20] sm:$0xf0]  ;;  %v627_v9 = vld [vmem:[%s1150_s1 + $0xd8] sm:$0xf] }
  0x12   :  { %426 = vmatpush.bf16.msra.mxu3 %v668_v50  ;;  %v644_v10 = vor.u32 %v743_v2, %v641_v3  ;;  %v741_v11 = vld [vmem:[%s1150_s1 + $0xe0] sm:$0xf0]  ;;  %v716_v12 = vld [vmem:[%s1150_s1 + $0x1c] sm:$0xf]  ;;  %v533_v13 = vld [vmem:[%s1150_s1 + $0x24] sm:$0xf0]  ;;  %v532_v16 = vor.u32 %v717_v8, %v531_v7 }
  0x13   :  { %v740_v14 = vld [vmem:[%s1150_s1 + $0xdc] sm:$0xf]  ;;  %v629_v15 = vld [vmem:[%s1150_s1 + $0xe4] sm:$0xf0]  ;;  %v519_v17 = vld [vmem:[%s1150_s1] sm:$0xf]  ;;  %v628_v19 = vor.u32 %v741_v11, %v627_v9  ;;  %v536_v20 = vor.u32 %v716_v12, %v533_v13 }
  0x14   :  { %370 = vmatpush.bf16.msra.mxu0 %v556_v56  ;;  %v714_v18 = vld [vmem:[%s1150_s1 + $0x8] sm:$0xf0]  ;;  %v615_v21 = vld [vmem:[%s1150_s1 + $0xc0] sm:$0xf]  ;;  %v713_v23 = vld [vmem:[%s1150_s1 + $0x4] sm:$0xf]  ;;  %v632_v24 = vor.u32 %v740_v14, %v629_v15 }
  0x15   :  { %389 = vmatpush.bf16.msra.mxu1 %v652_v57  ;;  %408 = vmatpush.bf16.msra.mxu2 %v560_v58  ;;  %v738_v22 = vld [vmem:[%s1150_s1 + $0xc8] sm:$0xf0]  ;;  %v521_v25 = vld [vmem:[%s1150_s1 + $0xc] sm:$0xf0]  ;;  %v737_v26 = vld [vmem:[%s1150_s1 + $0xc4] sm:$0xf]  ;;  %v520_v31 = vor.u32 %v714_v18, %v519_v17 }
  0x16   :  { %427 = vmatpush.bf16.msra.mxu3 %v656_v62  ;;  %v617_v27 = vld [vmem:[%s1150_s1 + $0xcc] sm:$0xf0]  ;;  %v503_v28 = vld [vmem:[%s1151_s0] sm:$0xf]  ;;  %v736_v30 = vld [vmem:[%s1150_s1 + $0xb8] sm:$0xf0]  ;;  %v616_v35 = vor.u32 %v738_v22, %v615_v21  ;;  %v524_v36 = vor.u32 %v713_v23, %v521_v25 }
  0x17   :  { %v611_v29 = vld [vmem:[%s1150_s1 + $0xb0] sm:$0xf]  ;;  %v710_v32 = vld [vmem:[%s1151_s0 + $0x4] sm:$0xf0]  ;;  %v760_v34 = vld [vmem:[%s1150_s1 + $0x178] sm:$0xf0]  ;;  %v620_v39 = vor.u32 %v737_v26, %v617_v27 }
  0x18   :  { %371 = vmatpush.bf16.msra.mxu0 %v544_v4  ;;  %v707_v33 = vld [vmem:[%s1150_s1 + $0x170] sm:$0xf]  ;;  %v709_v37 = vld [vmem:[%s1151_s0 + $0x4] sm:$0xf]  ;;  %v505_v38 = vld [vmem:[%s1151_s0 + $0x8] sm:$0xf0]  ;;  %v612_v40 = vor.u32 %v736_v30, %v611_v29  ;;  %v1013_v41 = vor.u32 %v710_v32, %v503_v28 }
  0x19   :  { %390 = vmatpush.bf16.msra.mxu1 %v640_v5  ;;  %409 = vmatpush.bf16.msra.mxu2 %v548_v6  ;;  %v708_v42 = vor.u32 %v760_v34, %v707_v33  ;;  %v599_v43 = vld [vmem:[%s1150_s1 + $0x98] sm:$0xf]  ;;  %v733_v44 = vld [vmem:[%s1150_s1 + $0xa0] sm:$0xf0]  ;;  %v1021_v45 = vor.u32 %v709_v37, %v505_v38  ;;  %v587_v50 = vld [vmem:[%s1150_s1 + $0x80] sm:$0xf] }
  0x1a   :  { %428 = vmatpush.bf16.msra.mxu3 %v644_v10  ;;  %v695_v46 = vld [vmem:[%s1150_s1 + $0x158] sm:$0xf]  ;;  %v757_v47 = vld [vmem:[%s1150_s1 + $0x160] sm:$0xf0]  ;;  %v600_v48 = vor.u32 %v733_v44, %v599_v43  ;;  %v730_v51 = vld [vmem:[%s1150_s1 + $0x88] sm:$0xf0] }
  0x1b   :  { %v696_v49 = vor.u32 %v757_v47, %v695_v46  ;;  %v683_v52 = vld [vmem:[%s1150_s1 + $0x140] sm:$0xf]  ;;  %v754_v53 = vld [vmem:[%s1150_s1 + $0x148] sm:$0xf0]  ;;  %v588_v54 = vor.u32 %v730_v51, %v587_v50  ;;  %v575_v56 = vld [vmem:[%s1150_s1 + $0x68] sm:$0xf] }
  0x1c   :  { %372 = vmatpush.bf16.msra.mxu0 %v532_v16  ;;  %v684_v55 = vor.u32 %v754_v53, %v683_v52  ;;  %v727_v57 = vld [vmem:[%s1150_s1 + $0x70] sm:$0xf0]  ;;  %v671_v58 = vld [vmem:[%s1150_s1 + $0x128] sm:$0xf]  ;;  %v511_v62 = vld [vmem:[%s1151_s0 + $0x10] sm:$0xf] }
  0x1d   :  { %391 = vmatpush.bf16.msra.mxu1 %v628_v19  ;;  %410 = vmatpush.bf16.msra.mxu2 %v536_v20  ;;  %v751_v59 = vld [vmem:[%s1150_s1 + $0x130] sm:$0xf0]  ;;  %v576_v60 = vor.u32 %v727_v57, %v575_v56  ;;  %v563_v63 = vld [vmem:[%s1150_s1 + $0x50] sm:$0xf]  ;;  %v724_v0 = vld [vmem:[%s1150_s1 + $0x58] sm:$0xf0] }
  0x1e   :  { %429 = vmatpush.bf16.msra.mxu3 %v632_v24  ;;  %v672_v61 = vor.u32 %v751_v59, %v671_v58  ;;  %v712_v1 = vld [vmem:[%s1151_s0 + $0x14] sm:$0xf0]  ;;  %v659_v2 = vld [vmem:[%s1150_s1 + $0x110] sm:$0xf]  ;;  %v748_v3 = vld [vmem:[%s1150_s1 + $0x118] sm:$0xf0]  ;;  %v564_v6 = vor.u32 %v724_v0, %v563_v63 }
  0x1f   :  { %v711_v4 = vld [vmem:[%s1151_s0 + $0x14] sm:$0xf]  ;;  %v513_v5 = vld [vmem:[%s1151_s0 + $0x18] sm:$0xf0]  ;;  %v512_v7 = vor.u32 %v712_v1, %v511_v62  ;;  %v660_v8 = vor.u32 %v748_v3, %v659_v2  ;;  %v551_v9 = vld [vmem:[%s1150_s1 + $0x38] sm:$0xf] }
  0x20   :  { %373 = vmatpush.bf16.msra.mxu0 %v520_v31  ;;  %v721_v10 = vld [vmem:[%s1150_s1 + $0x40] sm:$0xf0]  ;;  %v516_v11 = vor.u32 %v711_v4, %v513_v5  ;;  %v647_v12 = vld [vmem:[%s1150_s1 + $0xf8] sm:$0xf]  ;;  %v539_v16 = vld [vmem:[%s1150_s1 + $0x20] sm:$0xf] }
  0x21   :  { %392 = vmatpush.bf16.msra.mxu1 %v616_v35  ;;  %411 = vmatpush.bf16.msra.mxu2 %v524_v36  ;;  %v745_v13 = vld [vmem:[%s1150_s1 + $0x100] sm:$0xf0]  ;;  %v552_v14 = vor.u32 %v721_v10, %v551_v9  ;;  %v718_v17 = vld [vmem:[%s1150_s1 + $0x28] sm:$0xf0]  ;;  %v635_v18 = vld [vmem:[%s1150_s1 + $0xe0] sm:$0xf] }
  0x22   :  { %430 = vmatpush.bf16.msra.mxu3 %v620_v39  ;;  %v648_v15 = vor.u32 %v745_v13, %v647_v12  ;;  %v742_v19 = vld [vmem:[%s1150_s1 + $0xe8] sm:$0xf0]  ;;  %v540_v20 = vor.u32 %v718_v17, %v539_v16  ;;  %v527_v22 = vld [vmem:[%s1150_s1 + $0x8] sm:$0xf]  ;;  %v715_v23 = vld [vmem:[%s1150_s1 + $0x10] sm:$0xf0] }
  0x23   :  { %374 = vmatmul.bf16.vlgmr.msra.gmra.mxu0 %v1013_v41  ;;  %v636_v21 = vor.u32 %v742_v19, %v635_v18  ;;  %v623_v24 = vld [vmem:[%s1150_s1 + $0xc8] sm:$0xf]  ;;  %v739_v25 = vld [vmem:[%s1150_s1 + $0xd0] sm:$0xf0]  ;;  %v528_v26 = vor.u32 %v715_v23, %v527_v22  ;;  %v82_v28 = vld [vmem:[%s1152_s2] sm:$0x7] }
  0x24   :  { %393 = vmatmul.bf16.vlgmr.msra.gmra.mxu1 %v1021_v45  ;;  %412 = vmatmul.bf16.vlgmr.msra.gmra.mxu2 %v1013_v41  ;;  %v624_v27 = vor.u32 %v739_v25, %v623_v24  ;;  %v84_v29 = vperm.slane %v82_v28, 0  ;;  %v85_v33 = vperm.slane %v82_v28, 1 }
  0x25   :  { %761 = vmatpush.bf16.msrb.mxu2 %v612_v40  ;;  %461 = vmatpush.bf16.msrb.mxu1 %v708_v42 }
  0x26   :  { %431 = vmatmul.bf16.vlgmr.msra.gmra.mxu3 %v1021_v45  ;;  %442 = vmatpush.bf16.msrb.mxu0 %v612_v40 }
  0x27   :  { %769 = vmatpush.bf16.msrb.mxu3 %v708_v42 }
  0x29   :  { %762 = vmatpush.bf16.msrb.mxu2 %v600_v48  ;;  %462 = vmatpush.bf16.msrb.mxu1 %v696_v49 }
  0x2a   :  { %443 = vmatpush.bf16.msrb.mxu0 %v600_v48 }
  0x2b   :  { %770 = vmatpush.bf16.msrb.mxu3 %v696_v49 }
  0x2d   :  { %763 = vmatpush.bf16.msrb.mxu2 %v588_v54  ;;  %463 = vmatpush.bf16.msrb.mxu1 %v684_v55 }
  0x2e   :  { %444 = vmatpush.bf16.msrb.mxu0 %v588_v54 }
  0x2f   :  { %771 = vmatpush.bf16.msrb.mxu3 %v684_v55 }
  0x31   :  { %764 = vmatpush.bf16.msrb.mxu2 %v576_v60  ;;  %464 = vmatpush.bf16.msrb.mxu1 %v672_v61 }
  0x32   :  { %445 = vmatpush.bf16.msrb.mxu0 %v576_v60 }
  0x33   :  { %772 = vmatpush.bf16.msrb.mxu3 %v672_v61  ;;  %379 = vmatmul.bf16.gmra.mxu0 %v512_v7  ;;  %v86_v61 = vperm.slane %v82_v28, 2 }
  0x34   :  { %398 = vmatmul.bf16.gmra.mxu1 %v516_v11  ;;  %417 = vmatmul.bf16.gmra.mxu2 %v512_v7 }
  0x35   :  { %765 = vmatpush.bf16.msrb.mxu2 %v564_v6  ;;  %465 = vmatpush.bf16.msrb.mxu1 %v660_v8 }
  0x36   :  { %436 = vmatmul.bf16.gmra.mxu3 %v516_v11  ;;  %446 = vmatpush.bf16.msrb.mxu0 %v564_v6 }
  0x37   :  { %773 = vmatpush.bf16.msrb.mxu3 %v660_v8 }
  0x39   :  { %766 = vmatpush.bf16.msrb.mxu2 %v552_v14  ;;  %466 = vmatpush.bf16.msrb.mxu1 %v648_v15 }
  0x3a   :  { %447 = vmatpush.bf16.msrb.mxu0 %v552_v14 }
  0x3b   :  { %774 = vmatpush.bf16.msrb.mxu3 %v648_v15 }
  0x3d   :  { %767 = vmatpush.bf16.msrb.mxu2 %v540_v20  ;;  %467 = vmatpush.bf16.msrb.mxu1 %v636_v21 }
  0x3e   :  { %448 = vmatpush.bf16.msrb.mxu0 %v540_v20 }
  0x3f   :  { %775 = vmatpush.bf16.msrb.mxu3 %v636_v21 }
  0x41   :  { %768 = vmatpush.bf16.msrb.mxu2 %v528_v26  ;;  %468 = vmatpush.bf16.msrb.mxu1 %v624_v27 }
  0x42   :  { %449 = vmatpush.bf16.msrb.mxu0 %v528_v26 }
  0x43   :  { %776 = vmatpush.bf16.msrb.mxu3 %v624_v27 }
  0x44   :  { %455 = vmatmul.bf16.vlgmr.msrb.gmra.mxu2 %v512_v7  ;;  %469 = vmatmul.bf16.vlgmr.msrb.gmra.mxu1 %v1021_v45 }
  0x45   :  { %450 = vmatmul.bf16.vlgmr.msrb.gmra.mxu0 %v1013_v41 }
  0x46   :  { %474 = vmatmul.bf16.vlgmr.msrb.gmra.mxu3 %v516_v11 }
  0xa0   :  { %v375_v30 = vpop.f32.mrf.mxu0 }
  0xa1   :  { %v394_v31 = vpop.f32.mrf.mxu1  ;;  %v376_v32 = vadd.f32 %v375_v30, %v84_v29 }
  0xa3   :  { %v395_v35 = vadd.f32 %v394_v31, %v376_v32 }
  0xa7   :  { %v413_v34 = vpop.f32.mrf.mxu2 }
  0xa8   :  { %v414_v36 = vadd.f32 %v413_v34, %v85_v33  ;;  %v377_v38 = vpop.f32.mrf.mxu0 }
  0xa9   :  { %v432_v37 = vpop.f32.mrf.mxu3  ;;  %v396_v39 = vpop.f32.mrf.mxu1  ;;  %v378_v42 = vadd.f32 %v377_v38, %v84_v29 }
  0xaa   :  { %v433_v40 = vadd.f32 %v432_v37, %v414_v36 }
  0xab   :  { %v397_v48 = vadd.f32 %v396_v39, %v378_v42 }
  0xac   :  { %v480_v41 = vpack.c.bf16 %v433_v40, %v395_v35 }
  0xae   :  { %488 = vst [vmem:[%s1153_s3] sm:$0xff] %v480_v41 }
  0xaf   :  { %v415_v43 = vpop.f32.mrf.mxu2 }
  0xb0   :  { %v416_v44 = vadd.f32 %v415_v43, %v85_v33  ;;  %v380_v46 = vpop.f32.mrf.mxu0 }
  0xb1   :  { %v434_v45 = vpop.f32.mrf.mxu3  ;;  %v399_v47 = vpop.f32.mrf.mxu1  ;;  %v381_v51 = vadd.f32 %v380_v46, %v84_v29 }
  0xb2   :  { %v435_v49 = vadd.f32 %v434_v45, %v416_v44 }
  0xb3   :  { %v400_v53 = vadd.f32 %v399_v47, %v381_v51 }
  0xb4   :  { %v482_v50 = vpack.c.bf16 %v435_v49, %v397_v48 }
  0xb6   :  { %491 = vst [vmem:[%s1153_s3 + $0xc] sm:$0xff] %v482_v50 }
  0xb7   :  { %v418_v52 = vpop.f32.mrf.mxu2 }
  0xb8   :  { %v419_v54 = vadd.f32 %v418_v52, %v85_v33  ;;  %v382_v56 = vpop.f32.mrf.mxu0 }
  0xb9   :  { %v437_v55 = vpop.f32.mrf.mxu3  ;;  %v401_v57 = vpop.f32.mrf.mxu1  ;;  %v383_v60 = vadd.f32 %v382_v56, %v84_v29 }
  0xba   :  { %v438_v58 = vadd.f32 %v437_v55, %v419_v54 }
  0xbb   :  { %v402_v2 = vadd.f32 %v401_v57, %v383_v60 }
  0xbc   :  { %v484_v59 = vpack.c.bf16 %v438_v58, %v400_v53 }
  0xbe   :  { %493 = vst [vmem:[%s1153_s3 + $0x18] sm:$0xff] %v484_v59 }
  0xbf   :  { %v420_v62 = vpop.f32.mrf.mxu2 }
  0xc0   :  { %v421_v63 = vadd.f32 %v420_v62, %v85_v33 }
  0xc1   :  { %v439_v0 = vpop.f32.mrf.mxu3  ;;  %v470_v5 = vpop.f32.mrf.mxu1 }
  0xc2   :  { %v451_v1 = vpop.f32.mrf.mxu0  ;;  %v440_v3 = vadd.f32 %v439_v0, %v421_v63 }
  0xc3   :  { %v452_v4 = vadd.f32 %v451_v1, %v86_v61 }
  0xc4   :  { %v486_v6 = vpack.c.bf16 %v440_v3, %v402_v2 }
  0xc5   :  { %v471_v7 = vadd.f32 %v470_v5, %v452_v4 }
  0xc6   :  { %495 = vst [vmem:[%s1153_s3 + $0x24] sm:$0xff] %v486_v6 }
  0xc7   :  { %v481_v8 = vpack.c.bf16 %v471_v7, %v471_v7  ;;  %v456_v9 = vpop.f32.mrf.mxu2 }
  0xc8   :  { %v457_v10 = vadd.f32 %v456_v9, %v86_v61 }
  0xc9   :  { %490 = vst.msk [vmem:[%s1153_s3 + $0x8] sm:$0xf] %vm489_vm0, %v481_v8  ;;  %v475_v11 = vpop.f32.mrf.mxu3  ;;  %v472_v15 = vpop.f32.mrf.mxu1 }
  0xca   :  { %v453_v12 = vpop.f32.mrf.mxu0  ;;  %v476_v13 = vadd.f32 %v475_v11, %v457_v10 }
  0xcb   :  { %v454_v14 = vadd.f32 %v453_v12, %v86_v61 }
  0xcc   :  { %v485_v16 = vpack.c.bf16 %v476_v13, %v476_v13 }
  0xcd   :  { %v473_v17 = vadd.f32 %v472_v15, %v454_v14 }
  0xce   :  { %494 = vst.msk [vmem:[%s1153_s3 + $0x20] sm:$0xf] %vm489_vm0, %v485_v16 }
  0xcf   :  { %v483_v18 = vpack.c.bf16 %v473_v17, %v473_v17  ;;  %v458_v19 = vpop.f32.mrf.mxu2 }
  0xd0   :  { %v459_v20 = vadd.f32 %v458_v19, %v86_v61 }
  0xd1   :  { %492 = vst.msk [vmem:[%s1153_s3 + $0x14] sm:$0xf] %vm489_vm0, %v483_v18  ;;  %v477_v21 = vpop.f32.mrf.mxu3 }
  0xd2   :  { %v478_v22 = vadd.f32 %v477_v21, %v459_v20 }
  0xd4   :  { %v487_v23 = vpack.c.bf16 %v478_v22, %v478_v22 }
  0xd6   :  { %496 = vst.msk [vmem:[%s1153_s3 + $0x2c] sm:$0xf] %vm489_vm0, %v487_v23 }

// kernel: net_forward.8
= control target key start
LH: loop header
LB: loop body
LE: loop exit
PB: predicated region body
PF: predicated region fallthrough
CT: control target
= control target key end

     0   :  { %s2444_s12 = smov 0   ;;  %s3387_s0 = inlined_call_operand.vmem [shape: f32[2,38,128], index: 0, kind: input, shape index: {}]   ;;  %s3388_s1 = inlined_call_operand.vmem [shape: bf16[9,128,256], index: 1, kind: input, shape index: {}]   ;;  %s3389_s2 = inlined_call_operand.vmem [shape: f32[1,256], index: 2, kind: input, shape index: {}]   ;;  %s3390_s3 = inlined_call_operand.vmem [shape: f32[2,24,256], index: 3, kind: output, shape index: {}]  }
   0x1 LB: > { %s1533_s13 = sadd.s32 4294967295, %s2422_s12   ;;  %p1537_p0 = scmp.ge.s32.totalorder %s2422_s12, 1  ;;  %s2422_s12 = sphi %s2444_s12, %s13_s12  }
   0x2   : > { %p137_p1 = scmp.lt.s32.totalorder %s2422_s12, 3 }
   0x4   : > { %p138_p2 = pnand %p1537_p0, %p137_p1 }
   0x5   : > { %p161_p3 = scmp.lt.s32.totalorder (!%p138_p2), %s1533_s13, 1 }
   0x6   : > { %141 = sbr.rel (%p138_p2) target bundleno = 317 (0x13d), region = 32 }
   0xb   : > { %v1614_v0 = vld [vmem:[%s3388_s1 + $0xf0] sm:$0xf]  ;;  %v2277_v1 = vld [vmem:[%s3388_s1 + $0xf4] sm:$0xf0]  ;;  %v2276_v2 = vld [vmem:[%s3388_s1 + $0xf4] sm:$0xf] }
   0xc   : > { %v1615_v3 = vor.u32 %v2277_v1, %v1614_v0  ;;  %v1616_v4 = vld [vmem:[%s3388_s1 + $0xf8] sm:$0xf0]  ;;  %v1678_v5 = vld [vmem:[%s3388_s1 + $0x70] sm:$0xf]  ;;  %v2261_v6 = vld [vmem:[%s3388_s1 + $0x74] sm:$0xf0] }
   0xd   : > { %v1619_v7 = vor.u32 %v2276_v2, %v1616_v4  ;;  %v1679_v8 = vor.u32 %v2261_v6, %v1678_v5  ;;  %v2260_v9 = vld [vmem:[%s3388_s1 + $0x74] sm:$0xf]  ;;  %v1680_v10 = vld [vmem:[%s3388_s1 + $0x78] sm:$0xf0]  ;;  %v1606_v11 = vld [vmem:[%s3388_s1 + $0xe0] sm:$0xf] }
   0xe   : > { %294 = vmatpush.bf16.msra.mxu0 %v1615_v3  ;;  %v1683_v12 = vor.u32 %v2260_v9, %v1680_v10  ;;  %v2275_v13 = vld [vmem:[%s3388_s1 + $0xe4] sm:$0xf0]  ;;  %v2274_v14 = vld [vmem:[%s3388_s1 + $0xe4] sm:$0xf]  ;;  %v1608_v15 = vld [vmem:[%s3388_s1 + $0xe8] sm:$0xf0] }
   0xf   : > { %312 = vmatpush.bf16.msra.mxu1 %v1619_v7  ;;  %410 = vmatpush.bf16.msra.mxu2 %v1679_v8  ;;  %v1607_v16 = vor.u32 %v2275_v13, %v1606_v11  ;;  %v1611_v17 = vor.u32 %v2274_v14, %v1608_v15  ;;  %v1670_v18 = vld [vmem:[%s3388_s1 + $0x60] sm:$0xf]  ;;  %v2259_v19 = vld [vmem:[%s3388_s1 + $0x64] sm:$0xf0]  ;;  %v2258_v20 = vld [vmem:[%s3388_s1 + $0x64] sm:$0xf] }
  0x10   : > { %428 = vmatpush.bf16.msra.mxu3 %v1683_v12  ;;  %v1671_v21 = vor.u32 %v2259_v19, %v1670_v18  ;;  %v1672_v22 = vld [vmem:[%s3388_s1 + $0x68] sm:$0xf0]  ;;  %v1598_v23 = vld [vmem:[%s3388_s1 + $0xd0] sm:$0xf]  ;;  %v2273_v24 = vld [vmem:[%s3388_s1 + $0xd4] sm:$0xf0] }
  0x11   : > { %v1675_v25 = vor.u32 %v2258_v20, %v1672_v22  ;;  %v2272_v26 = vld [vmem:[%s3388_s1 + $0xd4] sm:$0xf]  ;;  %v1600_v27 = vld [vmem:[%s3388_s1 + $0xd8] sm:$0xf0]  ;;  %v1662_v28 = vld [vmem:[%s3388_s1 + $0x50] sm:$0xf]  ;;  %v1599_v29 = vor.u32 %v2273_v24, %v1598_v23 }
  0x12   : > { %295 = vmatpush.bf16.msra.mxu0 %v1607_v16  ;;  %v2257_v30 = vld [vmem:[%s3388_s1 + $0x54] sm:$0xf0]  ;;  %v2256_v31 = vld [vmem:[%s3388_s1 + $0x54] sm:$0xf]  ;;  %v1664_v32 = vld [vmem:[%s3388_s1 + $0x58] sm:$0xf0]  ;;  %v1603_v33 = vor.u32 %v2272_v26, %v1600_v27 }
  0x13   : > { %313 = vmatpush.bf16.msra.mxu1 %v1611_v17  ;;  %411 = vmatpush.bf16.msra.mxu2 %v1671_v21  ;;  %v1663_v34 = vor.u32 %v2257_v30, %v1662_v28  ;;  %v1590_v35 = vld [vmem:[%s3388_s1 + $0xc0] sm:$0xf]  ;;  %v2271_v36 = vld [vmem:[%s3388_s1 + $0xc4] sm:$0xf0]  ;;  %v2270_v37 = vld [vmem:[%s3388_s1 + $0xc4] sm:$0xf]  ;;  %v1667_v38 = vor.u32 %v2256_v31, %v1664_v32 }
  0x14   : > { %429 = vmatpush.bf16.msra.mxu3 %v1675_v25  ;;  %v1592_v39 = vld [vmem:[%s3388_s1 + $0xc8] sm:$0xf0]  ;;  %v1654_v40 = vld [vmem:[%s3388_s1 + $0x40] sm:$0xf]  ;;  %v2255_v41 = vld [vmem:[%s3388_s1 + $0x44] sm:$0xf0]  ;;  %v1591_v44 = vor.u32 %v2271_v36, %v1590_v35 }
  0x15   : > { %v2254_v42 = vld [vmem:[%s3388_s1 + $0x44] sm:$0xf]  ;;  %v1656_v43 = vld [vmem:[%s3388_s1 + $0x48] sm:$0xf0]  ;;  %v1595_v45 = vor.u32 %v2270_v37, %v1592_v39  ;;  %v1655_v46 = vor.u32 %v2255_v41, %v1654_v40  ;;  %v1582_v47 = vld [vmem:[%s3388_s1 + $0xb0] sm:$0xf] }
  0x16   : > { %296 = vmatpush.bf16.msra.mxu0 %v1599_v29  ;;  %v2269_v48 = vld [vmem:[%s3388_s1 + $0xb4] sm:$0xf0]  ;;  %v2268_v49 = vld [vmem:[%s3388_s1 + $0xb4] sm:$0xf]  ;;  %v1659_v50 = vor.u32 %v2254_v42, %v1656_v43  ;;  %v1584_v51 = vld [vmem:[%s3388_s1 + $0xb8] sm:$0xf0] }
  0x17   : > { %314 = vmatpush.bf16.msra.mxu1 %v1603_v33  ;;  %412 = vmatpush.bf16.msra.mxu2 %v1663_v34  ;;  %v1646_v52 = vld [vmem:[%s3388_s1 + $0x30] sm:$0xf]  ;;  %v2253_v53 = vld [vmem:[%s3388_s1 + $0x34] sm:$0xf0]  ;;  %v2252_v54 = vld [vmem:[%s3388_s1 + $0x34] sm:$0xf]  ;;  %v1583_v56 = vor.u32 %v2269_v48, %v1582_v47  ;;  %v1587_v57 = vor.u32 %v2268_v49, %v1584_v51 }
  0x18   : > { %430 = vmatpush.bf16.msra.mxu3 %v1667_v38  ;;  %v1648_v55 = vld [vmem:[%s3388_s1 + $0x38] sm:$0xf0]  ;;  %v1647_v58 = vor.u32 %v2253_v53, %v1646_v52  ;;  %v1574_v59 = vld [vmem:[%s3388_s1 + $0xa0] sm:$0xf]  ;;  %v2267_v60 = vld [vmem:[%s3388_s1 + $0xa4] sm:$0xf0] }
  0x19   : > { %v2266_v61 = vld [vmem:[%s3388_s1 + $0xa4] sm:$0xf]  ;;  %v1651_v62 = vor.u32 %v2252_v54, %v1648_v55  ;;  %v1576_v63 = vld [vmem:[%s3388_s1 + $0xa8] sm:$0xf0]  ;;  %v1638_v0 = vld [vmem:[%s3388_s1 + $0x20] sm:$0xf]  ;;  %v1575_v4 = vor.u32 %v2267_v60, %v1574_v59 }
  0x1a   : > { %297 = vmatpush.bf16.msra.mxu0 %v1591_v44  ;;  %v2251_v1 = vld [vmem:[%s3388_s1 + $0x24] sm:$0xf0]  ;;  %v2250_v2 = vld [vmem:[%s3388_s1 + $0x24] sm:$0xf]  ;;  %v1640_v3 = vld [vmem:[%s3388_s1 + $0x28] sm:$0xf0]  ;;  %v1579_v6 = vor.u32 %v2266_v61, %v1576_v63 }
  0x1b   : > { %315 = vmatpush.bf16.msra.mxu1 %v1595_v45  ;;  %413 = vmatpush.bf16.msra.mxu2 %v1655_v46  ;;  %v1566_v5 = vld [vmem:[%s3388_s1 + $0x90] sm:$0xf]  ;;  %v1639_v7 = vor.u32 %v2251_v1, %v1638_v0  ;;  %v2265_v8 = vld [vmem:[%s3388_s1 + $0x94] sm:$0xf0]  ;;  %v2264_v9 = vld [vmem:[%s3388_s1 + $0x94] sm:$0xf]  ;;  %v1643_v11 = vor.u32 %v2250_v2, %v1640_v3 }
  0x1c   : > { %431 = vmatpush.bf16.msra.mxu3 %v1659_v50  ;;  %v1568_v10 = vld [vmem:[%s3388_s1 + $0x98] sm:$0xf0]  ;;  %v1630_v12 = vld [vmem:[%s3388_s1 + $0x10] sm:$0xf]  ;;  %v2249_v13 = vld [vmem:[%s3388_s1 + $0x14] sm:$0xf0]  ;;  %v1567_v16 = vor.u32 %v2265_v8, %v1566_v5 }
  0x1d   : > { %v2248_v14 = vld [vmem:[%s3388_s1 + $0x14] sm:$0xf]  ;;  %v1632_v15 = vld [vmem:[%s3388_s1 + $0x18] sm:$0xf0]  ;;  %v1558_v17 = vld [vmem:[%s3388_s1 + $0x80] sm:$0xf]  ;;  %v1571_v19 = vor.u32 %v2264_v9, %v1568_v10  ;;  %v1631_v20 = vor.u32 %v2249_v13, %v1630_v12 }
  0x1e   : > { %298 = vmatpush.bf16.msra.mxu0 %v1583_v56  ;;  %v2263_v18 = vld [vmem:[%s3388_s1 + $0x84] sm:$0xf0]  ;;  %s3392_s13 = smov (!%p161_p3, %s1533_s13), 1  ;;  %v2262_v21 = vld [vmem:[%s3388_s1 + $0x84] sm:$0xf]  ;;  %v1635_v24 = vor.u32 %v2248_v14, %v1632_v15 }
  0x1f   : > { %316 = vmatpush.bf16.msra.mxu1 %v1587_v57  ;;  %414 = vmatpush.bf16.msra.mxu2 %v1647_v58  ;;  %v1560_v22 = vld [vmem:[%s3388_s1 + $0x88] sm:$0xf0]  ;;  %v1622_v23 = vld [vmem:[%s3388_s1] sm:$0xf]  ;;  %v2247_v25 = vld [vmem:[%s3388_s1 + $0x4] sm:$0xf0]  ;;  %v1559_v30 = vor.u32 %v2263_v18, %v1558_v17 }
  0x20   : > { %432 = vmatpush.bf16.msra.mxu3 %v1651_v62  ;;  %v2246_v26 = vld [vmem:[%s3388_s1 + $0x4] sm:$0xf]  ;;  %s2406_s15 = smul.u32 40, %s3392_s13  ;;  %v1624_v27 = vld [vmem:[%s3388_s1 + $0x8] sm:$0xf0]  ;;  %v1563_v34 = vor.u32 %v2262_v21, %v1560_v22  ;;  %v1623_v35 = vor.u32 %v2247_v25, %v1622_v23 }
  0x21   : > { %v1758_v28 = vld [vmem:[%s3388_s1 + $0x170] sm:$0xf]  ;;  %v2293_v29 = vld [vmem:[%s3388_s1 + $0x174] sm:$0xf0]  ;;  %v2292_v31 = vld [vmem:[%s3388_s1 + $0x174] sm:$0xf]  ;;  %v1627_v39 = vor.u32 %v2246_v26, %v1624_v27 }
  0x22   : > { %299 = vmatpush.bf16.msra.mxu0 %v1575_v4  ;;  %s2660_s24 = scalar_lea.vmem %s3387_s0, %s2406_s15  ;;  %v1760_v32 = vld [vmem:[%s3388_s1 + $0x178] sm:$0xf0]  ;;  %v1838_v33 = vld [vmem:[%s3388_s1 + $0x1f0] sm:$0xf]  ;;  %v1759_v41 = vor.u32 %v2293_v29, %v1758_v28  ;;  %v2309_v42 = vld [vmem:[%s3388_s1 + $0x1f4] sm:$0xf0] }
  0x23   : > { %317 = vmatpush.bf16.msra.mxu1 %v1579_v6  ;;  %415 = vmatpush.bf16.msra.mxu2 %v1639_v7  ;;  %v192_v36 = vld [vmem:[%s2660_s24 + $0x1] sm:$0xff]  ;;  %v193_v37 = vld [vmem:[%s2660_s24 + $0x9] sm:$0xff]  ;;  %v2308_v43 = vld [vmem:[%s3388_s1 + $0x1f4] sm:$0xf]  ;;  %v1763_v45 = vor.u32 %v2292_v31, %v1760_v32  ;;  %v1839_v52 = vor.u32 %v2309_v42, %v1838_v33  ;;  %s2407_s11 = smul.u32 48, %s3392_s13 }
  0x24   : > { %433 = vmatpush.bf16.msra.mxu3 %v1643_v11  ;;  %v171_v38 = vld [vmem:[%s2660_s24] sm:$0xff]  ;;  %v2675_v40 = vld [vmem:[%s2660_s24 + $0x8] sm:$0xff]  ;;  %v195_v44 = vpack.c.bf16 %v193_v37, %v192_v36  ;;  %v1840_v46 = vld [vmem:[%s3388_s1 + $0x1f8] sm:$0xf0] }
  0x25   : > { %v1750_v47 = vld [vmem:[%s3388_s1 + $0x160] sm:$0xf]  ;;  %v2291_v48 = vld [vmem:[%s3388_s1 + $0x164] sm:$0xf0]  ;;  %v174_v49 = vpack.c.bf16 %v2675_v40, %v171_v38  ;;  %v2290_v50 = vld [vmem:[%s3388_s1 + $0x164] sm:$0xf]  ;;  %v1843_v53 = vor.u32 %v2308_v43, %v1840_v46  ;;  %s3376_s16 = scalar_lea.vmem %s3390_s3, %s2407_s11 }
  0x26   : > { %300 = vmatpush.bf16.msra.mxu0 %v1567_v16  ;;  %v1752_v51 = vld [vmem:[%s3388_s1 + $0x168] sm:$0xf0]  ;;  %v1751_v54 = vor.u32 %v2291_v48, %v1750_v47  ;;  %v1830_v55 = vld [vmem:[%s3388_s1 + $0x1e0] sm:$0xf]  ;;  %v2307_v56 = vld [vmem:[%s3388_s1 + $0x1e4] sm:$0xf0] }
  0x27   : > { %318 = vmatpush.bf16.msra.mxu1 %v1571_v19  ;;  %416 = vmatpush.bf16.msra.mxu2 %v1631_v20  ;;  %v2306_v57 = vld [vmem:[%s3388_s1 + $0x1e4] sm:$0xf]  ;;  %v1755_v58 = vor.u32 %v2290_v50, %v1752_v51  ;;  %v1832_v59 = vld [vmem:[%s3388_s1 + $0x1e8] sm:$0xf0]  ;;  %v1742_v60 = vld [vmem:[%s3388_s1 + $0x150] sm:$0xf]  ;;  %v1831_v0 = vor.u32 %v2307_v56, %v1830_v55 }
  0x28   : > { %434 = vmatpush.bf16.msra.mxu3 %v1635_v24  ;;  %v2289_v61 = vld [vmem:[%s3388_s1 + $0x154] sm:$0xf0]  ;;  %v2288_v62 = vld [vmem:[%s3388_s1 + $0x154] sm:$0xf]  ;;  %v1744_v63 = vld [vmem:[%s3388_s1 + $0x158] sm:$0xf0]  ;;  %v1835_v1 = vor.u32 %v2306_v57, %v1832_v59 }
  0x29   : > { %v1743_v2 = vor.u32 %v2289_v61, %v1742_v60  ;;  %v1822_v3 = vld [vmem:[%s3388_s1 + $0x1d0] sm:$0xf]  ;;  %v2305_v4 = vld [vmem:[%s3388_s1 + $0x1d4] sm:$0xf0]  ;;  %v2304_v5 = vld [vmem:[%s3388_s1 + $0x1d4] sm:$0xf]  ;;  %v1747_v6 = vor.u32 %v2288_v62, %v1744_v63 }
  0x2a   : > { %301 = vmatpush.bf16.msra.mxu0 %v1559_v30  ;;  %v1824_v7 = vld [vmem:[%s3388_s1 + $0x1d8] sm:$0xf0]  ;;  %v1734_v8 = vld [vmem:[%s3388_s1 + $0x140] sm:$0xf]  ;;  %v2287_v9 = vld [vmem:[%s3388_s1 + $0x144] sm:$0xf0]  ;;  %v1823_v12 = vor.u32 %v2305_v4, %v1822_v3 }
  0x2b   : > { %319 = vmatpush.bf16.msra.mxu1 %v1563_v34  ;;  %417 = vmatpush.bf16.msra.mxu2 %v1623_v35  ;;  %v2286_v10 = vld [vmem:[%s3388_s1 + $0x144] sm:$0xf]  ;;  %v1736_v11 = vld [vmem:[%s3388_s1 + $0x148] sm:$0xf0]  ;;  %v1827_v13 = vor.u32 %v2304_v5, %v1824_v7  ;;  %v1735_v14 = vor.u32 %v2287_v9, %v1734_v8  ;;  %v1814_v15 = vld [vmem:[%s3388_s1 + $0x1c0] sm:$0xf] }
  0x2c   : > { %435 = vmatpush.bf16.msra.mxu3 %v1627_v39  ;;  %v2303_v16 = vld [vmem:[%s3388_s1 + $0x1c4] sm:$0xf0]  ;;  %v2302_v17 = vld [vmem:[%s3388_s1 + $0x1c4] sm:$0xf]  ;;  %v1739_v18 = vor.u32 %v2286_v10, %v1736_v11  ;;  %v1816_v19 = vld [vmem:[%s3388_s1 + $0x1c8] sm:$0xf0] }
  0x2d   : > { %302 = vmatmul.bf16.vlgmr.msra.gmra.mxu0 %v195_v44  ;;  %v1726_v20 = vld [vmem:[%s3388_s1 + $0x130] sm:$0xf]  ;;  %v2285_v21 = vld [vmem:[%s3388_s1 + $0x134] sm:$0xf0]  ;;  %v2284_v23 = vld [vmem:[%s3388_s1 + $0x134] sm:$0xf]  ;;  %v1815_v25 = vor.u32 %v2303_v16, %v1814_v15  ;;  %v1819_v27 = vor.u32 %v2302_v17, %v1816_v19 }
  0x2e   : > { %548 = vmatpush.bf16.msrb.mxu0 %v1759_v41  ;;  %320 = vmatmul.bf16.vlgmr.msra.gmra.mxu1 %v195_v44  ;;  %v194_v22 = vld [vmem:[%s2660_s24 + $0x11] sm:$0xff]  ;;  %v1728_v24 = vld [vmem:[%s3388_s1 + $0x138] sm:$0xf0]  ;;  %v1727_v28 = vor.u32 %v2285_v21, %v1726_v20  ;;  %v1718_v35 = vld [vmem:[%s3388_s1 + $0x120] sm:$0xf] }
  0x2f   : > { %566 = vmatpush.bf16.msrb.mxu1 %v1763_v45  ;;  %418 = vmatmul.bf16.vlgmr.msra.gmra.mxu2 %v174_v49  ;;  %v2773_v26 = vld [vmem:[%s2660_s24 + $0x10] sm:$0xff]  ;;  %v2301_v30 = vld [vmem:[%s3388_s1 + $0x1b4] sm:$0xf0]  ;;  %v196_v32 = vpack.c.bf16 %v194_v22, %v194_v22  ;;  %v1731_v33 = vor.u32 %v2284_v23, %v1728_v24  ;;  %v1808_v34 = vld [vmem:[%s3388_s1 + $0x1b8] sm:$0xf0] }
  0x30   : > { %436 = vmatmul.bf16.vlgmr.msra.gmra.mxu3 %v174_v49  ;;  %692 = vmatpush.bf16.msrb.mxu2 %v1839_v52  ;;  %v1806_v29 = vld [vmem:[%s3388_s1 + $0x1b0] sm:$0xf]  ;;  %v2300_v31 = vld [vmem:[%s3388_s1 + $0x1b4] sm:$0xf]  ;;  %v2283_v36 = vld [vmem:[%s3388_s1 + $0x124] sm:$0xf0]  ;;  %v175_v37 = vpack.c.bf16 %v2773_v26, %v2773_v26 }
  0x31   : > { %710 = vmatpush.bf16.msrb.mxu3 %v1843_v53  ;;  %v2282_v38 = vld [vmem:[%s3388_s1 + $0x124] sm:$0xf]  ;;  %v1720_v39 = vld [vmem:[%s3388_s1 + $0x128] sm:$0xf0]  ;;  %v1807_v41 = vor.u32 %v2301_v30, %v1806_v29  ;;  %v1811_v42 = vor.u32 %v2300_v31, %v1808_v34  ;;  %v1719_v43 = vor.u32 %v2283_v36, %v1718_v35  ;;  %v1798_v44 = vld [vmem:[%s3388_s1 + $0x1a0] sm:$0xf] }
  0x32   : > { %549 = vmatpush.bf16.msrb.mxu0 %v1751_v54  ;;  %v2299_v45 = vld [vmem:[%s3388_s1 + $0x1a4] sm:$0xf0]  ;;  %v2298_v46 = vld [vmem:[%s3388_s1 + $0x1a4] sm:$0xf]  ;;  %v1723_v47 = vor.u32 %v2282_v38, %v1720_v39  ;;  %v1800_v48 = vld [vmem:[%s3388_s1 + $0x1a8] sm:$0xf0] }
  0x33   : > { %567 = vmatpush.bf16.msrb.mxu1 %v1755_v58  ;;  %v1710_v49 = vld [vmem:[%s3388_s1 + $0x110] sm:$0xf]  ;;  %v2281_v50 = vld [vmem:[%s3388_s1 + $0x114] sm:$0xf0]  ;;  %v2280_v51 = vld [vmem:[%s3388_s1 + $0x114] sm:$0xf]  ;;  %v1799_v53 = vor.u32 %v2299_v45, %v1798_v44  ;;  %v1803_v55 = vor.u32 %v2298_v46, %v1800_v48 }
  0x34   : > { %693 = vmatpush.bf16.msrb.mxu2 %v1831_v0  ;;  %v1712_v52 = vld [vmem:[%s3388_s1 + $0x118] sm:$0xf0]  ;;  %v1790_v54 = vld [vmem:[%s3388_s1 + $0x190] sm:$0xf]  ;;  %v1711_v56 = vor.u32 %v2281_v50, %v1710_v49  ;;  %v2297_v57 = vld [vmem:[%s3388_s1 + $0x194] sm:$0xf0] }
  0x35   : > { %711 = vmatpush.bf16.msrb.mxu3 %v1835_v1  ;;  %v2296_v58 = vld [vmem:[%s3388_s1 + $0x194] sm:$0xf]  ;;  %v1792_v59 = vld [vmem:[%s3388_s1 + $0x198] sm:$0xf0]  ;;  %v1715_v60 = vor.u32 %v2280_v51, %v1712_v52  ;;  %v1702_v61 = vld [vmem:[%s3388_s1 + $0x100] sm:$0xf]  ;;  %v1791_v3 = vor.u32 %v2297_v57, %v1790_v54 }
  0x36   : > { %550 = vmatpush.bf16.msrb.mxu0 %v1743_v2  ;;  %v2279_v62 = vld [vmem:[%s3388_s1 + $0x104] sm:$0xf0]  ;;  %v2278_v63 = vld [vmem:[%s3388_s1 + $0x104] sm:$0xf]  ;;  %v1704_v0 = vld [vmem:[%s3388_s1 + $0x108] sm:$0xf0]  ;;  %v1795_v7 = vor.u32 %v2296_v58, %v1792_v59 }
  0x37   : > { %568 = vmatpush.bf16.msrb.mxu1 %v1747_v6  ;;  %v1918_v1 = vld [vmem:[%s3388_s1 + $0x270] sm:$0xf]  ;;  %v2325_v2 = vld [vmem:[%s3388_s1 + $0x274] sm:$0xf0]  ;;  %v1782_v4 = vld [vmem:[%s3388_s1 + $0x180] sm:$0xf]  ;;  %v1703_v8 = vor.u32 %v2279_v62, %v1702_v61 }
  0x38   : > { %694 = vmatpush.bf16.msrb.mxu2 %v1823_v12  ;;  %v2324_v5 = vld [vmem:[%s3388_s1 + $0x274] sm:$0xf]  ;;  %v1920_v6 = vld [vmem:[%s3388_s1 + $0x278] sm:$0xf0]  ;;  %v2295_v9 = vld [vmem:[%s3388_s1 + $0x184] sm:$0xf0]  ;;  %v1707_v12 = vor.u32 %v2278_v63, %v1704_v0 }
  0x39   : > { %712 = vmatpush.bf16.msrb.mxu3 %v1827_v13  ;;  %v2294_v10 = vld [vmem:[%s3388_s1 + $0x184] sm:$0xf]  ;;  %v1784_v11 = vld [vmem:[%s3388_s1 + $0x188] sm:$0xf0]  ;;  %v1998_v15 = vld [vmem:[%s3388_s1 + $0x2f0] sm:$0xf]  ;;  %v1783_v21 = vor.u32 %v2295_v9, %v1782_v4 }
  0x3a   : > { %551 = vmatpush.bf16.msrb.mxu0 %v1735_v14  ;;  %v446_v13 = vld [vmem:[%s2660_s24 + $0x2] sm:$0xff]  ;;  %v1919_v14 = vor.u32 %v2325_v2, %v1918_v1  ;;  %v2341_v16 = vld [vmem:[%s3388_s1 + $0x2f4] sm:$0xf0]  ;;  %v447_v17 = vld [vmem:[%s2660_s24 + $0xa] sm:$0xff]  ;;  %v1787_v24 = vor.u32 %v2294_v10, %v1784_v11 }
  0x3b   : > { %569 = vmatpush.bf16.msrb.mxu1 %v1739_v18  ;;  %v1923_v18 = vor.u32 %v2324_v5, %v1920_v6  ;;  %v2340_v19 = vld [vmem:[%s3388_s1 + $0x2f4] sm:$0xf]  ;;  %v2000_v20 = vld [vmem:[%s3388_s1 + $0x2f8] sm:$0xf0]  ;;  %v590_v22 = vld [vmem:[%s2660_s24 + $0x6] sm:$0xff]  ;;  %v449_v30 = vpack.c.bf16 %v447_v17, %v446_v13 }
  0x3c   : > { %695 = vmatpush.bf16.msrb.mxu2 %v1815_v25  ;;  %v2889_v23 = vld [vmem:[%s2660_s24 + $0xe] sm:$0xff]  ;;  %v1999_v25 = vor.u32 %v2341_v16, %v1998_v15  ;;  %v2322_v29 = vld [vmem:[%s3388_s1 + $0x264] sm:$0xf]  ;;  %v2003_v31 = vor.u32 %v2340_v19, %v2000_v20  ;;  %v2339_v34 = vld [vmem:[%s3388_s1 + $0x2e4] sm:$0xf0] }
  0x3d   : > { %713 = vmatpush.bf16.msrb.mxu3 %v1819_v27  ;;  %307 = vmatmul.bf16.gmra.mxu0 %v196_v32  ;;  %v1910_v27 = vld [vmem:[%s3388_s1 + $0x260] sm:$0xf]  ;;  %v593_v35 = vpack.c.bf16 %v2889_v23, %v590_v22  ;;  %v2338_v36 = vld [vmem:[%s3388_s1 + $0x2e4] sm:$0xf]  ;;  %v2320_v44 = vld [vmem:[%s3388_s1 + $0x254] sm:$0xf] }
  0x3e   : > { %552 = vmatpush.bf16.msrb.mxu0 %v1727_v28  ;;  %325 = vmatmul.bf16.gmra.mxu1 %v196_v32  ;;  %v2323_v28 = vld [vmem:[%s3388_s1 + $0x264] sm:$0xf0]  ;;  %v1912_v32 = vld [vmem:[%s3388_s1 + $0x268] sm:$0xf0]  ;;  %v1904_v46 = vld [vmem:[%s3388_s1 + $0x258] sm:$0xf0] }
  0x3f   : > { %570 = vmatpush.bf16.msrb.mxu1 %v1731_v33  ;;  %423 = vmatmul.bf16.gmra.mxu2 %v175_v37  ;;  %v1990_v33 = vld [vmem:[%s3388_s1 + $0x2e0] sm:$0xf]  ;;  %v1911_v38 = vor.u32 %v2323_v28, %v1910_v27  ;;  %v1915_v39 = vor.u32 %v2322_v29, %v1912_v32  ;;  %v2337_v48 = vld [vmem:[%s3388_s1 + $0x2d4] sm:$0xf0]  ;;  %v2336_v49 = vld [vmem:[%s3388_s1 + $0x2d4] sm:$0xf]  ;;  %v1907_v52 = vor.u32 %v2320_v44, %v1904_v46 }
  0x40   : > { %441 = vmatmul.bf16.gmra.mxu3 %v175_v37  ;;  %696 = vmatpush.bf16.msrb.mxu2 %v1807_v41  ;;  %v1992_v37 = vld [vmem:[%s3388_s1 + $0x2e8] sm:$0xf0]  ;;  %v1991_v41 = vor.u32 %v2339_v34, %v1990_v33  ;;  %v1984_v50 = vld [vmem:[%s3388_s1 + $0x2d8] sm:$0xf0]  ;;  %v1894_v54 = vld [vmem:[%s3388_s1 + $0x240] sm:$0xf] }
  0x41   : > { %714 = vmatpush.bf16.msrb.mxu3 %v1811_v42  ;;  %v1902_v42 = vld [vmem:[%s3388_s1 + $0x250] sm:$0xf]  ;;  %v1995_v45 = vor.u32 %v2338_v36, %v1992_v37  ;;  %v1987_v57 = vor.u32 %v2336_v49, %v1984_v50  ;;  %v1896_v58 = vld [vmem:[%s3388_s1 + $0x248] sm:$0xf0]  ;;  %v1974_v59 = vld [vmem:[%s3388_s1 + $0x2c0] sm:$0xf] }
  0x42   : > { %553 = vmatpush.bf16.msrb.mxu0 %v1719_v43  ;;  %v2321_v43 = vld [vmem:[%s3388_s1 + $0x254] sm:$0xf0]  ;;  %v2334_v61 = vld [vmem:[%s3388_s1 + $0x2c4] sm:$0xf]  ;;  %v1976_v62 = vld [vmem:[%s3388_s1 + $0x2c8] sm:$0xf0] }
  0x43   : > { %571 = vmatpush.bf16.msrb.mxu1 %v1723_v47  ;;  %v1982_v47 = vld [vmem:[%s3388_s1 + $0x2d0] sm:$0xf]  ;;  %v1903_v51 = vor.u32 %v2321_v43, %v1902_v42  ;;  %v2316_v4 = vld [vmem:[%s3388_s1 + $0x234] sm:$0xf]  ;;  %v1979_v5 = vor.u32 %v2334_v61, %v1976_v62  ;;  %v1888_v6 = vld [vmem:[%s3388_s1 + $0x238] sm:$0xf0] }
  0x44   : > { %697 = vmatpush.bf16.msrb.mxu2 %v1799_v53  ;;  %v1983_v53 = vor.u32 %v2337_v48, %v1982_v47  ;;  %v1886_v2 = vld [vmem:[%s3388_s1 + $0x230] sm:$0xf]  ;;  %v2332_v10 = vld [vmem:[%s3388_s1 + $0x2b4] sm:$0xf]  ;;  %v1968_v11 = vld [vmem:[%s3388_s1 + $0x2b8] sm:$0xf0] }
  0x45   : > { %715 = vmatpush.bf16.msrb.mxu3 %v1803_v55  ;;  %v2319_v55 = vld [vmem:[%s3388_s1 + $0x244] sm:$0xf0]  ;;  %v448_v9 = vld [vmem:[%s2660_s24 + $0x12] sm:$0xff]  ;;  %v1878_v16 = vld [vmem:[%s3388_s1 + $0x220] sm:$0xf]  ;;  %v1971_v20 = vor.u32 %v2332_v10, %v1968_v11 }
  0x46   : > { %554 = vmatpush.bf16.msrb.mxu0 %v1711_v56  ;;  %v2318_v56 = vld [vmem:[%s3388_s1 + $0x244] sm:$0xf]  ;;  %v1895_v63 = vor.u32 %v2319_v55, %v1894_v54  ;;  %v2315_v17 = vld [vmem:[%s3388_s1 + $0x224] sm:$0xf0]  ;;  %v450_v19 = vpack.c.bf16 %v448_v9, %v448_v9  ;;  %v1958_v22 = vld [vmem:[%s3388_s1 + $0x2a0] sm:$0xf] }
  0x47   : > { %572 = vmatpush.bf16.msrb.mxu1 %v1715_v60  ;;  %v2335_v60 = vld [vmem:[%s3388_s1 + $0x2c4] sm:$0xf0]  ;;  %v1899_v0 = vor.u32 %v2318_v56, %v1896_v58  ;;  %v2330_v27 = vld [vmem:[%s3388_s1 + $0x2a4] sm:$0xf]  ;;  %v1960_v28 = vld [vmem:[%s3388_s1 + $0x2a8] sm:$0xf0]  ;;  %v1879_v29 = vor.u32 %v2315_v17, %v1878_v16  ;;  %v881_v16 = vpack.c.bf16 %v2773_v26, %v2675_v40 }
  0x48   : > { %698 = vmatpush.bf16.msrb.mxu2 %v1791_v3  ;;  %v1975_v1 = vor.u32 %v2335_v60, %v1974_v59  ;;  %v2317_v3 = vld [vmem:[%s3388_s1 + $0x234] sm:$0xf0]  ;;  %v1870_v32 = vld [vmem:[%s3388_s1 + $0x210] sm:$0xf]  ;;  %v2312_v34 = vld [vmem:[%s3388_s1 + $0x214] sm:$0xf] }
  0x49   : > { %716 = vmatpush.bf16.msrb.mxu3 %v1795_v7  ;;  %v1966_v7 = vld [vmem:[%s3388_s1 + $0x2b0] sm:$0xf]  ;;  %v1887_v13 = vor.u32 %v2317_v3, %v1886_v2  ;;  %v2313_v33 = vld [vmem:[%s3388_s1 + $0x214] sm:$0xf0]  ;;  %v1872_v36 = vld [vmem:[%s3388_s1 + $0x218] sm:$0xf0] }
  0x4a   : > { %555 = vmatpush.bf16.msrb.mxu0 %v1703_v8  ;;  %v2333_v8 = vld [vmem:[%s3388_s1 + $0x2b4] sm:$0xf0]  ;;  %v1950_v37 = vld [vmem:[%s3388_s1 + $0x290] sm:$0xf]  ;;  %v1871_v42 = vor.u32 %v2313_v33, %v1870_v32  ;;  %v1862_v43 = vld [vmem:[%s3388_s1 + $0x200] sm:$0xf] }
  0x4b   : > { %573 = vmatpush.bf16.msrb.mxu1 %v1707_v12  ;;  %v2990_v12 = vld [vmem:[%s2660_s24 + $0x16] sm:$0xff]  ;;  %v1967_v15 = vor.u32 %v2333_v8, %v1966_v7  ;;  %v2311_v44 = vld [vmem:[%s3388_s1 + $0x204] sm:$0xf0]  ;;  %v2310_v47 = vld [vmem:[%s3388_s1 + $0x204] sm:$0xf] }
  0x4c   : > { %699 = vmatpush.bf16.msrb.mxu2 %v1783_v21  ;;  %v1880_v21 = vld [vmem:[%s3388_s1 + $0x228] sm:$0xf0]  ;;  %v1942_v49 = vld [vmem:[%s3388_s1 + $0x280] sm:$0xf]  ;;  %v2078_v54 = vld [vmem:[%s3388_s1 + $0x370] sm:$0xf] }
  0x4d   : > { %717 = vmatpush.bf16.msrb.mxu3 %v1787_v24  ;;  %556 = vmatmul.bf16.vlgmr.msrb.gmra.mxu0 %v449_v30  ;;  %v2331_v24 = vld [vmem:[%s3388_s1 + $0x2a4] sm:$0xf0]  ;;  %v1864_v48 = vld [vmem:[%s3388_s1 + $0x208] sm:$0xf0]  ;;  %v2357_v55 = vld [vmem:[%s3388_s1 + $0x374] sm:$0xf0] }
  0x4e   : > { %836 = vmatpush.bf16.msra.mxu0 %v1919_v14  ;;  %574 = vmatmul.bf16.vlgmr.msrb.gmra.mxu1 %v449_v30  ;;  %v1891_v14 = vor.u32 %v2316_v4, %v1888_v6  ;;  %v2356_v56 = vld [vmem:[%s3388_s1 + $0x374] sm:$0xf]  ;;  %v2080_v58 = vld [vmem:[%s3388_s1 + $0x378] sm:$0xf0]  ;;  %v2158_v59 = vld [vmem:[%s3388_s1 + $0x3f0] sm:$0xf]  ;;  %v1867_v61 = vor.u32 %v2310_v47, %v1864_v48  ;;  %v2079_v2 = vor.u32 %v2357_v55, %v2078_v54 }
  0x4f   : > { %854 = vmatpush.bf16.msra.mxu1 %v1923_v18  ;;  %700 = vmatmul.bf16.vlgmr.msrb.gmra.mxu2 %v593_v35  ;;  %v2314_v18 = vld [vmem:[%s3388_s1 + $0x224] sm:$0xf]  ;;  %v2373_v60 = vld [vmem:[%s3388_s1 + $0x3f4] sm:$0xf0]  ;;  %v735_v4 = vld [vmem:[%s2660_s24 + $0xf] sm:$0xff] }
  0x50   : > { %980 = vmatpush.bf16.msra.mxu2 %v1999_v25  ;;  %718 = vmatmul.bf16.vlgmr.msrb.gmra.mxu3 %v593_v35  ;;  %v594_v25 = vpack.c.bf16 %v2990_v12, %v2990_v12  ;;  %v1883_v30 = vor.u32 %v2314_v18, %v1880_v21  ;;  %v1963_v35 = vor.u32 %v2330_v27, %v1960_v28  ;;  %v734_v3 = vld [vmem:[%s2660_s24 + $0x7] sm:$0xff]  ;;  %v2070_v8 = vld [vmem:[%s3388_s1 + $0x360] sm:$0xf]  ;;  %v2353_v40 = vld [vmem:[%s3388_s1 + $0x354] sm:$0xf0] }
  0x51   : > { %998 = vmatpush.bf16.msra.mxu3 %v2003_v31  ;;  %v1959_v31 = vor.u32 %v2331_v24, %v1958_v22  ;;  %v2159_v6 = vor.u32 %v2373_v60, %v2158_v59  ;;  %v2355_v9 = vld [vmem:[%s3388_s1 + $0x364] sm:$0xf0]  ;;  %v2354_v10 = vld [vmem:[%s3388_s1 + $0x364] sm:$0xf]  ;;  %v737_v11 = vpack.c.bf16 %v735_v4, %v734_v3  ;;  %v2152_v18 = vld [vmem:[%s3388_s1 + $0x3e8] sm:$0xf0] }
  0x52   : > { %837 = vmatpush.bf16.msra.mxu0 %v1911_v38  ;;  %v2329_v38 = vld [vmem:[%s3388_s1 + $0x294] sm:$0xf0]  ;;  %v2370_v17 = vld [vmem:[%s3388_s1 + $0x3e4] sm:$0xf]  ;;  %v2062_v22 = vld [vmem:[%s3388_s1 + $0x350] sm:$0xf] }
  0x53   : > { %855 = vmatpush.bf16.msra.mxu1 %v1915_v39  ;;  %v2328_v39 = vld [vmem:[%s3388_s1 + $0x294] sm:$0xf]  ;;  %v1951_v46 = vor.u32 %v2329_v38, %v1950_v37  ;;  %v2155_v24 = vor.u32 %v2370_v17, %v2152_v18  ;;  %v2142_v27 = vld [vmem:[%s3388_s1 + $0x3d0] sm:$0xf]  ;;  %v2369_v28 = vld [vmem:[%s3388_s1 + $0x3d4] sm:$0xf0] }
  0x54   : > { %981 = vmatpush.bf16.msra.mxu2 %v1991_v41  ;;  %v1952_v41 = vld [vmem:[%s3388_s1 + $0x298] sm:$0xf0]  ;;  %v2352_v26 = vld [vmem:[%s3388_s1 + $0x354] sm:$0xf]  ;;  %v2143_v33 = vor.u32 %v2369_v28, %v2142_v27  ;;  %v2056_v38 = vld [vmem:[%s3388_s1 + $0x348] sm:$0xf0] }
  0x55   : > { %999 = vmatpush.bf16.msra.mxu3 %v1995_v45  ;;  %v1875_v45 = vor.u32 %v2312_v34, %v1872_v36  ;;  %v1955_v50 = vor.u32 %v2328_v39, %v1952_v41  ;;  %v2054_v34 = vld [vmem:[%s3388_s1 + $0x340] sm:$0xf]  ;;  %v2350_v36 = vld [vmem:[%s3388_s1 + $0x344] sm:$0xf]  ;;  %v2367_v41 = vld [vmem:[%s3388_s1 + $0x3c4] sm:$0xf0] }
  0x56   : > { %838 = vmatpush.bf16.msra.mxu0 %v1903_v51  ;;  %v2327_v51 = vld [vmem:[%s3388_s1 + $0x284] sm:$0xf0]  ;;  %v2134_v39 = vld [vmem:[%s3388_s1 + $0x3c0] sm:$0xf]  ;;  %v2046_v47 = vld [vmem:[%s3388_s1 + $0x330] sm:$0xf] }
  0x57   : > { %856 = vmatpush.bf16.msra.mxu1 %v1907_v52  ;;  %v2326_v52 = vld [vmem:[%s3388_s1 + $0x284] sm:$0xf]  ;;  %v1943_v62 = vor.u32 %v2327_v51, %v1942_v49  ;;  %v2349_v48 = vld [vmem:[%s3388_s1 + $0x334] sm:$0xf0]  ;;  %v2348_v49 = vld [vmem:[%s3388_s1 + $0x334] sm:$0xf] }
  0x58   : > { %982 = vmatpush.bf16.msra.mxu2 %v1983_v53  ;;  %v1944_v53 = vld [vmem:[%s3388_s1 + $0x288] sm:$0xf0]  ;;  %v2048_v51 = vld [vmem:[%s3388_s1 + $0x338] sm:$0xf0]  ;;  %v2364_v55 = vld [vmem:[%s3388_s1 + $0x3b4] sm:$0xf] }
  0x59   : > { %1000 = vmatpush.bf16.msra.mxu3 %v1987_v57  ;;  %v1863_v57 = vor.u32 %v2311_v44, %v1862_v43  ;;  %v2136_v43 = vld [vmem:[%s3388_s1 + $0x3c8] sm:$0xf0]  ;;  %v736_v54 = vld [vmem:[%s2660_s24 + $0x17] sm:$0xff]  ;;  %v2051_v59 = vor.u32 %v2348_v49, %v2048_v51  ;;  %v2118_v3 = vld [vmem:[%s3388_s1 + $0x3a0] sm:$0xf] }
  0x5a   : > { %839 = vmatpush.bf16.msra.mxu0 %v1895_v63  ;;  %v2372_v63 = vld [vmem:[%s3388_s1 + $0x3f4] sm:$0xf]  ;;  %v2363_v4 = vld [vmem:[%s3388_s1 + $0x3a4] sm:$0xf0]  ;;  %v2110_v17 = vld [vmem:[%s3388_s1 + $0x390] sm:$0xf] }
  0x5b   : > { %857 = vmatpush.bf16.msra.mxu1 %v1899_v0  ;;  %v2160_v0 = vld [vmem:[%s3388_s1 + $0x3f8] sm:$0xf0]  ;;  %v2361_v18 = vld [vmem:[%s3388_s1 + $0x394] sm:$0xf0]  ;;  %v2024_v27 = vld [vmem:[%s3388_s1 + $0x308] sm:$0xf0] }
  0x5c   : > { %983 = vmatpush.bf16.msra.mxu2 %v1975_v1  ;;  %v1947_v1 = vor.u32 %v2326_v52, %v1944_v53  ;;  %v2163_v7 = vor.u32 %v2372_v63, %v2160_v0  ;;  %v2126_v52 = vld [vmem:[%s3388_s1 + $0x3b0] sm:$0xf]  ;;  %v2365_v53 = vld [vmem:[%s3388_s1 + $0x3b4] sm:$0xf0]  ;;  %v2346_v63 = vld [vmem:[%s3388_s1 + $0x324] sm:$0xf]  ;;  %v738_v0 = vpack.c.bf16 %v736_v54, %v736_v54 }
  0x5d   : > { %1001 = vmatpush.bf16.msra.mxu3 %v1979_v5  ;;  %561 = vmatmul.bf16.gmra.mxu0 %v450_v19  ;;  %v2083_v5 = vor.u32 %v2356_v56, %v2080_v58  ;;  %v2128_v56 = vld [vmem:[%s3388_s1 + $0x3b8] sm:$0xf0]  ;;  %v2047_v58 = vor.u32 %v2349_v48, %v2046_v47  ;;  %v2127_v60 = vor.u32 %v2365_v53, %v2126_v52  ;;  %v2230_v48 = vld [vmem:[%s3388_s1 + $0x460] sm:$0xf]  ;;  %v2387_v49 = vld [vmem:[%s3388_s1 + $0x464] sm:$0xf0] }
  0x5e   : > { %840 = vmatpush.bf16.msra.mxu0 %v1887_v13  ;;  %579 = vmatmul.bf16.gmra.mxu1 %v450_v19  ;;  %v2072_v13 = vld [vmem:[%s3388_s1 + $0x368] sm:$0xf0]  ;;  %v2071_v19 = vor.u32 %v2355_v9, %v2070_v8  ;;  %v1167_v47 = vld [vmem:[%s2660_s24 + $0x15] sm:$0xff]  ;;  %v2386_v51 = vld [vmem:[%s3388_s1 + $0x464] sm:$0xf]  ;;  %v2231_v54 = vor.u32 %v2387_v49, %v2230_v48 }
  0x5f   : > { %858 = vmatpush.bf16.msra.mxu1 %v1891_v14  ;;  %705 = vmatmul.bf16.gmra.mxu2 %v594_v25  ;;  %v2150_v14 = vld [vmem:[%s3388_s1 + $0x3e0] sm:$0xf]  ;;  %v2232_v52 = vld [vmem:[%s3388_s1 + $0x468] sm:$0xf0] }
  0x60   : > { %984 = vmatpush.bf16.msra.mxu2 %v1967_v15  ;;  %723 = vmatmul.bf16.gmra.mxu3 %v594_v25  ;;  %v2371_v15 = vld [vmem:[%s3388_s1 + $0x3e4] sm:$0xf0]  ;;  %v2064_v25 = vld [vmem:[%s3388_s1 + $0x358] sm:$0xf0] }
  0x61   : > { %1002 = vmatpush.bf16.msra.mxu3 %v1971_v20  ;;  %v2075_v20 = vor.u32 %v2354_v10, %v2072_v13  ;;  %v2151_v21 = vor.u32 %v2371_v15, %v2150_v14  ;;  %v2067_v32 = vor.u32 %v2352_v26, %v2064_v25  ;;  %v2119_v10 = vor.u32 %v2363_v4, %v2118_v3  ;;  %v2345_v13 = vld [vmem:[%s3388_s1 + $0x314] sm:$0xf0]  ;;  %v2344_v14 = vld [vmem:[%s3388_s1 + $0x314] sm:$0xf]  ;;  %v2342_v25 = vld [vmem:[%s3388_s1 + $0x304] sm:$0xf] }
  0x62   : > { %841 = vmatpush.bf16.msra.mxu0 %v1879_v29  ;;  %v2368_v29 = vld [vmem:[%s3388_s1 + $0x3d4] sm:$0xf]  ;;  %v2111_v26 = vor.u32 %v2361_v18, %v2110_v17  ;;  %v2206_v4 = vld [vmem:[%s3388_s1 + $0x430] sm:$0xf]  ;;  %v2200_v17 = vld [vmem:[%s3388_s1 + $0x428] sm:$0xf0] }
  0x63   : > { %859 = vmatpush.bf16.msra.mxu1 %v1883_v30  ;;  %v2144_v30 = vld [vmem:[%s3388_s1 + $0x3d8] sm:$0xf0] }
  0x64   : > { %985 = vmatpush.bf16.msra.mxu2 %v1959_v31  ;;  %v2063_v31 = vor.u32 %v2353_v40, %v2062_v22  ;;  %v2147_v37 = vor.u32 %v2368_v29, %v2144_v30  ;;  %v2022_v22 = vld [vmem:[%s3388_s1 + $0x300] sm:$0xf]  ;;  %v2359_v30 = vld [vmem:[%s3388_s1 + $0x384] sm:$0xf0] }
  0x65   : > { %1003 = vmatpush.bf16.msra.mxu3 %v1963_v35  ;;  %v2351_v35 = vld [vmem:[%s3388_s1 + $0x344] sm:$0xf0]  ;;  %v2102_v29 = vld [vmem:[%s3388_s1 + $0x380] sm:$0xf] }
  0x66   : > { %842 = vmatpush.bf16.msra.mxu0 %v1871_v42  ;;  %v2366_v42 = vld [vmem:[%s3388_s1 + $0x3c4] sm:$0xf]  ;;  %v2055_v44 = vor.u32 %v2351_v35, %v2054_v34  ;;  %v2389_v34 = vld [vmem:[%s3388_s1 + $0x474] sm:$0xf0] }
  0x67   : > { %860 = vmatpush.bf16.msra.mxu1 %v1875_v45  ;;  %v2059_v45 = vor.u32 %v2350_v36, %v2056_v38  ;;  %v2388_v36 = vld [vmem:[%s3388_s1 + $0x474] sm:$0xf]  ;;  %v2027_v38 = vor.u32 %v2342_v25, %v2024_v27  ;;  %v2182_v27 = vld [vmem:[%s3388_s1 + $0x400] sm:$0xf] }
  0x68   : > { %986 = vmatpush.bf16.msra.mxu2 %v1951_v46  ;;  %v2135_v46 = vor.u32 %v2367_v41, %v2134_v39  ;;  %v2103_v39 = vor.u32 %v2359_v30, %v2102_v29  ;;  %v2374_v29 = vld [vmem:[%s3388_s1 + $0x404] sm:$0xf]  ;;  %v2184_v30 = vld [vmem:[%s3388_s1 + $0x408] sm:$0xf0] }
  0x69   : > { %1004 = vmatpush.bf16.msra.mxu3 %v1955_v50  ;;  %v2139_v50 = vor.u32 %v2366_v42, %v2136_v43  ;;  %v1022_v43 = vld [vmem:[%s2660_s24 + $0xc] sm:$0xff] }
  0x6a   : > { %843 = vmatpush.bf16.msra.mxu0 %v1863_v57  ;;  %v880_v57 = vld [vmem:[%s2660_s24 + $0x18] sm:$0xff] }
  0x6b   : > { %861 = vmatpush.bf16.msra.mxu1 %v1867_v61  ;;  %v2038_v61 = vld [vmem:[%s3388_s1 + $0x320] sm:$0xf] }
  0x6c   : > { %987 = vmatpush.bf16.msra.mxu2 %v1943_v62  ;;  %v2347_v62 = vld [vmem:[%s3388_s1 + $0x324] sm:$0xf0] }
  0x6d   : > { %1005 = vmatpush.bf16.msra.mxu3 %v1947_v1  ;;  %844 = vmatmul.bf16.vlgmr.msra.gmra.mxu0 %v737_v11  ;;  %v2131_v1 = vor.u32 %v2364_v55, %v2128_v56  ;;  %v2039_v8 = vor.u32 %v2347_v62, %v2038_v61  ;;  %v2235_v55 = vor.u32 %v2386_v51, %v2232_v52  ;;  %v2222_v56 = vld [vmem:[%s3388_s1 + $0x450] sm:$0xf]  ;;  %v2214_v62 = vld [vmem:[%s3388_s1 + $0x440] sm:$0xf] }
  0x6e   : > { %1124 = vmatpush.bf16.msrb.mxu0 %v2079_v2  ;;  %862 = vmatmul.bf16.vlgmr.msra.gmra.mxu1 %v737_v11  ;;  %v2040_v2 = vld [vmem:[%s3388_s1 + $0x328] sm:$0xf0]  ;;  %v2030_v11 = vld [vmem:[%s3388_s1 + $0x310] sm:$0xf] }
  0x6f   : > { %1142 = vmatpush.bf16.msrb.mxu1 %v2083_v5  ;;  %988 = vmatmul.bf16.vlgmr.msra.gmra.mxu2 %v881_v16  ;;  %v882_v5 = vpack.c.bf16 %v880_v57, %v880_v57  ;;  %v2043_v9 = vor.u32 %v2346_v63, %v2040_v2  ;;  %v2385_v57 = vld [vmem:[%s3388_s1 + $0x454] sm:$0xf0]  ;;  %v2383_v63 = vld [vmem:[%s3388_s1 + $0x444] sm:$0xf0] }
  0x70   : > { %1268 = vmatpush.bf16.msrb.mxu2 %v2159_v6  ;;  %1006 = vmatmul.bf16.vlgmr.msra.gmra.mxu3 %v881_v16  ;;  %v2362_v6 = vld [vmem:[%s3388_s1 + $0x3a4] sm:$0xf]  ;;  %v2032_v16 = vld [vmem:[%s3388_s1 + $0x318] sm:$0xf0]  ;;  %v2215_v2 = vor.u32 %v2383_v63, %v2214_v62 }
  0x71   : > { %1286 = vmatpush.bf16.msrb.mxu3 %v2163_v7  ;;  %v2120_v7 = vld [vmem:[%s3388_s1 + $0x3a8] sm:$0xf0]  ;;  %v2035_v40 = vor.u32 %v2344_v14, %v2032_v16  ;;  %v2379_v14 = vld [vmem:[%s3388_s1 + $0x424] sm:$0xf0]  ;;  %v2378_v16 = vld [vmem:[%s3388_s1 + $0x424] sm:$0xf] }
  0x72   : > { %1125 = vmatpush.bf16.msrb.mxu0 %v2071_v19  ;;  %v2123_v15 = vor.u32 %v2362_v6, %v2120_v7  ;;  %v2360_v19 = vld [vmem:[%s3388_s1 + $0x394] sm:$0xf]  ;;  %v2208_v7 = vld [vmem:[%s3388_s1 + $0x438] sm:$0xf0] }
  0x73   : > { %1143 = vmatpush.bf16.msrb.mxu1 %v2075_v20  ;;  %v2112_v20 = vld [vmem:[%s3388_s1 + $0x398] sm:$0xf0]  ;;  %v2380_v6 = vld [vmem:[%s3388_s1 + $0x434] sm:$0xf] }
  0x74   : > { %1269 = vmatpush.bf16.msrb.mxu2 %v2151_v21  ;;  %v2031_v21 = vor.u32 %v2345_v13, %v2030_v11  ;;  %v2115_v28 = vor.u32 %v2360_v19, %v2112_v20  ;;  %v2211_v11 = vor.u32 %v2380_v6, %v2208_v7  ;;  %v2198_v13 = vld [vmem:[%s3388_s1 + $0x420] sm:$0xf]  ;;  %v2203_v20 = vor.u32 %v2378_v16, %v2200_v17 }
  0x75   : > { %1287 = vmatpush.bf16.msrb.mxu3 %v2155_v24  ;;  %v2343_v24 = vld [vmem:[%s3388_s1 + $0x304] sm:$0xf0]  ;;  %v2199_v19 = vor.u32 %v2379_v14, %v2198_v13 }
  0x76   : > { %1126 = vmatpush.bf16.msrb.mxu0 %v2063_v31  ;;  %v2358_v31 = vld [vmem:[%s3388_s1 + $0x384] sm:$0xf]  ;;  %v2023_v35 = vor.u32 %v2343_v24, %v2022_v22  ;;  %v2377_v22 = vld [vmem:[%s3388_s1 + $0x414] sm:$0xf0] }
  0x77   : > { %1144 = vmatpush.bf16.msrb.mxu1 %v2067_v32  ;;  %v2104_v32 = vld [vmem:[%s3388_s1 + $0x388] sm:$0xf0] }
  0x78   : > { %1270 = vmatpush.bf16.msrb.mxu2 %v2143_v33  ;;  %v2238_v33 = vld [vmem:[%s3388_s1 + $0x470] sm:$0xf]  ;;  %v2107_v41 = vor.u32 %v2358_v31, %v2104_v32  ;;  %v2187_v32 = vor.u32 %v2374_v29, %v2184_v30 }
  0x79   : > { %1288 = vmatpush.bf16.msrb.mxu3 %v2147_v37  ;;  %v2240_v37 = vld [vmem:[%s3388_s1 + $0x478] sm:$0xf0]  ;;  %v2239_v42 = vor.u32 %v2389_v34, %v2238_v33  ;;  %v1313_v34 = vpack.c.bf16 %v2990_v12, %v2889_v23 }
  0x7a   : > { %1127 = vmatpush.bf16.msrb.mxu0 %v2055_v44  ;;  %v1023_v44 = vld [vmem:[%s2660_s24 + $0x14] sm:$0xff]  ;;  %v1312_v33 = vld [vmem:[%s2660_s24 + $0x1e] sm:$0xff] }
  0x7b   : > { %1145 = vmatpush.bf16.msrb.mxu1 %v2059_v45  ;;  %v2243_v45 = vor.u32 %v2388_v36, %v2240_v37  ;;  %v1314_v36 = vpack.c.bf16 %v1312_v33, %v1312_v33 }
  0x7c   : > { %1271 = vmatpush.bf16.msrb.mxu2 %v2135_v46  ;;  %v1166_v46 = vld [vmem:[%s2660_s24 + $0xd] sm:$0xff] }
  0x7d   : > { %1289 = vmatpush.bf16.msrb.mxu3 %v2139_v50  ;;  %849 = vmatmul.bf16.gmra.mxu0 %v738_v0  ;;  %v1025_v50 = vpack.c.bf16 %v1023_v44, %v1022_v43  ;;  %v1169_v53 = vpack.c.bf16 %v1167_v47, %v1166_v46 }
  0x7e   : > { %1128 = vmatpush.bf16.msrb.mxu0 %v2047_v58  ;;  %867 = vmatmul.bf16.gmra.mxu1 %v738_v0  ;;  %v2384_v58 = vld [vmem:[%s3388_s1 + $0x454] sm:$0xf]  ;;  %v2382_v0 = vld [vmem:[%s3388_s1 + $0x444] sm:$0xf] }
  0x7f   : > { %1146 = vmatpush.bf16.msrb.mxu1 %v2051_v59  ;;  %993 = vmatmul.bf16.gmra.mxu2 %v882_v5  ;;  %v2224_v59 = vld [vmem:[%s3388_s1 + $0x458] sm:$0xf0] }
  0x80   : > { %1272 = vmatpush.bf16.msrb.mxu2 %v2127_v60  ;;  %1011 = vmatmul.bf16.gmra.mxu3 %v882_v5  ;;  %v2223_v60 = vor.u32 %v2385_v57, %v2222_v56  ;;  %v2227_v61 = vor.u32 %v2384_v58, %v2224_v59  ;;  %v2381_v5 = vld [vmem:[%s3388_s1 + $0x434] sm:$0xf0] }
  0x81   : > { %1290 = vmatpush.bf16.msrb.mxu3 %v2131_v1  ;;  %v2216_v1 = vld [vmem:[%s3388_s1 + $0x448] sm:$0xf0] }
  0x82   : > { %1129 = vmatpush.bf16.msrb.mxu0 %v2039_v8  ;;  %v2219_v3 = vor.u32 %v2382_v0, %v2216_v1  ;;  %v1024_v8 = vld [vmem:[%s2660_s24 + $0x1c] sm:$0xff] }
  0x83   : > { %1147 = vmatpush.bf16.msrb.mxu1 %v2043_v9  ;;  %v1168_v9 = vld [vmem:[%s2660_s24 + $0x1d] sm:$0xff] }
  0x84   : > { %1273 = vmatpush.bf16.msrb.mxu2 %v2119_v10  ;;  %v2207_v10 = vor.u32 %v2381_v5, %v2206_v4  ;;  %v1170_v18 = vpack.c.bf16 %v1168_v9, %v1168_v9 }
  0x85   : > { %1291 = vmatpush.bf16.msrb.mxu3 %v2123_v15  ;;  %v1026_v15 = vpack.c.bf16 %v1024_v8, %v1024_v8 }
  0x86   : > { %1130 = vmatpush.bf16.msrb.mxu0 %v2031_v21  ;;  %v2190_v21 = vld [vmem:[%s3388_s1 + $0x410] sm:$0xf] }
  0x87   : > { %1148 = vmatpush.bf16.msrb.mxu1 %v2035_v40  ;;  %v2376_v40 = vld [vmem:[%s3388_s1 + $0x414] sm:$0xf]  ;;  %v2191_v24 = vor.u32 %v2377_v22, %v2190_v21 }
  0x88   : > { %1274 = vmatpush.bf16.msrb.mxu2 %v2111_v26  ;;  %v2192_v26 = vld [vmem:[%s3388_s1 + $0x418] sm:$0xf0] }
  0x89   : > { %1292 = vmatpush.bf16.msrb.mxu3 %v2115_v28  ;;  %v2195_v25 = vor.u32 %v2376_v40, %v2192_v26  ;;  %v2375_v28 = vld [vmem:[%s3388_s1 + $0x404] sm:$0xf0] }
  0x8a   : > { %1131 = vmatpush.bf16.msrb.mxu0 %v2023_v35  ;;  %v2183_v31 = vor.u32 %v2375_v28, %v2182_v27 }
  0x8b   : > { %1149 = vmatpush.bf16.msrb.mxu1 %v2027_v38 }
  0x8c   : > { %1275 = vmatpush.bf16.msrb.mxu2 %v2103_v39 }
  0x8d   : > { %1293 = vmatpush.bf16.msrb.mxu3 %v2107_v41  ;;  %1132 = vmatmul.bf16.vlgmr.msrb.gmra.mxu0 %v1025_v50 }
  0x8e   : > { %1412 = vmatpush.bf16.msra.mxu0 %v2239_v42  ;;  %1150 = vmatmul.bf16.vlgmr.msrb.gmra.mxu1 %v1025_v50 }
  0x8f   : > { %1430 = vmatpush.bf16.msra.mxu1 %v2243_v45  ;;  %1276 = vmatmul.bf16.vlgmr.msrb.gmra.mxu2 %v1169_v53 }
  0x90   : > { %2390 = vmatpush.bf16.msra.mxu2 %v2239_v42  ;;  %1294 = vmatmul.bf16.vlgmr.msrb.gmra.mxu3 %v1169_v53 }
  0x91   : > { %2398 = vmatpush.bf16.msra.mxu3 %v2243_v45 }
  0x92   : > { %1413 = vmatpush.bf16.msra.mxu0 %v2231_v54 }
  0x93   : > { %1431 = vmatpush.bf16.msra.mxu1 %v2235_v55 }
  0x94   : > { %2391 = vmatpush.bf16.msra.mxu2 %v2231_v54 }
  0x95   : > { %2399 = vmatpush.bf16.msra.mxu3 %v2235_v55 }
  0x96   : > { %1414 = vmatpush.bf16.msra.mxu0 %v2223_v60 }
  0x97   : > { %1432 = vmatpush.bf16.msra.mxu1 %v2227_v61 }
  0x98   : > { %2392 = vmatpush.bf16.msra.mxu2 %v2223_v60 }
  0x99   : > { %2400 = vmatpush.bf16.msra.mxu3 %v2227_v61 }
  0x9a   : > { %1415 = vmatpush.bf16.msra.mxu0 %v2215_v2 }
  0x9b   : > { %1433 = vmatpush.bf16.msra.mxu1 %v2219_v3 }
  0x9c   : > { %2393 = vmatpush.bf16.msra.mxu2 %v2215_v2 }
  0x9d   : > { %2401 = vmatpush.bf16.msra.mxu3 %v2219_v3  ;;  %1137 = vmatmul.bf16.gmra.mxu0 %v1026_v15 }
  0x9e   : > { %1416 = vmatpush.bf16.msra.mxu0 %v2207_v10  ;;  %1155 = vmatmul.bf16.gmra.mxu1 %v1026_v15 }
  0x9f   : > { %1434 = vmatpush.bf16.msra.mxu1 %v2211_v11  ;;  %1281 = vmatmul.bf16.gmra.mxu2 %v1170_v18 }
  0xa0   : > { %2394 = vmatpush.bf16.msra.mxu2 %v2207_v10  ;;  %1299 = vmatmul.bf16.gmra.mxu3 %v1170_v18 }
  0xa1   : > { %2402 = vmatpush.bf16.msra.mxu3 %v2211_v11 }
  0xa2   : > { %1417 = vmatpush.bf16.msra.mxu0 %v2199_v19 }
  0xa3   : > { %1435 = vmatpush.bf16.msra.mxu1 %v2203_v20 }
  0xa4   : > { %2395 = vmatpush.bf16.msra.mxu2 %v2199_v19 }
  0xa5   : > { %2403 = vmatpush.bf16.msra.mxu3 %v2203_v20 }
  0xa6   : > { %1418 = vmatpush.bf16.msra.mxu0 %v2191_v24 }
  0xa7   : > { %1436 = vmatpush.bf16.msra.mxu1 %v2195_v25 }
  0xa8   : > { %2396 = vmatpush.bf16.msra.mxu2 %v2191_v24 }
  0xa9   : > { %2404 = vmatpush.bf16.msra.mxu3 %v2195_v25 }
  0xaa   : > { %1419 = vmatpush.bf16.msra.mxu0 %v2183_v31  ;;  %v303_v35 = vpop.f32.mrf.mxu0 }
  0xab   : > { %1437 = vmatpush.bf16.msra.mxu1 %v2187_v32  ;;  %v321_v37 = vpop.f32.mrf.mxu1 }
  0xac   : > { %2397 = vmatpush.bf16.msra.mxu2 %v2183_v31 }
  0xad   : > { %2405 = vmatpush.bf16.msra.mxu3 %v2187_v32  ;;  %1420 = vmatmul.bf16.vlgmr.msra.gmra.mxu0 %v1313_v34 }
  0xae   : > { %1438 = vmatmul.bf16.vlgmr.msra.gmra.mxu1 %v1313_v34 }
  0xaf   : > { %1425 = vmatmul.bf16.vlgmr.msra.gmra.mxu2 %v1314_v36 }
  0xb0   : > { %1443 = vmatmul.bf16.vlgmr.msra.gmra.mxu3 %v1314_v36 }
  0xb2   : > { %v419_v38 = vpop.f32.mrf.mxu2  ;;  %v305_v42 = vpop.f32.mrf.mxu0 }
  0xb3   : > { %v420_v39 = vadd.f32 %v419_v38, %v303_v35  ;;  %v437_v41 = vpop.f32.mrf.mxu3  ;;  %v323_v44 = vpop.f32.mrf.mxu1 }
  0xb4   : > { %v438_v43 = vadd.f32 %v437_v41, %v321_v37 }
  0xba   : > { %v421_v45 = vpop.f32.mrf.mxu2  ;;  %v308_v48 = vpop.f32.mrf.mxu0 }
  0xbb   : > { %v422_v46 = vadd.f32 %v421_v45, %v305_v42  ;;  %v439_v47 = vpop.f32.mrf.mxu3  ;;  %v326_v50 = vpop.f32.mrf.mxu1 }
  0xbc   : > { %v440_v49 = vadd.f32 %v439_v47, %v323_v44 }
  0xc2   : > { %v424_v23 = vpop.f32.mrf.mxu2  ;;  %v310_v52 = vpop.f32.mrf.mxu0 }
  0xc3   : > { %v425_v12 = vadd.f32 %v424_v23, %v308_v48  ;;  %v442_v51 = vpop.f32.mrf.mxu3  ;;  %v328_v54 = vpop.f32.mrf.mxu1 }
  0xc4   : > { %v443_v53 = vadd.f32 %v442_v51, %v326_v50 }
  0xca   : > { %v426_v55 = vpop.f32.mrf.mxu2  ;;  %v557_v57 = vpop.f32.mrf.mxu0 }
  0xcb   : > { %v444_v56 = vpop.f32.mrf.mxu3  ;;  %v584_v58 = vadd.f32 %v557_v57, %v420_v39  ;;  %v575_v59 = vpop.f32.mrf.mxu1  ;;  %v1454_v55 = vld [vmem:[%s3389_s2] sm:$0x3] }
  0xcc   : > { %v585_v60 = vadd.f32 %v575_v59, %v438_v43 }
  0xd2   : > { %v701_v61 = vpop.f32.mrf.mxu2  ;;  %v559_v0 = vpop.f32.mrf.mxu0 }
  0xd3   : > { %v728_v62 = vadd.f32 %v701_v61, %v584_v58  ;;  %v719_v63 = vpop.f32.mrf.mxu3  ;;  %v586_v2 = vadd.f32 %v559_v0, %v422_v46  ;;  %v577_v3 = vpop.f32.mrf.mxu1 }
  0xd4   : > { %v729_v1 = vadd.f32 %v719_v63, %v585_v60  ;;  %v587_v4 = vadd.f32 %v577_v3, %v440_v49  ;;  %v1456_v60 = vperm.slane %v1454_v55, 0  ;;  %v1457_v3 = vperm.slane %v1454_v55, 1 }
  0xda   : > { %v703_v5 = vpop.f32.mrf.mxu2  ;;  %v562_v8 = vpop.f32.mrf.mxu0 }
  0xdb   : > { %v730_v6 = vadd.f32 %v703_v5, %v586_v2  ;;  %v721_v7 = vpop.f32.mrf.mxu3  ;;  %v588_v10 = vadd.f32 %v562_v8, %v425_v12  ;;  %v580_v11 = vpop.f32.mrf.mxu1 }
  0xdc   : > { %v731_v9 = vadd.f32 %v721_v7, %v587_v4  ;;  %v589_v13 = vadd.f32 %v580_v11, %v443_v53 }
  0xe2   : > { %v706_v14 = vpop.f32.mrf.mxu2  ;;  %v564_v17 = vpop.f32.mrf.mxu0 }
  0xe3   : > { %v732_v15 = vadd.f32 %v706_v14, %v588_v10  ;;  %v724_v16 = vpop.f32.mrf.mxu3  ;;  %v582_v19 = vpop.f32.mrf.mxu1 }
  0xe4   : > { %v733_v18 = vadd.f32 %v724_v16, %v589_v13 }
  0xea   : > { %v708_v20 = vpop.f32.mrf.mxu2  ;;  %v845_v22 = vpop.f32.mrf.mxu0 }
  0xeb   : > { %v726_v21 = vpop.f32.mrf.mxu3  ;;  %v863_v40 = vpop.f32.mrf.mxu1  ;;  %v872_v12 = vadd.f32 %v845_v22, %v728_v62 }
  0xec   : > { %v873_v52 = vadd.f32 %v863_v40, %v729_v1 }
  0xf2   : > { %v989_v26 = vpop.f32.mrf.mxu2  ;;  %v847_v25 = vpop.f32.mrf.mxu0 }
  0xf3   : > { %v1007_v24 = vpop.f32.mrf.mxu3  ;;  %v865_v27 = vpop.f32.mrf.mxu1  ;;  %v1016_v53 = vadd.f32 %v989_v26, %v872_v12  ;;  %v874_v62 = vadd.f32 %v847_v25, %v730_v6 }
  0xf4   : > { %v1017_v54 = vadd.f32 %v1007_v24, %v873_v52  ;;  %v875_v7 = vadd.f32 %v865_v27, %v731_v9 }
  0xfa   : > { %v991_v28 = vpop.f32.mrf.mxu2  ;;  %v850_v30 = vpop.f32.mrf.mxu0 }
  0xfb   : > { %v1009_v29 = vpop.f32.mrf.mxu3  ;;  %v868_v31 = vpop.f32.mrf.mxu1  ;;  %v876_v61 = vadd.f32 %v850_v30, %v732_v15  ;;  %v1018_v11 = vadd.f32 %v991_v28, %v874_v62 }
  0xfc   : > { %v877_v4 = vadd.f32 %v868_v31, %v733_v18  ;;  %v1019_v16 = vadd.f32 %v1009_v29, %v875_v7 }
 0x102   : > { %v994_v32 = vpop.f32.mrf.mxu2  ;;  %v852_v34 = vpop.f32.mrf.mxu0 }
 0x103   : > { %v1012_v33 = vpop.f32.mrf.mxu3  ;;  %v870_v35 = vpop.f32.mrf.mxu1  ;;  %v1020_v8 = vadd.f32 %v994_v32, %v876_v61 }
 0x104   : > { %v1021_v13 = vadd.f32 %v1012_v33, %v877_v4 }
 0x10a   : > { %v996_v36 = vpop.f32.mrf.mxu2  ;;  %v1133_v38 = vpop.f32.mrf.mxu0 }
 0x10b   : > { %v1014_v37 = vpop.f32.mrf.mxu3  ;;  %v1151_v39 = vpop.f32.mrf.mxu1  ;;  %v1160_v56 = vadd.f32 %v1133_v38, %v1016_v53 }
 0x10c   : > { %v1161_v57 = vadd.f32 %v1151_v39, %v1017_v54 }
 0x112   : > { %v1277_v41 = vpop.f32.mrf.mxu2  ;;  %v1135_v43 = vpop.f32.mrf.mxu0 }
 0x113   : > { %v1295_v42 = vpop.f32.mrf.mxu3  ;;  %v1153_v44 = vpop.f32.mrf.mxu1  ;;  %v1304_v58 = vadd.f32 %v1277_v41, %v1160_v56  ;;  %v1162_v6 = vadd.f32 %v1135_v43, %v1018_v11 }
 0x114   : > { %v1305_v63 = vadd.f32 %v1295_v42, %v1161_v57  ;;  %v1163_v20 = vadd.f32 %v1153_v44, %v1019_v16 }
 0x11a   : > { %v1279_v45 = vpop.f32.mrf.mxu2  ;;  %v1138_v47 = vpop.f32.mrf.mxu0 }
 0x11b   : > { %v1297_v46 = vpop.f32.mrf.mxu3  ;;  %v1156_v48 = vpop.f32.mrf.mxu1  ;;  %v1164_v17 = vadd.f32 %v1138_v47, %v1020_v8  ;;  %v1306_v22 = vadd.f32 %v1279_v45, %v1162_v6 }
 0x11c   : > { %v1165_v18 = vadd.f32 %v1156_v48, %v1021_v13  ;;  %v1307_v24 = vadd.f32 %v1297_v46, %v1163_v20 }
 0x122   : > { %v1282_v49 = vpop.f32.mrf.mxu2  ;;  %v1140_v23 = vpop.f32.mrf.mxu0 }
 0x123   : > { %v1300_v50 = vpop.f32.mrf.mxu3  ;;  %v1158_v51 = vpop.f32.mrf.mxu1  ;;  %v1308_v9 = vadd.f32 %v1282_v49, %v1164_v17 }
 0x124   : > { %v1309_v40 = vadd.f32 %v1300_v50, %v1165_v18 }
 0x12a   : > { %v1284_v59 = vpop.f32.mrf.mxu2  ;;  %v1421_v2 = vpop.f32.mrf.mxu0 }
 0x12b   : > { %v1302_v0 = vpop.f32.mrf.mxu3  ;;  %v1448_v1 = vadd.f32 %v1421_v2, %v1304_v58  ;;  %v1439_v5 = vpop.f32.mrf.mxu1 }
 0x12c   : > { %v1449_v10 = vadd.f32 %v1439_v5, %v1305_v63 }
 0x12d   : > { %v1460_v14 = vadd.f32 %v1456_v60, %v1448_v1 }
 0x12e   : > { %v1461_v15 = vadd.f32 %v1457_v3, %v1449_v10 }
 0x12f   : > { %v1466_v19 = vmax.f32 %v1460_v14, 0.0 }
 0x130   : > { %v1467_v21 = vmax.f32 %v1461_v15, 0.0 }
 0x131   : > { %1472 = vst [vmem:[%s3376_s16] sm:$0xff] %v1466_v19 }
 0x132   : > { %v1426_v26 = vpop.f32.mrf.mxu2  ;;  %1473 = vst [vmem:[%s3376_s16 + $0x8] sm:$0xff] %v1467_v21  ;;  %v1423_v28 = vpop.f32.mrf.mxu0 }
 0x133   : > { %v1452_v25 = vadd.f32 %v1426_v26, %v1308_v9  ;;  %v1444_v27 = vpop.f32.mrf.mxu3  ;;  %v1450_v30 = vadd.f32 %v1423_v28, %v1306_v22  ;;  %v1441_v31 = vpop.f32.mrf.mxu1 }
 0x134   : > { %v1453_v29 = vadd.f32 %v1444_v27, %v1309_v40  ;;  %v1451_v33 = vadd.f32 %v1441_v31, %v1307_v24 }
 0x135   : > { %v1464_v32 = vadd.f32 %v1456_v60, %v1452_v25  ;;  %v1462_v35 = vadd.f32 %v1456_v60, %v1450_v30 }
 0x136   : > { %v1465_v34 = vadd.f32 %v1457_v3, %v1453_v29  ;;  %v1463_v37 = vadd.f32 %v1457_v3, %v1451_v33 }
 0x137   : > { %v1470_v36 = vmax.f32 %v1464_v32, 0.0  ;;  %v1468_v39 = vmax.f32 %v1462_v35, 0.0 }
 0x138   : > { %v1471_v38 = vmax.f32 %v1465_v34, 0.0  ;;  %v1469_v41 = vmax.f32 %v1463_v37, 0.0 }
 0x139   : > { %1476 = vst [vmem:[%s3376_s16 + $0x20] sm:$0xff] %v1470_v36 }
 0x13a   : > { %1477 = vst [vmem:[%s3376_s16 + $0x28] sm:$0xff] %v1471_v38  ;;  %v1428_v42 = vpop.f32.mrf.mxu2 }
 0x13b   : > { %1474 = vst [vmem:[%s3376_s16 + $0x10] sm:$0xff] %v1468_v39  ;;  %v1446_v43 = vpop.f32.mrf.mxu3 }
 0x13c   : > { %1475 = vst [vmem:[%s3376_s16 + $0x18] sm:$0xff] %v1469_v41 }
 0x13d PF: > { %s13_s12 = sadd.s32 1, %s2422_s12  }
 0x13e   : > { %p10_p4 = scmp.ge.s32.totalorder %s13_s12, 4  }
 0x140   :  { %12 = sbr.rel (!%p10_p4) target bundleno = 1 (0x1), region = 70 }

// kernel: net_forward.10
= control target key start
LH: loop header
LB: loop body
LE: loop exit
PB: predicated region body
PF: predicated region fallthrough
CT: control target
= control target key end

     0   :  { %s591_s15 = smov 0   ;;  %s632_s0 = inlined_call_operand.vmem [shape: bf16[2,16,32], index: 0, kind: input, shape index: {}]   ;;  %s633_s1 = inlined_call_operand.vmem [shape: bf16[2,32,16], index: 1, kind: input, shape index: {}]   ;;  %s634_s2 = inlined_call_operand.vmem [shape: bf16[2,16,256], index: 2, kind: input, shape index: {}]   ;;  %s635_s3 = inlined_call_operand.vmem [shape: f32[2,16,256], index: 3, kind: input, shape index: {}]   ;;  %s636_s4 = inlined_call_operand.vmem [shape: f32[2,16,256], index: 4, kind: output, shape index: {}]  }
   0x1 LB: > { %s492_s16 = sadd.s32 4294967295, %s564_s15   ;;  %p496_p0 = scmp.ge.s32.totalorder %s564_s15, 1  ;;  %s564_s15 = sphi %s591_s15, %s14_s15  }
   0x2   : > { %p192_p1 = scmp.lt.s32.totalorder %s564_s15, 3 }
   0x4   : > { %p193_p2 = pnand %p496_p0, %p192_p1 }
   0x5   : > { %p233_p3 = scmp.lt.s32.totalorder (!%p193_p2), %s492_s16, 1 }
   0x6   : > { %196 = sbr.rel (%p193_p2) target bundleno = 565 (0x235), region = 36 }
   0xb   : > { %s638_s16 = smov (!%p233_p3, %s492_s16), 1  ;;  %vm282_vm0 = vcmask 261120   ;;  %vm300_vm1 = vcmask 130048  }
   0xc   : > { %s533_s17 = sshll.u32 %s638_s16, 4  ;;  %s532_s21 = sshll.u32 %s638_s16, 3 }
   0xd   : > { %s242_s20 = scalar_lea.vmem %s633_s1, %s533_s17  ;;  %s237_s24 = scalar_lea.vmem %s632_s0, %s532_s21 }
   0xe   : > { %v539_v0 = vld [vmem:[%s242_s20 + $0x8] sm:$0xff]  ;;  %v538_v1 = vld [vmem:[%s242_s20] sm:$0xff]  ;;  %s247_s27 = scalar_lea.vmem %s634_s2, %s533_s17  ;;  %s535_s28 = sshll.u32 %s638_s16, 5 }
   0xf   : > { %292 = vmatpush.bf16.msra.mxu0 %v539_v0  ;;  %v537_v2 = vld [vmem:[%s237_s24] sm:$0xff]  ;;  %v541_v18 = vld [vmem:[%s247_s27 + $0x4] sm:$0xf0]  ;;  %v524_v21 = vld [vmem:[%s247_s27 + $0x8] sm:$0xf0]  ;;  %s252_s5 = scalar_lea.vmem %s635_s3, %s535_s28  ;;  %s257_s8 = scalar_lea.vmem %s636_s4, %s535_s28 }
  0x10   : > { %v522_v17 = vld [vmem:[%s247_s27] sm:$0xf]  ;;  %v540_v19 = vld [vmem:[%s247_s27 + $0x4] sm:$0xf]  ;;  %v353_v51 = vld [vmem:[%s252_s5 + $0x8] sm:$0xff] }
  0x11   : > { %v523_v20 = vor.u32 %v541_v18, %v522_v17  ;;  %v527_v22 = vor.u32 %v540_v19, %v524_v21  ;;  %v352_v48 = vld [vmem:[%s252_s5] sm:$0xff]  ;;  %v354_v53 = vld [vmem:[%s252_s5 + $0x10] sm:$0xff]  ;;  %v355_v57 = vld [vmem:[%s252_s5 + $0x18] sm:$0xff] }
  0x13   : > { %293 = vmatpush.bf16.msra.mxu0 %v538_v1  ;;  %376 = vmatpush.bf16.msra.mxu1 %v523_v20 }
  0x14   : > { %390 = vmatpush.bf16.msra.mxu2 %v527_v22 }
  0x16   : > { %519 = vmatmul.msk.bf16.vlgmr.msra.gmra.mxu0 %vm282_vm0, %v537_v2 }
  0x93   : > { %v295_v3 = vpop.f32.mrf.mxu0 }
  0x94   : > { %v301_v4 = vsel %vm300_vm1, %v295_v3, -inf }
  0x95   : > { %302 = vmax.xlane.f32.xlu0 %v301_v4 }
  0x9b   : > { %v297_v5 = vpop.f32.mrf.mxu0 }
  0x9c   : > { %v304_v6 = vsel %vm300_vm1, %v297_v5, -inf }
  0x9d   : > { %305 = vmax.xlane.f32.xlu0 %v304_v6 }
 0x108   : > { %v303_v7 = vpop.xlane.xlu0 %302 }
 0x109   : > { %v307_v8 = vsub.f32 %v295_v3, %v303_v7 }
 0x10b   : > { %v309_v9 = vmul.f32 1.442695, %v307_v8 }
 0x10d   : > { %550 = vpow2.f32 %v309_v9 }
 0x110   : > { %v306_v10 = vpop.xlane.xlu0 %305 }
 0x111   : > { %v308_v11 = vsub.f32 %v297_v5, %v306_v10 }
 0x113   : > { %v551_v12 = vpop.eup %550  ;;  %v311_v13 = vmul.f32 1.442695, %v308_v11 }
 0x114   : > { %v313_v14 = vsel %vm300_vm1, %v551_v12, 0.0 }
 0x115   : > { %552 = vpow2.f32 %v311_v13  ;;  %314 = vadd.xlane.f32.xlu1 %v313_v14 }
 0x11b   : > { %v553_v15 = vpop.eup %552 }
 0x11c   : > { %v316_v16 = vsel %vm300_vm1, %v553_v15, 0.0 }
 0x11d   : > { %317 = vadd.xlane.f32.xlu1 %v316_v16 }
 0x188   : > { %v315_v23 = vpop.xlane.xlu1 %314 }
 0x189   : > { %554 = vrcp.f32 %v315_v23  ;;  %v330_v32 = vand.u32 2147483648, %v315_v23  ;;  %vm324_vm3 = vweird.f32 %v315_v23  ;;  %v328_v33 = vand.u32 2147483647, %v315_v23 }
 0x18b   : > { %v331_v39 = vor.u32 1.1754944e-38, %v330_v32  ;;  %vm329_vm6 = vcmp.eq.f32.partialorder %v328_v33, 8.507059e+37 }
 0x18f   : > { %v555_v24 = vpop.eup %554 }
 0x190   : > { %v320_v25 = vmul.f32 %v555_v24, %v315_v23  ;;  %v318_v26 = vpop.xlane.xlu1 %317  ;;  %vm325_vm2 = vweird.f32 %v555_v24 }
 0x191   : > { %556 = vrcp.f32 %v318_v26  ;;  %vm326_vm4 = vmor %vm324_vm3, %vm325_vm2  ;;  %v345_v35 = vand.u32 2147483648, %v318_v26  ;;  %v343_v37 = vand.u32 2147483647, %v318_v26  ;;  %vm339_vm7 = vweird.f32 %v318_v26 }
 0x192   : > { %v321_v27 = vsub.f32 1.0, %v320_v25 }
 0x193   : > { %v346_v41 = vor.u32 1.1754944e-38, %v345_v35  ;;  %vm344_vm9 = vcmp.eq.f32.partialorder %v343_v37, 8.507059e+37 }
 0x194   : > { %v322_v28 = vmul.f32 %v555_v24, %v321_v27 }
 0x196   : > { %v323_v30 = vadd.f32 %v555_v24, %v322_v28 }
 0x197   : > { %v557_v29 = vpop.eup %556 }
 0x198   : > { %v335_v31 = vmul.f32 %v557_v29, %v318_v26  ;;  %vm340_vm5 = vweird.f32 %v557_v29  ;;  %v327_v38 = vsel %vm326_vm4, %v555_v24, %v323_v30 }
 0x199   : > { %vm341_vm8 = vmor %vm339_vm7, %vm340_vm5  ;;  %v332_v42 = vsel %vm329_vm6, %v331_v39, %v327_v38 }
 0x19a   : > { %v336_v34 = vsub.f32 1.0, %v335_v31  ;;  %v333_v45 = vmul.f32 %v551_v12, %v332_v42 }
 0x19c   : > { %v337_v36 = vmul.f32 %v557_v29, %v336_v34 }
 0x19e   : > { %v338_v40 = vadd.f32 %v557_v29, %v337_v36 }
 0x1a0   : > { %v342_v43 = vsel %vm341_vm8, %v557_v29, %v338_v40 }
 0x1a1   : > { %v347_v44 = vsel %vm344_vm9, %v346_v41, %v342_v43 }
 0x1a2   : > { %v348_v46 = vmul.f32 %v553_v15, %v347_v44 }
 0x1a4   : > { %v349_v47 = vpack.c.bf16 %v348_v46, %v333_v45 }
 0x1a6   : > { %528 = vmatmul.msk.bf16.vlgmr.msra.gmra.mxu1 %vm300_vm1, %v349_v47  ;;  %529 = vmatmul.msk.bf16.vlgmr.msra.gmra.mxu2 %vm300_vm1, %v349_v47 }
 0x223   : > { %v378_v49 = vpop.f32.mrf.mxu1 }
 0x224   : > { %v379_v50 = vadd.f32 %v378_v49, %v352_v48 }
 0x226   : > { %397 = vst [vmem:[%s257_s8] sm:$0xff] %v379_v50 }
 0x229   : > { %v392_v52 = vpop.f32.mrf.mxu2 }
 0x22a   : > { %v393_v54 = vadd.f32 %v392_v52, %v353_v51 }
 0x22b   : > { %v380_v55 = vpop.f32.mrf.mxu1 }
 0x22c   : > { %398 = vst [vmem:[%s257_s8 + $0x8] sm:$0xff] %v393_v54  ;;  %v381_v56 = vadd.f32 %v380_v55, %v354_v53 }
 0x22e   : > { %399 = vst [vmem:[%s257_s8 + $0x10] sm:$0xff] %v381_v56 }
 0x231   : > { %v394_v58 = vpop.f32.mrf.mxu2 }
 0x232   : > { %v395_v59 = vadd.f32 %v394_v58, %v355_v57 }
 0x234   : > { %400 = vst [vmem:[%s257_s8 + $0x18] sm:$0xff] %v395_v59 }
 0x235 PF: > { %s14_s15 = sadd.s32 1, %s564_s15  }
 0x236   : > { %p11_p4 = scmp.ge.s32.totalorder %s14_s15, 4  }
 0x238   :  { %13 = sbr.rel (!%p11_p4) target bundleno = 1 (0x1), region = 75 }

// kernel: net_forward.11
= control target key start
LH: loop header
LB: loop body
LE: loop exit
PB: predicated region body
PF: predicated region fallthrough
CT: control target
= control target key end

     0   :  { %v582_v2 = vmov 16.0   ;;  %s744_s0 = inlined_call_operand.vmem [shape: f32[2,16,256], index: 0, kind: input, shape index: {}]   ;;  %s745_s1 = inlined_call_operand.vmem [shape: bf16[256,128], index: 1, kind: input, shape index: {}]   ;;  %s746_s2 = inlined_call_operand.vmem [shape: f32[1,128], index: 2, kind: input, shape index: {}]   ;;  %s747_s3 = inlined_call_operand.vmem [shape: bf16[128,64], index: 3, kind: input, shape index: {}]   ;;  %s748_s4 = inlined_call_operand.vmem [shape: f32[1,64], index: 4, kind: input, shape index: {}]   ;;  %s749_s5 = inlined_call_operand.vmem [shape: bf16[64,10], index: 5, kind: input, shape index: {}]   ;;  %s750_s6 = inlined_call_operand.vmem [shape: f32[1,10], index: 6, kind: input, shape index: {}]   ;;  %s751_s7 = inlined_call_operand.hbm [shape: f32[2,10], index: 7, kind: output, shape index: {}]  }
   0x1   :  { %v528_v0 = vld [vmem:[%s745_s1 + $0x38] sm:$0xff]  ;;  %554 = vrcp.f32 %v582_v2  ;;  %v527_v3 = vld [vmem:[%s745_s1 + $0x30] sm:$0xff]  ;;  %v526_v5 = vld [vmem:[%s745_s1 + $0x28] sm:$0xff] }
   0x2   :  { %v536_v1 = vld [vmem:[%s745_s1 + $0x78] sm:$0xff]  ;;  %226 = vmatpush.bf16.msra.mxu0 %v528_v0  ;;  %v535_v4 = vld [vmem:[%s745_s1 + $0x70] sm:$0xff]  ;;  %v534_v6 = vld [vmem:[%s745_s1 + $0x68] sm:$0xff] }
   0x3   :  { %239 = vmatpush.bf16.msra.mxu1 %v536_v1  ;;  %v28_v7 = vld [vmem:[%s744_s0] sm:$0xff]  ;;  %v30_v8 = vld [vmem:[%s744_s0 + $0x10] sm:$0xff]  ;;  %v29_v12 = vld [vmem:[%s744_s0 + $0x8] sm:$0xff] }
   0x4   :  { %v32_v9 = vld [vmem:[%s744_s0 + $0x20] sm:$0xff]  ;;  %v34_v10 = vld [vmem:[%s744_s0 + $0x30] sm:$0xff]  ;;  %v36_v11 = vadd.f32 %v30_v8, %v28_v7  ;;  %v31_v15 = vld [vmem:[%s744_s0 + $0x18] sm:$0xff] }
   0x5   :  { %v50_v14 = vadd.f32 %v34_v10, %v32_v9  ;;  %v33_v16 = vld [vmem:[%s744_s0 + $0x28] sm:$0xff]  ;;  %v35_v17 = vld [vmem:[%s744_s0 + $0x38] sm:$0xff]  ;;  %v43_v20 = vadd.f32 %v31_v15, %v29_v12  ;;  %v525_v24 = vld [vmem:[%s745_s1 + $0x20] sm:$0xff] }
   0x6   :  { %227 = vmatpush.bf16.msra.mxu0 %v527_v3  ;;  %v37_v18 = vrot.slane %v36_v11, 4  ;;  %v544_v21 = vld [vmem:[%s747_s3 + $0x38] sm:$0xff]  ;;  %v57_v23 = vadd.f32 %v35_v17, %v33_v16  ;;  %v533_v25 = vld [vmem:[%s745_s1 + $0x60] sm:$0xff]  ;;  %v543_v31 = vld [vmem:[%s747_s3 + $0x30] sm:$0xff] }
   0x7   :  { %240 = vmatpush.bf16.msra.mxu1 %v535_v4  ;;  %v555_v13 = vpop.eup %554  ;;  %v51_v22 = vrot.slane %v50_v14, 4  ;;  %v44_v28 = vrot.slane %v43_v20, 4  ;;  %322 = vmatpush.bf16.msra.mxu2 %v544_v21 }
   0x8   :  { %v65_v19 = vmul.f32 16.0, %v555_v13  ;;  %v38_v26 = vadd.f32 %v37_v18, %v36_v11  ;;  %v58_v30 = vrot.slane %v57_v23, 4 }
   0x9   :  { %v52_v29 = vadd.f32 %v51_v22, %v50_v14  ;;  %v45_v34 = vadd.f32 %v44_v28, %v43_v20 }
   0xa   :  { %228 = vmatpush.bf16.msra.mxu0 %v526_v5  ;;  %v66_v27 = vsub.f32 1.0, %v65_v19  ;;  %v39_v32 = vrot.slane %v38_v26, 2 }
   0xb   :  { %241 = vmatpush.bf16.msra.mxu1 %v534_v6 }
   0xc   :  { %v67_v33 = vmul.f32 %v555_v13, %v66_v27 }
   0xd   :  { %12 = vsyncpa [#allocation3], 0  ;;  %v53_v35 = vrot.slane %v52_v29, 2  ;;  %v59_v36 = vadd.f32 %v58_v30, %v57_v23  ;;  %v524_v37 = vld [vmem:[%s745_s1 + $0x18] sm:$0xff]  ;;  %v40_v39 = vadd.f32 %v39_v32, %v38_v26  ;;  %vm69_vm0 = vweird.f32 %v555_v13  ;;  %323 = vmatpush.bf16.msra.mxu2 %v543_v31  ;;  %v542_v44 = vld [vmem:[%s747_s3 + $0x28] sm:$0xff]  ;;  %s583_s28 = smov [#allocation2]  }
   0xe   :  { %229 = vmatpush.bf16.msra.mxu0 %v525_v24  ;;  %v532_v38 = vld [vmem:[%s745_s1 + $0x58] sm:$0xff]  ;;  %v68_v40 = vadd.f32 %v555_v13, %v67_v33  ;;  %v46_v41 = vrot.slane %v45_v34, 2  ;;  %v523_v50 = vld [vmem:[%s745_s1 + $0x10] sm:$0xff]  ;;  %v541_v56 = vld [vmem:[%s747_s3 + $0x20] sm:$0xff]  ;;  %vm123_vm1 = vcmask 1041409   ;;  %vm373_vm2 = vcmask 523264  }
   0xf   :  { %242 = vmatpush.bf16.msra.mxu1 %v533_v25  ;;  %v54_v42 = vadd.f32 %v53_v35, %v52_v29  ;;  %v60_v43 = vrot.slane %v59_v36, 2  ;;  %v41_v45 = vrot.slane %v40_v39, 1  ;;  %v531_v51 = vld [vmem:[%s745_s1 + $0x50] sm:$0xff]  ;;  %v522_v61 = vld [vmem:[%s745_s1 + $0x8] sm:$0xff]  ;;  %v540_v3 = vld [vmem:[%s747_s3 + $0x18] sm:$0xff]  ;;  %s397_s29 = sshll.u32 %s583_s28, 4  ;;  %s398_s29 = int_to_ptr.vmem [resolvable:$true] %s397_s29 }
  0x10   :  { %v47_v46 = vadd.f32 %v46_v41, %v45_v34  ;;  %v70_v48 = vsel %vm69_vm0, %v555_v13, %v68_v40  ;;  %v530_v62 = vld [vmem:[%s745_s1 + $0x48] sm:$0xff]  ;;  %v521_v8 = vld [vmem:[%s745_s1] sm:$0xff]  ;;  %v539_v13 = vld [vmem:[%s747_s3 + $0x10] sm:$0xff]  ;;  %s399_s8 = sshll.u32 %s751_s7, 4  ;;  %vm390_vm3 = vcmask 74752   ;;  %s400_s8 = int_to_ptr.hbm [resolvable:$true] %s399_s8 }
  0x11   :  { %v55_v47 = vrot.slane %v54_v42, 1  ;;  %v61_v49 = vadd.f32 %v60_v43, %v59_v36  ;;  %v42_v52 = vadd.f32 %v41_v45, %v40_v39  ;;  %324 = vmatpush.bf16.msra.mxu2 %v542_v44  ;;  %v529_v9 = vld [vmem:[%s745_s1 + $0x40] sm:$0xff]  ;;  %v538_v17 = vld [vmem:[%s747_s3 + $0x8] sm:$0xff]  ;;  %v548_v19 = vld [vmem:[%s749_s5 + $0x18] sm:$0xff] }
  0x12   :  { %230 = vmatpush.bf16.msra.mxu0 %v524_v37  ;;  %v48_v53 = vrot.slane %v47_v46, 1  ;;  %v537_v18 = vld [vmem:[%s747_s3] sm:$0xff]  ;;  %381 = vmatpush.bf16.msra.mxu3 %v548_v19  ;;  %v547_v20 = vld [vmem:[%s749_s5 + $0x10] sm:$0xff]  ;;  %v546_v30 = vld [vmem:[%s749_s5 + $0x8] sm:$0xff] }
  0x13   :  { %243 = vmatpush.bf16.msra.mxu1 %v532_v38  ;;  %v56_v54 = vadd.f32 %v55_v47, %v54_v42  ;;  %v62_v55 = vrot.slane %v61_v49, 1  ;;  %v71_v57 = vmul.f32 %v70_v48, %v42_v52  ;;  %v551_v21 = vld [vmem:[%s746_s2] ss:$0 sm:$0xff] }
  0x14   :  { %v49_v58 = vadd.f32 %v48_v53, %v47_v46  ;;  %v545_v31 = vld [vmem:[%s749_s5] sm:$0xff] }
  0x15   :  { %v73_v59 = vmul.f32 %v70_v48, %v56_v54  ;;  %v63_v60 = vadd.f32 %v62_v55, %v61_v49  ;;  %v75_v63 = vpack.c.bf16 %v71_v57, %v71_v57  ;;  %325 = vmatpush.bf16.msra.mxu2 %v541_v56  ;;  %v552_v32 = vld [vmem:[%s748_s4] ss:$0 sm:$0xff] }
  0x16   :  { %231 = vmatpush.bf16.msra.mxu0 %v523_v50  ;;  %v72_v0 = vmul.f32 %v70_v48, %v49_v58  ;;  %382 = vmatpush.bf16.msra.mxu3 %v547_v20  ;;  %v553_v38 = vld [vmem:[%s750_s6] ss:$0 sm:$0xff] }
  0x17   :  { %244 = vmatpush.bf16.msra.mxu1 %v531_v51  ;;  %v77_v1 = vpack.c.bf16 %v73_v59, %v73_v59  ;;  %v74_v2 = vmul.f32 %v70_v48, %v63_v60  ;;  %v119_v4 = vunpack.c.l.b16 %v75_v63 }
  0x18   :  { %v76_v5 = vpack.c.bf16 %v72_v0, %v72_v0 }
  0x19   :  { %v121_v6 = vunpack.c.l.b16 %v77_v1  ;;  %v78_v7 = vpack.c.bf16 %v74_v2, %v74_v2  ;;  %326 = vmatpush.bf16.msra.mxu2 %v540_v3 }
  0x1a   :  { %232 = vmatpush.bf16.msra.mxu0 %v522_v61  ;;  %v120_v10 = vunpack.c.l.b16 %v76_v5  ;;  %383 = vmatpush.bf16.msra.mxu3 %v546_v30 }
  0x1b   :  { %245 = vmatpush.bf16.msra.mxu1 %v530_v62  ;;  %v124_v11 = vsel %vm123_vm1, %v121_v6, %v119_v4  ;;  %v122_v12 = vunpack.c.l.b16 %v78_v7 }
  0x1c   :  { %v126_v14 = vpack.c.b16 %v124_v11, %v124_v11 }
  0x1d   :  { %v125_v15 = vsel %vm123_vm1, %v122_v12, %v120_v10  ;;  %327 = vmatpush.bf16.msra.mxu2 %v539_v13 }
  0x1e   :  { %233 = vmatpush.bf16.msra.mxu0 %v521_v8  ;;  %v127_v16 = vpack.c.b16 %v125_v15, %v125_v15  ;;  %384 = vmatpush.bf16.msra.mxu3 %v545_v31 }
  0x1f   :  { %246 = vmatpush.bf16.msra.mxu1 %v529_v9 }
  0x21   :  { %234 = vmatmul.bf16.vlgmr.msra.gmra.mxu0 %v126_v14  ;;  %328 = vmatpush.bf16.msra.mxu2 %v538_v17 }
  0x22   :  { %247 = vmatmul.bf16.vlgmr.msra.gmra.mxu1 %v127_v16 }
  0x25   :  { %329 = vmatpush.bf16.msra.mxu2 %v537_v18 }
  0x9e   :  { %v235_v22 = vpop.f32.mrf.mxu0 }
  0x9f   :  { %v248_v23 = vpop.f32.mrf.mxu1  ;;  %v236_v24 = vadd.f32 %v551_v21, %v235_v22 }
  0xa1   :  { %v249_v25 = vadd.f32 %v248_v23, %v236_v24 }
  0xa3   :  { %v252_v26 = vmax.f32 %v249_v25, 0.0 }
  0xa5   :  { %v253_v27 = vpack.c.bf16 %v252_v26, %v252_v26 }
  0xa6   :  { %v237_v28 = vpop.f32.mrf.mxu0 }
  0xa7   :  { %v250_v29 = vpop.f32.mrf.mxu1  ;;  %330 = vmatmul.bf16.vlgmr.msra.gmra.mxu2 %v253_v27 }
 0x12a   :  { %v331_v33 = vpop.f32.mrf.mxu2 }
 0x12b   :  { %v332_v34 = vadd.f32 %v552_v32, %v331_v33 }
 0x12d   :  { %v335_v35 = vmax.f32 %v332_v34, 0.0 }
 0x12f   :  { %v336_v36 = vpack.c.bf16 %v335_v35, %v335_v35 }
 0x131   :  { %520 = vmatmul.msk.bf16.vlgmr.msra.gmra.mxu3 %vm373_vm2, %v336_v36 }
 0x132   :  { %v333_v37 = vpop.f32.mrf.mxu2 }
 0x1b4   :  { %v386_v39 = vpop.f32.mrf.mxu3 }
 0x1b5   :  { %v387_v40 = vadd.f32 %v553_v38, %v386_v39 }
 0x1b7   :  { %391 = vst.msk [vmem:[#allocation2] sm:$0x3] %vm390_vm3, %v387_v40 }
 0x1b8   :  { %402 = dma.vmem_to_hbm [thread:$0]  %s398_s29, 32, %s400_s8, [#allocation3]  }
 0x1bc   :  { %v388_v41 = vpop.f32.mrf.mxu3 }
 0x1bd   :  { %580 = dma.done.wait [#allocation3], 32  }
 0x1be   :  { %581 = vsyncadd [#allocation3], 4294967264 }
 0x1bf   :  { %407 = vsyncpa [#allocation3], 1 }

</bundles_post_ra>
